<compile_context>
chip_gen: v7x
topology: tpu7x:2x2x1
jax: 0.10.0
libtpu: 0.0.40
codegen_flags: <defaults>
</compile_context>

<pallas_src>
import numpy as np
import jax
import jax.numpy as jnp
from jax import lax
from jax.experimental import pallas as pl
from jax.experimental.pallas import tpu as pltpu

# ---- model / test dimensions -------------------------------------------------
B = 2            # batch (point clouds)
N = 16           # points per cloud
INPUT_DIM = 2    # xy
OUT = 2          # out_dim
CPAD = 8         # coordinate channel padding (zero-padded xy)
N_FREQS = 10
EMB = 2 + 2 * 2 * N_FREQS          # 42
MLP_UNITS = (20, 40, 80, 60)
MLP_OUT = MLP_UNITS[-1]            # 60
SA_MID = 30                        # set-abstraction mlp = [30, 60]
NSAMPLE = 4
RADIUS = 1.0
DPAD = 128                         # q/k/v padded to a full vreg lane width
OUT_PAD = 128                      # lane-dense head output
LANES = 128

# ------------------------------------------------------------------------------
# Static slab layouts.  Every bf16 matmul weight lives in one (rows, 128) bf16
# slab (entries aligned to 16 rows = one bf16 sublane tile); every f32 aux /
# bias / constant row lives in one (rows, 128) f32 slab (8-row aligned).
# ------------------------------------------------------------------------------
_W_ENTRIES = (
    ("w11", EMB, MLP_UNITS[0]), ("w12", MLP_UNITS[0], MLP_UNITS[1]),
    ("w13", MLP_UNITS[1], MLP_UNITS[2]), ("w14", MLP_UNITS[2], MLP_OUT),
    ("sa_wc", CPAD, SA_MID), ("sa_wl", MLP_OUT, SA_MID), ("sa_wg", MLP_OUT, SA_MID),
    ("sa_w2", SA_MID, MLP_OUT),
    ("w41", MLP_OUT, MLP_UNITS[0]), ("w42", MLP_UNITS[0], MLP_UNITS[1]),
    ("w43", MLP_UNITS[1], MLP_UNITS[2]), ("w44", MLP_UNITS[2], MLP_OUT),
    ("att_wq", MLP_OUT, DPAD), ("att_wk", MLP_OUT, DPAD), ("att_wv", MLP_OUT, DPAD),
    ("head_wx", MLP_OUT, OUT_PAD), ("head_wa", DPAD, OUT_PAD),
)

_A_ENTRIES = (
    ("emb", 5, EMB),          # rows: [scale_x, scale_y, id-mask, sin/cos-mask, phase]
    ("a11", 3, MLP_UNITS[0]), ("a12", 3, MLP_UNITS[1]),
    ("a13", 3, MLP_UNITS[2]), ("a14", 3, MLP_OUT),
    ("sa_b1", 1, SA_MID), ("sa_b2", 1, MLP_OUT),
    ("a41", 3, MLP_UNITS[0]), ("a42", 3, MLP_UNITS[1]),
    ("a43", 3, MLP_UNITS[2]), ("a44", 3, MLP_OUT),
    ("att_bq", 1, DPAD), ("att_bk", 1, DPAD), ("att_bv", 1, DPAD),
    ("head_b", 1, OUT_PAD),
)


def _layout(entries, align):
    offs, rows = {}, 0
    for name, r, _ in entries:
        offs[name] = rows
        rows += -(-r // align) * align
    return offs, rows


_W_OFF, _W_ROWS = _layout(_W_ENTRIES, 16)   # bf16 tile = (16, 128)
_A_OFF, _A_ROWS = _layout(_A_ENTRIES, 8)    # f32  tile = (8, 128)
_W_DIMS = {n: (r, c) for n, r, c in _W_ENTRIES}
_A_DIMS = {n: (r, c) for n, r, c in _A_ENTRIES}


# ------------------------------------------------------------------------------
# Kernel: one grid step processes one point cloud (N=16 rows).
# ------------------------------------------------------------------------------
def _kernel(p_ref, w_ref, a_ref, o_ref):
    f32, bf16 = jnp.float32, jnp.bfloat16
    R2 = RADIUS * RADIUS

    def wslice(name):
        r, c = _W_DIMS[name]
        off = _W_OFF[name]
        return w_ref[off:off + r, 0:c]

    def aslice(name):
        r, c = _A_DIMS[name]
        off = _A_OFF[name]
        return a_ref[off:off + r, 0:c]

    def mm(a, name):
        # bf16 MXU operands, f32 accumulation.
        return jnp.dot(a.astype(bf16), wslice(name), preferred_element_type=f32)

    def mlp_layer(h, wname, aname):
        # Linear -> LayerNorm -> ReLU  (aux rows = [bias, gamma, beta]).
        # TODO(synk): MLP_stacked's exact normalisation is unspecified; LayerNorm used.
        aux = aslice(aname)
        y = mm(h, wname) + aux[0:1, :]
        mu = jnp.mean(y, axis=-1, keepdims=True)
        var = jnp.mean(y * y, axis=-1, keepdims=True) - mu * mu
        y = (y - mu) * lax.rsqrt(var + 1e-5)
        y = y * aux[1:2, :] + aux[2:3, :]
        return jnp.maximum(y, 0.0)

    p8 = p_ref[...].astype(f32)                          # (N, 8) zero-padded xy

    # ---- positional embedding; cos folded into sin via a +pi/2 phase row ----
    ec = aslice("emb")                                   # (5, 42) f32 constants
    pre = p8[:, 0:1] * ec[0:1, :] + p8[:, 1:2] * ec[1:2, :]   # 2^k * x_c, exact f32
    emb = ec[2:3, :] * pre + ec[3:4, :] * jnp.sin(pre + ec[4:5, :])   # (N, 42)

    # ---- fc_1_1 : MLP_stacked 42 -> 20 -> 40 -> 80 -> 60 ----
    h = mlp_layer(emb, "w11", "a11")
    h = mlp_layer(h, "w12", "a12")
    h = mlp_layer(h, "w13", "a13")
    x1 = mlp_layer(h, "w14", "a14")                      # (N, 60)

    g = jnp.max(x1, axis=0, keepdims=True)               # (1, 60) per-cloud global max

    # ---- fc_3 : dense PointNetSetAbstraction (radius=1, nsample=4) ----
    # TODO(synk): npoint / FPS not specified; all points kept as centroids and
    #             the BatchNorm inside the SA MLP is omitted.
    # Pairwise squared distances via a Gram matmul; norms come off its diagonal.
    gram = jnp.einsum('ic,jc->ij', p8, p8, preferred_element_type=f32)   # (N, N)
    row = lax.broadcasted_iota(jnp.int32, (N, N), 0)
    col = lax.broadcasted_iota(jnp.int32, (N, N), 1)
    eye = (row == col).astype(f32)
    dg = gram * eye
    r_sub = jnp.sum(dg, axis=1, keepdims=True)           # (N, 1)  ||p_i||^2
    r_lane = jnp.sum(dg, axis=0, keepdims=True)          # (1, N)  ||p_j||^2
    sqd = r_sub + r_lane - 2.0 * gram                    # (N, N)
    within = sqd <= R2
    lt = (row < col).astype(bf16)
    # exclusive prefix-count of in-radius neighbours -> "first nsample by index"
    excount = jnp.dot(within.astype(bf16), lt, preferred_element_type=f32)
    sel = jnp.logical_and(within, excount < float(NSAMPLE)).astype(f32)  # (N, N)

    # Shared SA MLP on [p_j - p_i | feat_j | global] decomposed per point:
    #   h1[i, j] = relu((a_j + c_j + d) - a_i),  a = p@Wc, c = x1@Wl, d = g@Wg + b1
    a_pt = mm(p8, "sa_wc")                                # (N, 30)
    t = a_pt + mm(x1, "sa_wl") + (mm(g, "sa_wg") + aslice("sa_b1"))      # (N, 30)
    h1 = jnp.maximum(t[None, :, :] - a_pt[:, None, :], 0.0)             # (N, N, 30)
    h2 = jnp.maximum(mm(h1.reshape(N * N, SA_MID), "sa_w2") + aslice("sa_b2"), 0.0)
    h2 = h2.reshape(N, N, MLP_OUT) * sel[:, :, None]      # h2 >= 0, so 0 == "ignore"
    x_sa = jnp.max(h2, axis=1)                            # (N, 60) max over neighbours

    # ---- fc_4 : MLP_stacked 60 -> 20 -> 40 -> 80 -> 60 ----
    h = mlp_layer(x_sa, "w41", "a41")
    h = mlp_layer(h, "w42", "a42")
    h = mlp_layer(h, "w43", "a43")
    x4 = mlp_layer(h, "w44", "a44")                       # (N, 60)

    # ---- fc_5 : Attention_block(60) ----
    # TODO(synk): Attention_block source unavailable; single-head scaled
    #             dot-product self-attention with residual is used.
    # q/k/v padded to 128 lanes; padded weight/bias lanes are exactly zero so the
    # 128-lane contraction equals the 60-lane one and attn padding lanes are 0.
    q = mm(x4, "att_wq") + aslice("att_bq")               # (N, 128)
    k = mm(x4, "att_wk") + aslice("att_bk")               # (N, 128)
    v = mm(x4, "att_wv") + aslice("att_bv")               # (N, 128)
    s = jnp.einsum('id,jd->ij', q.astype(bf16), k.astype(bf16),
                   preferred_element_type=f32) * (MLP_OUT ** -0.5)
    s = s - jnp.max(s, axis=-1, keepdims=True)
    e_s = jnp.exp(s)
    wgt = e_s * pl.reciprocal(jnp.sum(e_s, axis=-1, keepdims=True), approx=True)
    attn = jnp.dot(wgt.astype(bf16), v.astype(bf16), preferred_element_type=f32)

    # ---- fc_6 folded with the attention output projection (host-side fusion):
    #   out = x4 @ Wh + attn @ (Wo @ Wh) + (bo @ Wh + bh)   -- lane-dense, 128 wide
    out = mm(x4, "head_wx") + mm(attn, "head_wa") + aslice("head_b")
    o_ref[...] = out.astype(o_ref.dtype)


# ------------------------------------------------------------------------------
# Parameter construction & packing
# ------------------------------------------------------------------------------
def init_params(key):
    keys = iter(jax.random.split(key, 64))

    def dense(cin, cout, scale=0.1):
        return scale * jax.random.normal(next(keys), (cin, cout), dtype=jnp.float32)

    def bias(c):
        return 0.1 * jax.random.normal(next(keys), (c,), dtype=jnp.float32)

    p = {}
    dims = (EMB,) + MLP_UNITS
    for i in range(4):
        p[f"w1{i + 1}"] = dense(dims[i], dims[i + 1])
        p[f"b1{i + 1}"] = bias(dims[i + 1])
    dims = (MLP_OUT,) + MLP_UNITS
    for i in range(4):
        p[f"w4{i + 1}"] = dense(dims[i], dims[i + 1])
        p[f"b4{i + 1}"] = bias(dims[i + 1])

    p["sa_wc"] = dense(2, SA_MID)
    p["sa_wl"] = dense(MLP_OUT, SA_MID)
    p["sa_wg"] = dense(MLP_OUT, SA_MID)
    p["sa_b1"] = bias(SA_MID)
    p["sa_w2"] = dense(SA_MID, MLP_OUT)
    p["sa_b2"] = bias(MLP_OUT)

    p["att_wq"] = dense(MLP_OUT, MLP_OUT)
    p["att_wk"] = dense(MLP_OUT, MLP_OUT)
    p["att_wv"] = dense(MLP_OUT, MLP_OUT)
    p["att_bq"] = jnp.zeros((MLP_OUT,), jnp.float32)
    p["att_bk"] = jnp.zeros((MLP_OUT,), jnp.float32)
    p["att_bv"] = jnp.zeros((MLP_OUT,), jnp.float32)
    p["att_wo"] = dense(MLP_OUT, MLP_OUT)
    p["att_bo"] = jnp.zeros((MLP_OUT,), jnp.float32)

    p["head_w"] = dense(MLP_OUT, OUT)
    p["head_b"] = jnp.zeros((OUT,), jnp.float32)
    return p


def pack_params(p):
    """Pack all parameters into one bf16 weight slab and one f32 aux slab."""
    w = np.zeros((_W_ROWS, LANES), np.float32)
    a = np.zeros((_A_ROWS, LANES), np.float32)

    def put_w(name, mat):
        mat = np.asarray(mat, np.float32)
        off = _W_OFF[name]
        w[off:off + mat.shape[0], :mat.shape[1]] = mat

    def put_a(name, mat):
        mat = np.asarray(mat, np.float32)
        off = _A_OFF[name]
        a[off:off + mat.shape[0], :mat.shape[1]] = mat

    # MLP stacks: weight + aux rows [bias, gamma, beta] (LayerNorm affine = 1/0).
    for pre in ("1", "4"):
        for i in range(1, 5):
            wn, bn = f"w{pre}{i}", f"b{pre}{i}"
            cout = np.asarray(p[wn]).shape[1]
            put_w(wn, p[wn])
            put_a(f"a{pre}{i}", np.stack([np.asarray(p[bn], np.float32),
                                          np.ones((cout,), np.float32),
                                          np.zeros((cout,), np.float32)]))

    # Positional-embedding constants: pre = x*sx + y*sy; emb = id*pre + sc*sin(pre+phase)
    sx = np.zeros((EMB,), np.float32); sy = np.zeros((EMB,), np.float32)
    mid = np.zeros((EMB,), np.float32); msc = np.zeros((EMB,), np.float32)
    ph = np.zeros((EMB,), np.float32)
    sx[0] = 1.0; sy[1] = 1.0; mid[0] = 1.0; mid[1] = 1.0
    col = 2
    for kf in range(N_FREQS):
        f = float(2 ** kf)
        for is_cos in (0, 1):            # sin column, then cos column (= sin + pi/2)
            for c in range(2):           # x then y
                (sx if c == 0 else sy)[col] = f
                msc[col] = 1.0
                ph[col] = (np.pi / 2.0) if is_cos else 0.0
                col += 1
    assert col == EMB
    put_a("emb", np.stack([sx, sy, mid, msc, ph]))

    # Set abstraction (coordinate weight padded to CPAD rows with zeros).
    wc = np.zeros((CPAD, SA_MID), np.float32)
    wc[:2] = np.asarray(p["sa_wc"])
    put_w("sa_wc", wc)
    put_w("sa_wl", p["sa_wl"]); put_w("sa_wg", p["sa_wg"]); put_w("sa_w2", p["sa_w2"])
    put_a("sa_b1", np.asarray(p["sa_b1"])[None, :])
    put_a("sa_b2", np.asarray(p["sa_b2"])[None, :])

    # Attention q/k/v: (60,60) weights placed in (60,128) slots; padded lanes stay
    # exactly zero (required so the 128-lane q.k contraction is exact).
    for nm in ("q", "k", "v"):
        put_w(f"att_w{nm}", p[f"att_w{nm}"])
        put_a(f"att_b{nm}", np.asarray(p[f"att_b{nm}"])[None, :])

    # Fused head: out = x4 @ Wh + attn @ (Wo_pad @ Wh) + (bo @ Wh + bh)
    wh = np.asarray(p["head_w"], np.float32)                 # (60, OUT)
    wo_pad = np.zeros((DPAD, MLP_OUT), np.float32)
    wo_pad[:MLP_OUT] = np.asarray(p["att_wo"], np.float32)
    put_w("head_wx", wh)
    put_w("head_wa", wo_pad @ wh)
    hb = np.asarray(p["att_bo"], np.float32) @ wh + np.asarray(p["head_b"], np.float32)
    put_a("head_b", hb[None, :])

    return jnp.asarray(w, jnp.bfloat16), jnp.asarray(a, jnp.float32)


# ------------------------------------------------------------------------------
# Wrapper
# ------------------------------------------------------------------------------
def pointnetpp_dense_attention_forward(x, wslab, aslab):
    """Mirrors PointNetPlusPlus_dense_attention.forward(x), x: (B, N, input_dim)."""
    Bq, Nq, _ = x.shape
    assert Nq == N
    x_pose = x[..., :2].astype(jnp.float32)
    p_pad = jnp.pad(x_pose.reshape(Bq * Nq, 2), ((0, 0), (0, CPAD - 2)))

    bn = Bq * Nq
    mlp_flops = 2 * bn * (EMB * 20 + 20 * 40 + 40 * 80 + 80 * 60
                          + MLP_OUT * 20 + 20 * 40 + 40 * 80 + 80 * 60)
    sa_flops = (2 * bn * (CPAD * SA_MID + MLP_OUT * SA_MID)
                + 2 * Bq * MLP_OUT * SA_MID
                + 2 * Bq * Nq * Nq * (CPAD + SA_MID * MLP_OUT + MLP_OUT))
    att_flops = 2 * bn * (3 * MLP_OUT * DPAD + 2 * Nq * DPAD
                          + MLP_OUT * OUT_PAD + DPAD * OUT_PAD)
    cost = pl.CostEstimate(
        flops=int(mlp_flops + sa_flops + att_flops),
        transcendentals=int(bn * (EMB + 9) + Bq * Nq * Nq),
        bytes_accessed=int(wslab.size * 2 + aslab.size * 4
                           + p_pad.size * 4 + bn * OUT_PAD * 4))

    out = pl.pallas_call(
        _kernel,
        out_shape=jax.ShapeDtypeStruct((Bq * Nq, OUT_PAD), jnp.float32),
        grid=(Bq,),
        in_specs=[
            pl.BlockSpec((N, CPAD), lambda b: (b, 0)),          # per-cloud points
            pl.BlockSpec((_W_ROWS, LANES), lambda b: (0, 0)),   # resident bf16 weights
            pl.BlockSpec((_A_ROWS, LANES), lambda b: (0, 0)),   # resident f32 aux
        ],
        out_specs=pl.BlockSpec((N, OUT_PAD), lambda b: (b, 0)),
        compiler_params=pltpu.CompilerParams(
            dimension_semantics=("parallel",)),                  # 2 TCs on v7x
        cost_estimate=cost,
    )(p_pad, wslab, aslab)
    return out.reshape(Bq, Nq, OUT_PAD)[..., :OUT]


if __name__ == "__main__":
    key = jax.random.PRNGKey(0)
    pkey, xkey = jax.random.split(key)
    x = jax.random.normal(xkey, (B, N, INPUT_DIM), dtype=jnp.float32)
    params = init_params(pkey)
    wslab, aslab = pack_params(params)

    y = pointnetpp_dense_attention_forward(x, wslab, aslab)
    y = jax.block_until_ready(y)

    assert y.shape == (B, N, OUT), y.shape
    assert bool(jnp.all(jnp.isfinite(y)))
    print("KERNEL_OK")
</pallas_src>

<mosaic_0001>
module attributes {stable_mosaic.version = 11 : i64} {
  func.func @_kernel(%arg0: i32, %arg1: memref<16x8xf32, #tpu.memory_space<vmem>>, %arg2: memref<992x128xbf16, #tpu.memory_space<vmem>>, %arg3: memref<120x128xf32, #tpu.memory_space<vmem>>, %arg4: memref<16x128xf32, #tpu.memory_space<vmem>>) attributes {dimension_semantics = [#tpu.dimension_semantics<parallel>], iteration_bounds = array<i64: 2>, scalar_prefetch = 0 : i64, scratch_operands = 0 : i64, tpu.core_type = #tpu.core_type<tc>, window_params = [{transform_indices = @transform_0, window_bounds = array<i64: 16, 8>}, {pipeline_mode = #tpu.pipeline_mode<synchronous>, transform_indices = @transform_1, window_bounds = array<i64: 992, 128>}, {pipeline_mode = #tpu.pipeline_mode<synchronous>, transform_indices = @transform_2, window_bounds = array<i64: 120, 128>}, {transform_indices = @transform_3, window_bounds = array<i64: 16, 128>}]} {
    %c0 = arith.constant 0 : index
    %c0_0 = arith.constant 0 : index
    %0 = vector.load %arg1[%c0, %c0_0] : memref<16x8xf32, #tpu.memory_space<vmem>>, vector<16x8xf32>
    %c0_1 = arith.constant 0 : index
    %c0_2 = arith.constant 0 : index
    %1 = vector.load %arg3[%c0_1, %c0_2] : memref<120x128xf32, #tpu.memory_space<vmem>>, vector<5x42xf32>
    %2 = vector.extract_strided_slice %0 {offsets = [0, 0], sizes = [16, 1], strides = [1, 1]} : vector<16x8xf32> to vector<16x1xf32>
    %3 = vector.extract_strided_slice %1 {offsets = [0, 0], sizes = [1, 42], strides = [1, 1]} : vector<5x42xf32> to vector<1x42xf32>
    %4 = vector.broadcast %2 : vector<16x1xf32> to vector<16x42xf32>
    %5 = vector.broadcast %3 : vector<1x42xf32> to vector<16x42xf32>
    %6 = arith.mulf %4, %5 : vector<16x42xf32>
    %7 = vector.extract_strided_slice %0 {offsets = [0, 1], sizes = [16, 1], strides = [1, 1]} : vector<16x8xf32> to vector<16x1xf32>
    %8 = vector.extract_strided_slice %1 {offsets = [1, 0], sizes = [1, 42], strides = [1, 1]} : vector<5x42xf32> to vector<1x42xf32>
    %9 = vector.broadcast %7 : vector<16x1xf32> to vector<16x42xf32>
    %10 = vector.broadcast %8 : vector<1x42xf32> to vector<16x42xf32>
    %11 = arith.mulf %9, %10 : vector<16x42xf32>
    %12 = arith.addf %6, %11 : vector<16x42xf32>
    %13 = vector.extract_strided_slice %1 {offsets = [2, 0], sizes = [1, 42], strides = [1, 1]} : vector<5x42xf32> to vector<1x42xf32>
    %14 = vector.broadcast %13 : vector<1x42xf32> to vector<16x42xf32>
    %15 = arith.mulf %14, %12 : vector<16x42xf32>
    %16 = vector.extract_strided_slice %1 {offsets = [3, 0], sizes = [1, 42], strides = [1, 1]} : vector<5x42xf32> to vector<1x42xf32>
    %17 = vector.extract_strided_slice %1 {offsets = [4, 0], sizes = [1, 42], strides = [1, 1]} : vector<5x42xf32> to vector<1x42xf32>
    %18 = vector.broadcast %17 : vector<1x42xf32> to vector<16x42xf32>
    %19 = arith.addf %12, %18 : vector<16x42xf32>
    %20 = math.sin %19 : vector<16x42xf32>
    %21 = vector.broadcast %16 : vector<1x42xf32> to vector<16x42xf32>
    %22 = arith.mulf %21, %20 : vector<16x42xf32>
    %23 = arith.addf %15, %22 : vector<16x42xf32>
    %c8 = arith.constant 8 : index
    %c0_3 = arith.constant 0 : index
    %24 = vector.load %arg3[%c8, %c0_3] : memref<120x128xf32, #tpu.memory_space<vmem>>, vector<3x20xf32>
    %25 = arith.truncf %23 : vector<16x42xf32> to vector<16x42xbf16>
    %c0_4 = arith.constant 0 : index
    %c0_5 = arith.constant 0 : index
    %26 = vector.load %arg2[%c0_4, %c0_5] : memref<992x128xbf16, #tpu.memory_space<vmem>>, vector<42x20xbf16>
    %cst = arith.constant dense<0.000000e+00> : vector<16x20xf32>
    %27 = tpu.matmul %25, %26, %cst {dimension_numbers = #tpu.dot_dimension_numbers<[1], [0], [0], [1], [0, 0, 1, 1], [], []>} : vector<16x42xbf16>, vector<42x20xbf16>, vector<16x20xf32> -> vector<16x20xf32>
    %28 = vector.extract_strided_slice %24 {offsets = [0, 0], sizes = [1, 20], strides = [1, 1]} : vector<3x20xf32> to vector<1x20xf32>
    %29 = vector.broadcast %28 : vector<1x20xf32> to vector<16x20xf32>
    %30 = arith.addf %27, %29 : vector<16x20xf32>
    %cst_6 = arith.constant dense<0.000000e+00> : vector<16xf32>
    %31 = vector.multi_reduction <add>, %30, %cst_6 [1] : vector<16x20xf32> to vector<16xf32>
    %32 = vector.shape_cast %31 : vector<16xf32> to vector<16x1xf32>
    %cst_7 = arith.constant 2.000000e+01 : f32
    %33 = vector.broadcast %cst_7 : f32 to vector<16x1xf32>
    %34 = arith.divf %32, %33 : vector<16x1xf32>
    %35 = arith.mulf %30, %30 : vector<16x20xf32>
    %cst_8 = arith.constant dense<0.000000e+00> : vector<16xf32>
    %36 = vector.multi_reduction <add>, %35, %cst_8 [1] : vector<16x20xf32> to vector<16xf32>
    %37 = vector.shape_cast %36 : vector<16xf32> to vector<16x1xf32>
    %cst_9 = arith.constant 2.000000e+01 : f32
    %38 = vector.broadcast %cst_9 : f32 to vector<16x1xf32>
    %39 = arith.divf %37, %38 : vector<16x1xf32>
    %40 = arith.mulf %34, %34 : vector<16x1xf32>
    %41 = arith.subf %39, %40 : vector<16x1xf32>
    %42 = vector.broadcast %34 : vector<16x1xf32> to vector<16x20xf32>
    %43 = arith.subf %30, %42 : vector<16x20xf32>
    %cst_10 = arith.constant 9.99999974E-6 : f32
    %44 = vector.broadcast %cst_10 : f32 to vector<16x1xf32>
    %45 = arith.addf %41, %44 : vector<16x1xf32>
    %46 = math.rsqrt %45 : vector<16x1xf32>
    %47 = vector.broadcast %46 : vector<16x1xf32> to vector<16x20xf32>
    %48 = arith.mulf %43, %47 : vector<16x20xf32>
    %49 = vector.extract_strided_slice %24 {offsets = [1, 0], sizes = [1, 20], strides = [1, 1]} : vector<3x20xf32> to vector<1x20xf32>
    %50 = vector.broadcast %49 : vector<1x20xf32> to vector<16x20xf32>
    %51 = arith.mulf %48, %50 : vector<16x20xf32>
    %52 = vector.extract_strided_slice %24 {offsets = [2, 0], sizes = [1, 20], strides = [1, 1]} : vector<3x20xf32> to vector<1x20xf32>
    %53 = vector.broadcast %52 : vector<1x20xf32> to vector<16x20xf32>
    %54 = arith.addf %51, %53 : vector<16x20xf32>
    %cst_11 = arith.constant 0.000000e+00 : f32
    %55 = vector.broadcast %cst_11 : f32 to vector<16x20xf32>
    %56 = arith.maximumf %54, %55 : vector<16x20xf32>
    %c16 = arith.constant 16 : index
    %c0_12 = arith.constant 0 : index
    %57 = vector.load %arg3[%c16, %c0_12] : memref<120x128xf32, #tpu.memory_space<vmem>>, vector<3x40xf32>
    %58 = arith.truncf %56 : vector<16x20xf32> to vector<16x20xbf16>
    %c48 = arith.constant 48 : index
    %c0_13 = arith.constant 0 : index
    %59 = vector.load %arg2[%c48, %c0_13] : memref<992x128xbf16, #tpu.memory_space<vmem>>, vector<20x40xbf16>
    %cst_14 = arith.constant dense<0.000000e+00> : vector<16x40xf32>
    %60 = tpu.matmul %58, %59, %cst_14 {dimension_numbers = #tpu.dot_dimension_numbers<[1], [0], [0], [1], [0, 0, 1, 1], [], []>} : vector<16x20xbf16>, vector<20x40xbf16>, vector<16x40xf32> -> vector<16x40xf32>
    %61 = vector.extract_strided_slice %57 {offsets = [0, 0], sizes = [1, 40], strides = [1, 1]} : vector<3x40xf32> to vector<1x40xf32>
    %62 = vector.broadcast %61 : vector<1x40xf32> to vector<16x40xf32>
    %63 = arith.addf %60, %62 : vector<16x40xf32>
    %cst_15 = arith.constant dense<0.000000e+00> : vector<16xf32>
    %64 = vector.multi_reduction <add>, %63, %cst_15 [1] : vector<16x40xf32> to vector<16xf32>
    %65 = vector.shape_cast %64 : vector<16xf32> to vector<16x1xf32>
    %cst_16 = arith.constant 4.000000e+01 : f32
    %66 = vector.broadcast %cst_16 : f32 to vector<16x1xf32>
    %67 = arith.divf %65, %66 : vector<16x1xf32>
    %68 = arith.mulf %63, %63 : vector<16x40xf32>
    %cst_17 = arith.constant dense<0.000000e+00> : vector<16xf32>
    %69 = vector.multi_reduction <add>, %68, %cst_17 [1] : vector<16x40xf32> to vector<16xf32>
    %70 = vector.shape_cast %69 : vector<16xf32> to vector<16x1xf32>
    %cst_18 = arith.constant 4.000000e+01 : f32
    %71 = vector.broadcast %cst_18 : f32 to vector<16x1xf32>
    %72 = arith.divf %70, %71 : vector<16x1xf32>
    %73 = arith.mulf %67, %67 : vector<16x1xf32>
    %74 = arith.subf %72, %73 : vector<16x1xf32>
    %75 = vector.broadcast %67 : vector<16x1xf32> to vector<16x40xf32>
    %76 = arith.subf %63, %75 : vector<16x40xf32>
    %cst_19 = arith.constant 9.99999974E-6 : f32
    %77 = vector.broadcast %cst_19 : f32 to vector<16x1xf32>
    %78 = arith.addf %74, %77 : vector<16x1xf32>
    %79 = math.rsqrt %78 : vector<16x1xf32>
    %80 = vector.broadcast %79 : vector<16x1xf32> to vector<16x40xf32>
    %81 = arith.mulf %76, %80 : vector<16x40xf32>
    %82 = vector.extract_strided_slice %57 {offsets = [1, 0], sizes = [1, 40], strides = [1, 1]} : vector<3x40xf32> to vector<1x40xf32>
    %83 = vector.broadcast %82 : vector<1x40xf32> to vector<16x40xf32>
    %84 = arith.mulf %81, %83 : vector<16x40xf32>
    %85 = vector.extract_strided_slice %57 {offsets = [2, 0], sizes = [1, 40], strides = [1, 1]} : vector<3x40xf32> to vector<1x40xf32>
    %86 = vector.broadcast %85 : vector<1x40xf32> to vector<16x40xf32>
    %87 = arith.addf %84, %86 : vector<16x40xf32>
    %cst_20 = arith.constant 0.000000e+00 : f32
    %88 = vector.broadcast %cst_20 : f32 to vector<16x40xf32>
    %89 = arith.maximumf %87, %88 : vector<16x40xf32>
    %c24 = arith.constant 24 : index
    %c0_21 = arith.constant 0 : index
    %90 = vector.load %arg3[%c24, %c0_21] : memref<120x128xf32, #tpu.memory_space<vmem>>, vector<3x80xf32>
    %91 = arith.truncf %89 : vector<16x40xf32> to vector<16x40xbf16>
    %c80 = arith.constant 80 : index
    %c0_22 = arith.constant 0 : index
    %92 = vector.load %arg2[%c80, %c0_22] : memref<992x128xbf16, #tpu.memory_space<vmem>>, vector<40x80xbf16>
    %cst_23 = arith.constant dense<0.000000e+00> : vector<16x80xf32>
    %93 = tpu.matmul %91, %92, %cst_23 {dimension_numbers = #tpu.dot_dimension_numbers<[1], [0], [0], [1], [0, 0, 1, 1], [], []>} : vector<16x40xbf16>, vector<40x80xbf16>, vector<16x80xf32> -> vector<16x80xf32>
    %94 = vector.extract_strided_slice %90 {offsets = [0, 0], sizes = [1, 80], strides = [1, 1]} : vector<3x80xf32> to vector<1x80xf32>
    %95 = vector.broadcast %94 : vector<1x80xf32> to vector<16x80xf32>
    %96 = arith.addf %93, %95 : vector<16x80xf32>
    %cst_24 = arith.constant dense<0.000000e+00> : vector<16xf32>
    %97 = vector.multi_reduction <add>, %96, %cst_24 [1] : vector<16x80xf32> to vector<16xf32>
    %98 = vector.shape_cast %97 : vector<16xf32> to vector<16x1xf32>
    %cst_25 = arith.constant 8.000000e+01 : f32
    %99 = vector.broadcast %cst_25 : f32 to vector<16x1xf32>
    %100 = arith.divf %98, %99 : vector<16x1xf32>
    %101 = arith.mulf %96, %96 : vector<16x80xf32>
    %cst_26 = arith.constant dense<0.000000e+00> : vector<16xf32>
    %102 = vector.multi_reduction <add>, %101, %cst_26 [1] : vector<16x80xf32> to vector<16xf32>
    %103 = vector.shape_cast %102 : vector<16xf32> to vector<16x1xf32>
    %cst_27 = arith.constant 8.000000e+01 : f32
    %104 = vector.broadcast %cst_27 : f32 to vector<16x1xf32>
    %105 = arith.divf %103, %104 : vector<16x1xf32>
    %106 = arith.mulf %100, %100 : vector<16x1xf32>
    %107 = arith.subf %105, %106 : vector<16x1xf32>
    %108 = vector.broadcast %100 : vector<16x1xf32> to vector<16x80xf32>
    %109 = arith.subf %96, %108 : vector<16x80xf32>
    %cst_28 = arith.constant 9.99999974E-6 : f32
    %110 = vector.broadcast %cst_28 : f32 to vector<16x1xf32>
    %111 = arith.addf %107, %110 : vector<16x1xf32>
    %112 = math.rsqrt %111 : vector<16x1xf32>
    %113 = vector.broadcast %112 : vector<16x1xf32> to vector<16x80xf32>
    %114 = arith.mulf %109, %113 : vector<16x80xf32>
    %115 = vector.extract_strided_slice %90 {offsets = [1, 0], sizes = [1, 80], strides = [1, 1]} : vector<3x80xf32> to vector<1x80xf32>
    %116 = vector.broadcast %115 : vector<1x80xf32> to vector<16x80xf32>
    %117 = arith.mulf %114, %116 : vector<16x80xf32>
    %118 = vector.extract_strided_slice %90 {offsets = [2, 0], sizes = [1, 80], strides = [1, 1]} : vector<3x80xf32> to vector<1x80xf32>
    %119 = vector.broadcast %118 : vector<1x80xf32> to vector<16x80xf32>
    %120 = arith.addf %117, %119 : vector<16x80xf32>
    %cst_29 = arith.constant 0.000000e+00 : f32
    %121 = vector.broadcast %cst_29 : f32 to vector<16x80xf32>
    %122 = arith.maximumf %120, %121 : vector<16x80xf32>
    %c32 = arith.constant 32 : index
    %c0_30 = arith.constant 0 : index
    %123 = vector.load %arg3[%c32, %c0_30] : memref<120x128xf32, #tpu.memory_space<vmem>>, vector<3x60xf32>
    %124 = arith.truncf %122 : vector<16x80xf32> to vector<16x80xbf16>
    %c128 = arith.constant 128 : index
    %c0_31 = arith.constant 0 : index
    %125 = vector.load %arg2[%c128, %c0_31] : memref<992x128xbf16, #tpu.memory_space<vmem>>, vector<80x60xbf16>
    %cst_32 = arith.constant dense<0.000000e+00> : vector<16x60xf32>
    %126 = tpu.matmul %124, %125, %cst_32 {dimension_numbers = #tpu.dot_dimension_numbers<[1], [0], [0], [1], [0, 0, 1, 1], [], []>} : vector<16x80xbf16>, vector<80x60xbf16>, vector<16x60xf32> -> vector<16x60xf32>
    %127 = vector.extract_strided_slice %123 {offsets = [0, 0], sizes = [1, 60], strides = [1, 1]} : vector<3x60xf32> to vector<1x60xf32>
    %128 = vector.broadcast %127 : vector<1x60xf32> to vector<16x60xf32>
    %129 = arith.addf %126, %128 : vector<16x60xf32>
    %cst_33 = arith.constant dense<0.000000e+00> : vector<16xf32>
    %130 = vector.multi_reduction <add>, %129, %cst_33 [1] : vector<16x60xf32> to vector<16xf32>
    %131 = vector.shape_cast %130 : vector<16xf32> to vector<16x1xf32>
    %cst_34 = arith.constant 6.000000e+01 : f32
    %132 = vector.broadcast %cst_34 : f32 to vector<16x1xf32>
    %133 = arith.divf %131, %132 : vector<16x1xf32>
    %134 = arith.mulf %129, %129 : vector<16x60xf32>
    %cst_35 = arith.constant dense<0.000000e+00> : vector<16xf32>
    %135 = vector.multi_reduction <add>, %134, %cst_35 [1] : vector<16x60xf32> to vector<16xf32>
    %136 = vector.shape_cast %135 : vector<16xf32> to vector<16x1xf32>
    %cst_36 = arith.constant 6.000000e+01 : f32
    %137 = vector.broadcast %cst_36 : f32 to vector<16x1xf32>
    %138 = arith.divf %136, %137 : vector<16x1xf32>
    %139 = arith.mulf %133, %133 : vector<16x1xf32>
    %140 = arith.subf %138, %139 : vector<16x1xf32>
    %141 = vector.broadcast %133 : vector<16x1xf32> to vector<16x60xf32>
    %142 = arith.subf %129, %141 : vector<16x60xf32>
    %cst_37 = arith.constant 9.99999974E-6 : f32
    %143 = vector.broadcast %cst_37 : f32 to vector<16x1xf32>
    %144 = arith.addf %140, %143 : vector<16x1xf32>
    %145 = math.rsqrt %144 : vector<16x1xf32>
    %146 = vector.broadcast %145 : vector<16x1xf32> to vector<16x60xf32>
    %147 = arith.mulf %142, %146 : vector<16x60xf32>
    %148 = vector.extract_strided_slice %123 {offsets = [1, 0], sizes = [1, 60], strides = [1, 1]} : vector<3x60xf32> to vector<1x60xf32>
    %149 = vector.broadcast %148 : vector<1x60xf32> to vector<16x60xf32>
    %150 = arith.mulf %147, %149 : vector<16x60xf32>
    %151 = vector.extract_strided_slice %123 {offsets = [2, 0], sizes = [1, 60], strides = [1, 1]} : vector<3x60xf32> to vector<1x60xf32>
    %152 = vector.broadcast %151 : vector<1x60xf32> to vector<16x60xf32>
    %153 = arith.addf %150, %152 : vector<16x60xf32>
    %cst_38 = arith.constant 0.000000e+00 : f32
    %154 = vector.broadcast %cst_38 : f32 to vector<16x60xf32>
    %155 = arith.maximumf %153, %154 : vector<16x60xf32>
    %cst_39 = arith.constant dense<0xFF800000> : vector<60xf32>
    %156 = vector.multi_reduction <maximumf>, %155, %cst_39 [0] : vector<16x60xf32> to vector<60xf32>
    %157 = vector.shape_cast %156 : vector<60xf32> to vector<1x60xf32>
    "tpu.trace_start"() <{level = 10 : i32, message = "ic,jc->ij"}> : () -> ()
    %cst_40 = arith.constant dense<0.000000e+00> : vector<16x16xf32>
    %158 = tpu.matmul %0, %0, %cst_40 {dimension_numbers = #tpu.dot_dimension_numbers<[1], [1], [0], [0], [0, 0, 1, 0], [], []>} : vector<16x8xf32>, vector<16x8xf32>, vector<16x16xf32> -> vector<16x16xf32>
    "tpu.trace_stop"() : () -> ()
    %159 = tpu.iota {dimensions = array<i32: 0>} : vector<16x16xi32>
    %160 = tpu.iota {dimensions = array<i32: 1>} : vector<16x16xi32>
    %161 = arith.cmpi eq, %159, %160 : vector<16x16xi32>
    %162 = arith.extui %161 : vector<16x16xi1> to vector<16x16xi32>
    %163 = arith.sitofp %162 : vector<16x16xi32> to vector<16x16xf32>
    %164 = arith.mulf %158, %163 : vector<16x16xf32>
    %cst_41 = arith.constant dense<0.000000e+00> : vector<16xf32>
    %165 = vector.multi_reduction <add>, %164, %cst_41 [1] : vector<16x16xf32> to vector<16xf32>
    %166 = vector.shape_cast %165 : vector<16xf32> to vector<16x1xf32>
    %cst_42 = arith.constant dense<0.000000e+00> : vector<16xf32>
    %167 = vector.multi_reduction <add>, %164, %cst_42 [0] : vector<16x16xf32> to vector<16xf32>
    %168 = vector.shape_cast %167 : vector<16xf32> to vector<1x16xf32>
    %169 = vector.broadcast %166 : vector<16x1xf32> to vector<16x16xf32>
    %170 = vector.broadcast %168 : vector<1x16xf32> to vector<16x16xf32>
    %171 = arith.addf %169, %170 : vector<16x16xf32>
    %cst_43 = arith.constant 2.000000e+00 : f32
    %172 = vector.broadcast %cst_43 : f32 to vector<16x16xf32>
    %173 = arith.mulf %172, %158 : vector<16x16xf32>
    %174 = arith.subf %171, %173 : vector<16x16xf32>
    %cst_44 = arith.constant 1.000000e+00 : f32
    %175 = vector.broadcast %cst_44 : f32 to vector<16x16xf32>
    %176 = arith.cmpf ole, %174, %175 : vector<16x16xf32>
    %177 = arith.cmpi slt, %159, %160 : vector<16x16xi32>
    %178 = arith.extui %177 : vector<16x16xi1> to vector<16x16xi32>
    %179 = arith.sitofp %178 : vector<16x16xi32> to vector<16x16xf32>
    %180 = arith.truncf %179 : vector<16x16xf32> to vector<16x16xbf16>
    %181 = arith.extui %176 : vector<16x16xi1> to vector<16x16xi32>
    %182 = arith.sitofp %181 : vector<16x16xi32> to vector<16x16xf32>
    %183 = arith.truncf %182 : vector<16x16xf32> to vector<16x16xbf16>
    %cst_45 = arith.constant dense<0.000000e+00> : vector<16x16xf32>
    %184 = tpu.matmul %183, %180, %cst_45 {dimension_numbers = #tpu.dot_dimension_numbers<[1], [0], [0], [1], [0, 0, 1, 1], [], []>} : vector<16x16xbf16>, vector<16x16xbf16>, vector<16x16xf32> -> vector<16x16xf32>
    %cst_46 = arith.constant 4.000000e+00 : f32
    %185 = vector.broadcast %cst_46 : f32 to vector<16x16xf32>
    %186 = arith.cmpf olt, %184, %185 : vector<16x16xf32>
    %187 = arith.andi %176, %186 : vector<16x16xi1>
    %188 = arith.extui %187 : vector<16x16xi1> to vector<16x16xi32>
    %189 = arith.sitofp %188 : vector<16x16xi32> to vector<16x16xf32>
    %190 = arith.truncf %0 : vector<16x8xf32> to vector<16x8xbf16>
    %c208 = arith.constant 208 : index
    %c0_47 = arith.constant 0 : index
    %191 = vector.load %arg2[%c208, %c0_47] : memref<992x128xbf16, #tpu.memory_space<vmem>>, vector<8x30xbf16>
    %cst_48 = arith.constant dense<0.000000e+00> : vector<16x30xf32>
    %192 = tpu.matmul %190, %191, %cst_48 {dimension_numbers = #tpu.dot_dimension_numbers<[1], [0], [0], [1], [0, 0, 1, 1], [], []>} : vector<16x8xbf16>, vector<8x30xbf16>, vector<16x30xf32> -> vector<16x30xf32>
    %193 = arith.truncf %155 : vector<16x60xf32> to vector<16x60xbf16>
    %c224 = arith.constant 224 : index
    %c0_49 = arith.constant 0 : index
    %194 = vector.load %arg2[%c224, %c0_49] : memref<992x128xbf16, #tpu.memory_space<vmem>>, vector<60x30xbf16>
    %cst_50 = arith.constant dense<0.000000e+00> : vector<16x30xf32>
    %195 = tpu.matmul %193, %194, %cst_50 {dimension_numbers = #tpu.dot_dimension_numbers<[1], [0], [0], [1], [0, 0, 1, 1], [], []>} : vector<16x60xbf16>, vector<60x30xbf16>, vector<16x30xf32> -> vector<16x30xf32>
    %196 = arith.addf %192, %195 : vector<16x30xf32>
    %197 = arith.truncf %157 : vector<1x60xf32> to vector<1x60xbf16>
    %c288 = arith.constant 288 : index
    %c0_51 = arith.constant 0 : index
    %198 = vector.load %arg2[%c288, %c0_51] : memref<992x128xbf16, #tpu.memory_space<vmem>>, vector<60x30xbf16>
    %cst_52 = arith.constant dense<0.000000e+00> : vector<1x30xf32>
    %199 = tpu.matmul %197, %198, %cst_52 {dimension_numbers = #tpu.dot_dimension_numbers<[1], [0], [0], [1], [0, 0, 1, 1], [], []>} : vector<1x60xbf16>, vector<60x30xbf16>, vector<1x30xf32> -> vector<1x30xf32>
    %c40 = arith.constant 40 : index
    %c0_53 = arith.constant 0 : index
    %200 = vector.load %arg3[%c40, %c0_53] : memref<120x128xf32, #tpu.memory_space<vmem>>, vector<1x30xf32>
    %201 = arith.addf %199, %200 : vector<1x30xf32>
    %202 = vector.broadcast %201 : vector<1x30xf32> to vector<16x30xf32>
    %203 = arith.addf %196, %202 : vector<16x30xf32>
    %204 = vector.shape_cast %203 : vector<16x30xf32> to vector<1x16x30xf32>
    %205 = vector.shape_cast %192 : vector<16x30xf32> to vector<16x1x30xf32>
    %206 = vector.broadcast %204 : vector<1x16x30xf32> to vector<16x16x30xf32>
    %207 = vector.broadcast %205 : vector<16x1x30xf32> to vector<16x16x30xf32>
    %208 = arith.subf %206, %207 : vector<16x16x30xf32>
    %cst_54 = arith.constant 0.000000e+00 : f32
    %209 = vector.broadcast %cst_54 : f32 to vector<16x16x30xf32>
    %210 = arith.maximumf %208, %209 : vector<16x16x30xf32>
    %211 = vector.shape_cast %210 : vector<16x16x30xf32> to vector<256x30xf32>
    %212 = arith.truncf %211 : vector<256x30xf32> to vector<256x30xbf16>
    %c352 = arith.constant 352 : index
    %c0_55 = arith.constant 0 : index
    %213 = vector.load %arg2[%c352, %c0_55] : memref<992x128xbf16, #tpu.memory_space<vmem>>, vector<30x60xbf16>
    %cst_56 = arith.constant dense<0.000000e+00> : vector<256x60xf32>
    %214 = tpu.matmul %212, %213, %cst_56 {dimension_numbers = #tpu.dot_dimension_numbers<[1], [0], [0], [1], [0, 0, 1, 1], [], []>} : vector<256x30xbf16>, vector<30x60xbf16>, vector<256x60xf32> -> vector<256x60xf32>
    %c48_57 = arith.constant 48 : index
    %c0_58 = arith.constant 0 : index
    %215 = vector.load %arg3[%c48_57, %c0_58] : memref<120x128xf32, #tpu.memory_space<vmem>>, vector<1x60xf32>
    %216 = vector.broadcast %215 : vector<1x60xf32> to vector<256x60xf32>
    %217 = arith.addf %214, %216 : vector<256x60xf32>
    %cst_59 = arith.constant 0.000000e+00 : f32
    %218 = vector.broadcast %cst_59 : f32 to vector<256x60xf32>
    %219 = arith.maximumf %217, %218 : vector<256x60xf32>
    %220 = vector.shape_cast %219 : vector<256x60xf32> to vector<16x16x60xf32>
    %221 = vector.shape_cast %189 : vector<16x16xf32> to vector<16x16x1xf32>
    %222 = vector.broadcast %221 : vector<16x16x1xf32> to vector<16x16x60xf32>
    %223 = arith.mulf %220, %222 : vector<16x16x60xf32>
    %cst_60 = arith.constant dense<0xFF800000> : vector<16x60xf32>
    %224 = vector.multi_reduction <maximumf>, %223, %cst_60 [1] : vector<16x16x60xf32> to vector<16x60xf32>
    %c56 = arith.constant 56 : index
    %c0_61 = arith.constant 0 : index
    %225 = vector.load %arg3[%c56, %c0_61] : memref<120x128xf32, #tpu.memory_space<vmem>>, vector<3x20xf32>
    %226 = arith.truncf %224 : vector<16x60xf32> to vector<16x60xbf16>
    %c384 = arith.constant 384 : index
    %c0_62 = arith.constant 0 : index
    %227 = vector.load %arg2[%c384, %c0_62] : memref<992x128xbf16, #tpu.memory_space<vmem>>, vector<60x20xbf16>
    %cst_63 = arith.constant dense<0.000000e+00> : vector<16x20xf32>
    %228 = tpu.matmul %226, %227, %cst_63 {dimension_numbers = #tpu.dot_dimension_numbers<[1], [0], [0], [1], [0, 0, 1, 1], [], []>} : vector<16x60xbf16>, vector<60x20xbf16>, vector<16x20xf32> -> vector<16x20xf32>
    %229 = vector.extract_strided_slice %225 {offsets = [0, 0], sizes = [1, 20], strides = [1, 1]} : vector<3x20xf32> to vector<1x20xf32>
    %230 = vector.broadcast %229 : vector<1x20xf32> to vector<16x20xf32>
    %231 = arith.addf %228, %230 : vector<16x20xf32>
    %cst_64 = arith.constant dense<0.000000e+00> : vector<16xf32>
    %232 = vector.multi_reduction <add>, %231, %cst_64 [1] : vector<16x20xf32> to vector<16xf32>
    %233 = vector.shape_cast %232 : vector<16xf32> to vector<16x1xf32>
    %cst_65 = arith.constant 2.000000e+01 : f32
    %234 = vector.broadcast %cst_65 : f32 to vector<16x1xf32>
    %235 = arith.divf %233, %234 : vector<16x1xf32>
    %236 = arith.mulf %231, %231 : vector<16x20xf32>
    %cst_66 = arith.constant dense<0.000000e+00> : vector<16xf32>
    %237 = vector.multi_reduction <add>, %236, %cst_66 [1] : vector<16x20xf32> to vector<16xf32>
    %238 = vector.shape_cast %237 : vector<16xf32> to vector<16x1xf32>
    %cst_67 = arith.constant 2.000000e+01 : f32
    %239 = vector.broadcast %cst_67 : f32 to vector<16x1xf32>
    %240 = arith.divf %238, %239 : vector<16x1xf32>
    %241 = arith.mulf %235, %235 : vector<16x1xf32>
    %242 = arith.subf %240, %241 : vector<16x1xf32>
    %243 = vector.broadcast %235 : vector<16x1xf32> to vector<16x20xf32>
    %244 = arith.subf %231, %243 : vector<16x20xf32>
    %cst_68 = arith.constant 9.99999974E-6 : f32
    %245 = vector.broadcast %cst_68 : f32 to vector<16x1xf32>
    %246 = arith.addf %242, %245 : vector<16x1xf32>
    %247 = math.rsqrt %246 : vector<16x1xf32>
    %248 = vector.broadcast %247 : vector<16x1xf32> to vector<16x20xf32>
    %249 = arith.mulf %244, %248 : vector<16x20xf32>
    %250 = vector.extract_strided_slice %225 {offsets = [1, 0], sizes = [1, 20], strides = [1, 1]} : vector<3x20xf32> to vector<1x20xf32>
    %251 = vector.broadcast %250 : vector<1x20xf32> to vector<16x20xf32>
    %252 = arith.mulf %249, %251 : vector<16x20xf32>
    %253 = vector.extract_strided_slice %225 {offsets = [2, 0], sizes = [1, 20], strides = [1, 1]} : vector<3x20xf32> to vector<1x20xf32>
    %254 = vector.broadcast %253 : vector<1x20xf32> to vector<16x20xf32>
    %255 = arith.addf %252, %254 : vector<16x20xf32>
    %cst_69 = arith.constant 0.000000e+00 : f32
    %256 = vector.broadcast %cst_69 : f32 to vector<16x20xf32>
    %257 = arith.maximumf %255, %256 : vector<16x20xf32>
    %c64 = arith.constant 64 : index
    %c0_70 = arith.constant 0 : index
    %258 = vector.load %arg3[%c64, %c0_70] : memref<120x128xf32, #tpu.memory_space<vmem>>, vector<3x40xf32>
    %259 = arith.truncf %257 : vector<16x20xf32> to vector<16x20xbf16>
    %c448 = arith.constant 448 : index
    %c0_71 = arith.constant 0 : index
    %260 = vector.load %arg2[%c448, %c0_71] : memref<992x128xbf16, #tpu.memory_space<vmem>>, vector<20x40xbf16>
    %cst_72 = arith.constant dense<0.000000e+00> : vector<16x40xf32>
    %261 = tpu.matmul %259, %260, %cst_72 {dimension_numbers = #tpu.dot_dimension_numbers<[1], [0], [0], [1], [0, 0, 1, 1], [], []>} : vector<16x20xbf16>, vector<20x40xbf16>, vector<16x40xf32> -> vector<16x40xf32>
    %262 = vector.extract_strided_slice %258 {offsets = [0, 0], sizes = [1, 40], strides = [1, 1]} : vector<3x40xf32> to vector<1x40xf32>
    %263 = vector.broadcast %262 : vector<1x40xf32> to vector<16x40xf32>
    %264 = arith.addf %261, %263 : vector<16x40xf32>
    %cst_73 = arith.constant dense<0.000000e+00> : vector<16xf32>
    %265 = vector.multi_reduction <add>, %264, %cst_73 [1] : vector<16x40xf32> to vector<16xf32>
    %266 = vector.shape_cast %265 : vector<16xf32> to vector<16x1xf32>
    %cst_74 = arith.constant 4.000000e+01 : f32
    %267 = vector.broadcast %cst_74 : f32 to vector<16x1xf32>
    %268 = arith.divf %266, %267 : vector<16x1xf32>
    %269 = arith.mulf %264, %264 : vector<16x40xf32>
    %cst_75 = arith.constant dense<0.000000e+00> : vector<16xf32>
    %270 = vector.multi_reduction <add>, %269, %cst_75 [1] : vector<16x40xf32> to vector<16xf32>
    %271 = vector.shape_cast %270 : vector<16xf32> to vector<16x1xf32>
    %cst_76 = arith.constant 4.000000e+01 : f32
    %272 = vector.broadcast %cst_76 : f32 to vector<16x1xf32>
    %273 = arith.divf %271, %272 : vector<16x1xf32>
    %274 = arith.mulf %268, %268 : vector<16x1xf32>
    %275 = arith.subf %273, %274 : vector<16x1xf32>
    %276 = vector.broadcast %268 : vector<16x1xf32> to vector<16x40xf32>
    %277 = arith.subf %264, %276 : vector<16x40xf32>
    %cst_77 = arith.constant 9.99999974E-6 : f32
    %278 = vector.broadcast %cst_77 : f32 to vector<16x1xf32>
    %279 = arith.addf %275, %278 : vector<16x1xf32>
    %280 = math.rsqrt %279 : vector<16x1xf32>
    %281 = vector.broadcast %280 : vector<16x1xf32> to vector<16x40xf32>
    %282 = arith.mulf %277, %281 : vector<16x40xf32>
    %283 = vector.extract_strided_slice %258 {offsets = [1, 0], sizes = [1, 40], strides = [1, 1]} : vector<3x40xf32> to vector<1x40xf32>
    %284 = vector.broadcast %283 : vector<1x40xf32> to vector<16x40xf32>
    %285 = arith.mulf %282, %284 : vector<16x40xf32>
    %286 = vector.extract_strided_slice %258 {offsets = [2, 0], sizes = [1, 40], strides = [1, 1]} : vector<3x40xf32> to vector<1x40xf32>
    %287 = vector.broadcast %286 : vector<1x40xf32> to vector<16x40xf32>
    %288 = arith.addf %285, %287 : vector<16x40xf32>
    %cst_78 = arith.constant 0.000000e+00 : f32
    %289 = vector.broadcast %cst_78 : f32 to vector<16x40xf32>
    %290 = arith.maximumf %288, %289 : vector<16x40xf32>
    %c72 = arith.constant 72 : index
    %c0_79 = arith.constant 0 : index
    %291 = vector.load %arg3[%c72, %c0_79] : memref<120x128xf32, #tpu.memory_space<vmem>>, vector<3x80xf32>
    %292 = arith.truncf %290 : vector<16x40xf32> to vector<16x40xbf16>
    %c480 = arith.constant 480 : index
    %c0_80 = arith.constant 0 : index
    %293 = vector.load %arg2[%c480, %c0_80] : memref<992x128xbf16, #tpu.memory_space<vmem>>, vector<40x80xbf16>
    %cst_81 = arith.constant dense<0.000000e+00> : vector<16x80xf32>
    %294 = tpu.matmul %292, %293, %cst_81 {dimension_numbers = #tpu.dot_dimension_numbers<[1], [0], [0], [1], [0, 0, 1, 1], [], []>} : vector<16x40xbf16>, vector<40x80xbf16>, vector<16x80xf32> -> vector<16x80xf32>
    %295 = vector.extract_strided_slice %291 {offsets = [0, 0], sizes = [1, 80], strides = [1, 1]} : vector<3x80xf32> to vector<1x80xf32>
    %296 = vector.broadcast %295 : vector<1x80xf32> to vector<16x80xf32>
    %297 = arith.addf %294, %296 : vector<16x80xf32>
    %cst_82 = arith.constant dense<0.000000e+00> : vector<16xf32>
    %298 = vector.multi_reduction <add>, %297, %cst_82 [1] : vector<16x80xf32> to vector<16xf32>
    %299 = vector.shape_cast %298 : vector<16xf32> to vector<16x1xf32>
    %cst_83 = arith.constant 8.000000e+01 : f32
    %300 = vector.broadcast %cst_83 : f32 to vector<16x1xf32>
    %301 = arith.divf %299, %300 : vector<16x1xf32>
    %302 = arith.mulf %297, %297 : vector<16x80xf32>
    %cst_84 = arith.constant dense<0.000000e+00> : vector<16xf32>
    %303 = vector.multi_reduction <add>, %302, %cst_84 [1] : vector<16x80xf32> to vector<16xf32>
    %304 = vector.shape_cast %303 : vector<16xf32> to vector<16x1xf32>
    %cst_85 = arith.constant 8.000000e+01 : f32
    %305 = vector.broadcast %cst_85 : f32 to vector<16x1xf32>
    %306 = arith.divf %304, %305 : vector<16x1xf32>
    %307 = arith.mulf %301, %301 : vector<16x1xf32>
    %308 = arith.subf %306, %307 : vector<16x1xf32>
    %309 = vector.broadcast %301 : vector<16x1xf32> to vector<16x80xf32>
    %310 = arith.subf %297, %309 : vector<16x80xf32>
    %cst_86 = arith.constant 9.99999974E-6 : f32
    %311 = vector.broadcast %cst_86 : f32 to vector<16x1xf32>
    %312 = arith.addf %308, %311 : vector<16x1xf32>
    %313 = math.rsqrt %312 : vector<16x1xf32>
    %314 = vector.broadcast %313 : vector<16x1xf32> to vector<16x80xf32>
    %315 = arith.mulf %310, %314 : vector<16x80xf32>
    %316 = vector.extract_strided_slice %291 {offsets = [1, 0], sizes = [1, 80], strides = [1, 1]} : vector<3x80xf32> to vector<1x80xf32>
    %317 = vector.broadcast %316 : vector<1x80xf32> to vector<16x80xf32>
    %318 = arith.mulf %315, %317 : vector<16x80xf32>
    %319 = vector.extract_strided_slice %291 {offsets = [2, 0], sizes = [1, 80], strides = [1, 1]} : vector<3x80xf32> to vector<1x80xf32>
    %320 = vector.broadcast %319 : vector<1x80xf32> to vector<16x80xf32>
    %321 = arith.addf %318, %320 : vector<16x80xf32>
    %cst_87 = arith.constant 0.000000e+00 : f32
    %322 = vector.broadcast %cst_87 : f32 to vector<16x80xf32>
    %323 = arith.maximumf %321, %322 : vector<16x80xf32>
    %c80_88 = arith.constant 80 : index
    %c0_89 = arith.constant 0 : index
    %324 = vector.load %arg3[%c80_88, %c0_89] : memref<120x128xf32, #tpu.memory_space<vmem>>, vector<3x60xf32>
    %325 = arith.truncf %323 : vector<16x80xf32> to vector<16x80xbf16>
    %c528 = arith.constant 528 : index
    %c0_90 = arith.constant 0 : index
    %326 = vector.load %arg2[%c528, %c0_90] : memref<992x128xbf16, #tpu.memory_space<vmem>>, vector<80x60xbf16>
    %cst_91 = arith.constant dense<0.000000e+00> : vector<16x60xf32>
    %327 = tpu.matmul %325, %326, %cst_91 {dimension_numbers = #tpu.dot_dimension_numbers<[1], [0], [0], [1], [0, 0, 1, 1], [], []>} : vector<16x80xbf16>, vector<80x60xbf16>, vector<16x60xf32> -> vector<16x60xf32>
    %328 = vector.extract_strided_slice %324 {offsets = [0, 0], sizes = [1, 60], strides = [1, 1]} : vector<3x60xf32> to vector<1x60xf32>
    %329 = vector.broadcast %328 : vector<1x60xf32> to vector<16x60xf32>
    %330 = arith.addf %327, %329 : vector<16x60xf32>
    %cst_92 = arith.constant dense<0.000000e+00> : vector<16xf32>
    %331 = vector.multi_reduction <add>, %330, %cst_92 [1] : vector<16x60xf32> to vector<16xf32>
    %332 = vector.shape_cast %331 : vector<16xf32> to vector<16x1xf32>
    %cst_93 = arith.constant 6.000000e+01 : f32
    %333 = vector.broadcast %cst_93 : f32 to vector<16x1xf32>
    %334 = arith.divf %332, %333 : vector<16x1xf32>
    %335 = arith.mulf %330, %330 : vector<16x60xf32>
    %cst_94 = arith.constant dense<0.000000e+00> : vector<16xf32>
    %336 = vector.multi_reduction <add>, %335, %cst_94 [1] : vector<16x60xf32> to vector<16xf32>
    %337 = vector.shape_cast %336 : vector<16xf32> to vector<16x1xf32>
    %cst_95 = arith.constant 6.000000e+01 : f32
    %338 = vector.broadcast %cst_95 : f32 to vector<16x1xf32>
    %339 = arith.divf %337, %338 : vector<16x1xf32>
    %340 = arith.mulf %334, %334 : vector<16x1xf32>
    %341 = arith.subf %339, %340 : vector<16x1xf32>
    %342 = vector.broadcast %334 : vector<16x1xf32> to vector<16x60xf32>
    %343 = arith.subf %330, %342 : vector<16x60xf32>
    %cst_96 = arith.constant 9.99999974E-6 : f32
    %344 = vector.broadcast %cst_96 : f32 to vector<16x1xf32>
    %345 = arith.addf %341, %344 : vector<16x1xf32>
    %346 = math.rsqrt %345 : vector<16x1xf32>
    %347 = vector.broadcast %346 : vector<16x1xf32> to vector<16x60xf32>
    %348 = arith.mulf %343, %347 : vector<16x60xf32>
    %349 = vector.extract_strided_slice %324 {offsets = [1, 0], sizes = [1, 60], strides = [1, 1]} : vector<3x60xf32> to vector<1x60xf32>
    %350 = vector.broadcast %349 : vector<1x60xf32> to vector<16x60xf32>
    %351 = arith.mulf %348, %350 : vector<16x60xf32>
    %352 = vector.extract_strided_slice %324 {offsets = [2, 0], sizes = [1, 60], strides = [1, 1]} : vector<3x60xf32> to vector<1x60xf32>
    %353 = vector.broadcast %352 : vector<1x60xf32> to vector<16x60xf32>
    %354 = arith.addf %351, %353 : vector<16x60xf32>
    %cst_97 = arith.constant 0.000000e+00 : f32
    %355 = vector.broadcast %cst_97 : f32 to vector<16x60xf32>
    %356 = arith.maximumf %354, %355 : vector<16x60xf32>
    %357 = arith.truncf %356 : vector<16x60xf32> to vector<16x60xbf16>
    %c608 = arith.constant 608 : index
    %c0_98 = arith.constant 0 : index
    %358 = vector.load %arg2[%c608, %c0_98] : memref<992x128xbf16, #tpu.memory_space<vmem>>, vector<60x128xbf16>
    %cst_99 = arith.constant dense<0.000000e+00> : vector<16x128xf32>
    %359 = tpu.matmul %357, %358, %cst_99 {dimension_numbers = #tpu.dot_dimension_numbers<[1], [0], [0], [1], [0, 0, 1, 1], [], []>} : vector<16x60xbf16>, vector<60x128xbf16>, vector<16x128xf32> -> vector<16x128xf32>
    %c88 = arith.constant 88 : index
    %c0_100 = arith.constant 0 : index
    %360 = vector.load %arg3[%c88, %c0_100] : memref<120x128xf32, #tpu.memory_space<vmem>>, vector<1x128xf32>
    %361 = vector.broadcast %360 : vector<1x128xf32> to vector<16x128xf32>
    %362 = arith.addf %359, %361 : vector<16x128xf32>
    %363 = arith.truncf %356 : vector<16x60xf32> to vector<16x60xbf16>
    %c672 = arith.constant 672 : index
    %c0_101 = arith.constant 0 : index
    %364 = vector.load %arg2[%c672, %c0_101] : memref<992x128xbf16, #tpu.memory_space<vmem>>, vector<60x128xbf16>
    %cst_102 = arith.constant dense<0.000000e+00> : vector<16x128xf32>
    %365 = tpu.matmul %363, %364, %cst_102 {dimension_numbers = #tpu.dot_dimension_numbers<[1], [0], [0], [1], [0, 0, 1, 1], [], []>} : vector<16x60xbf16>, vector<60x128xbf16>, vector<16x128xf32> -> vector<16x128xf32>
    %c96 = arith.constant 96 : index
    %c0_103 = arith.constant 0 : index
    %366 = vector.load %arg3[%c96, %c0_103] : memref<120x128xf32, #tpu.memory_space<vmem>>, vector<1x128xf32>
    %367 = vector.broadcast %366 : vector<1x128xf32> to vector<16x128xf32>
    %368 = arith.addf %365, %367 : vector<16x128xf32>
    %369 = arith.truncf %356 : vector<16x60xf32> to vector<16x60xbf16>
    %c736 = arith.constant 736 : index
    %c0_104 = arith.constant 0 : index
    %370 = vector.load %arg2[%c736, %c0_104] : memref<992x128xbf16, #tpu.memory_space<vmem>>, vector<60x128xbf16>
    %cst_105 = arith.constant dense<0.000000e+00> : vector<16x128xf32>
    %371 = tpu.matmul %369, %370, %cst_105 {dimension_numbers = #tpu.dot_dimension_numbers<[1], [0], [0], [1], [0, 0, 1, 1], [], []>} : vector<16x60xbf16>, vector<60x128xbf16>, vector<16x128xf32> -> vector<16x128xf32>
    %c104 = arith.constant 104 : index
    %c0_106 = arith.constant 0 : index
    %372 = vector.load %arg3[%c104, %c0_106] : memref<120x128xf32, #tpu.memory_space<vmem>>, vector<1x128xf32>
    %373 = vector.broadcast %372 : vector<1x128xf32> to vector<16x128xf32>
    %374 = arith.addf %371, %373 : vector<16x128xf32>
    %375 = arith.truncf %362 : vector<16x128xf32> to vector<16x128xbf16>
    %376 = arith.truncf %368 : vector<16x128xf32> to vector<16x128xbf16>
    "tpu.trace_start"() <{level = 10 : i32, message = "id,jd->ij"}> : () -> ()
    %cst_107 = arith.constant dense<0.000000e+00> : vector<16x16xf32>
    %377 = tpu.matmul %375, %376, %cst_107 {dimension_numbers = #tpu.dot_dimension_numbers<[1], [1], [0], [0], [0, 0, 1, 0], [], []>} : vector<16x128xbf16>, vector<16x128xbf16>, vector<16x16xf32> -> vector<16x16xf32>
    "tpu.trace_stop"() : () -> ()
    %cst_108 = arith.constant 0.129099444 : f32
    %378 = vector.broadcast %cst_108 : f32 to vector<16x16xf32>
    %379 = arith.mulf %377, %378 : vector<16x16xf32>
    %cst_109 = arith.constant dense<0xFF800000> : vector<16xf32>
    %380 = vector.multi_reduction <maximumf>, %379, %cst_109 [1] : vector<16x16xf32> to vector<16xf32>
    %381 = vector.shape_cast %380 : vector<16xf32> to vector<16x1xf32>
    %382 = vector.broadcast %381 : vector<16x1xf32> to vector<16x16xf32>
    %383 = arith.subf %379, %382 : vector<16x16xf32>
    %384 = math.exp %383 : vector<16x16xf32>
    %cst_110 = arith.constant dense<0.000000e+00> : vector<16xf32>
    %385 = vector.multi_reduction <add>, %384, %cst_110 [1] : vector<16x16xf32> to vector<16xf32>
    %386 = vector.shape_cast %385 : vector<16xf32> to vector<16x1xf32>
    %387 = tpu.reciprocal %386 {approx = true} : vector<16x1xf32> -> vector<16x1xf32>
    %388 = vector.broadcast %387 : vector<16x1xf32> to vector<16x16xf32>
    %389 = arith.mulf %384, %388 : vector<16x16xf32>
    %390 = arith.truncf %389 : vector<16x16xf32> to vector<16x16xbf16>
    %391 = arith.truncf %374 : vector<16x128xf32> to vector<16x128xbf16>
    %cst_111 = arith.constant dense<0.000000e+00> : vector<16x128xf32>
    %392 = tpu.matmul %390, %391, %cst_111 {dimension_numbers = #tpu.dot_dimension_numbers<[1], [0], [0], [1], [0, 0, 1, 1], [], []>} : vector<16x16xbf16>, vector<16x128xbf16>, vector<16x128xf32> -> vector<16x128xf32>
    %393 = arith.truncf %356 : vector<16x60xf32> to vector<16x60xbf16>
    %c800 = arith.constant 800 : index
    %c0_112 = arith.constant 0 : index
    %394 = vector.load %arg2[%c800, %c0_112] : memref<992x128xbf16, #tpu.memory_space<vmem>>, vector<60x128xbf16>
    %cst_113 = arith.constant dense<0.000000e+00> : vector<16x128xf32>
    %395 = tpu.matmul %393, %394, %cst_113 {dimension_numbers = #tpu.dot_dimension_numbers<[1], [0], [0], [1], [0, 0, 1, 1], [], []>} : vector<16x60xbf16>, vector<60x128xbf16>, vector<16x128xf32> -> vector<16x128xf32>
    %396 = arith.truncf %392 : vector<16x128xf32> to vector<16x128xbf16>
    %c864 = arith.constant 864 : index
    %c0_114 = arith.constant 0 : index
    %397 = vector.load %arg2[%c864, %c0_114] : memref<992x128xbf16, #tpu.memory_space<vmem>>, vector<128x128xbf16>
    %cst_115 = arith.constant dense<0.000000e+00> : vector<16x128xf32>
    %398 = tpu.matmul %396, %397, %cst_115 {dimension_numbers = #tpu.dot_dimension_numbers<[1], [0], [0], [1], [0, 0, 1, 1], [], []>} : vector<16x128xbf16>, vector<128x128xbf16>, vector<16x128xf32> -> vector<16x128xf32>
    %399 = arith.addf %395, %398 : vector<16x128xf32>
    %c112 = arith.constant 112 : index
    %c0_116 = arith.constant 0 : index
    %400 = vector.load %arg3[%c112, %c0_116] : memref<120x128xf32, #tpu.memory_space<vmem>>, vector<1x128xf32>
    %401 = vector.broadcast %400 : vector<1x128xf32> to vector<16x128xf32>
    %402 = arith.addf %399, %401 : vector<16x128xf32>
    %c0_117 = arith.constant 0 : index
    %c0_118 = arith.constant 0 : index
    %403 = vector.load %arg4[%c0_117, %c0_118] : memref<16x128xf32, #tpu.memory_space<vmem>>, vector<16x128xf32>
    tpu.vector_store %arg4[%c0_117, %c0_118], %402 {strides = array<i32>} : memref<16x128xf32, #tpu.memory_space<vmem>>, vector<16x128xf32>,
    return
  }
  func.func @transform_0(%arg0: i32) -> (i32, i32) {
    %c0_i32 = arith.constant 0 : i32
    %c0_i32_0 = arith.constant 0 : i32
    return %arg0, %c0_i32 : i32, i32
  }
  func.func @transform_1(%arg0: i32) -> (i32, i32) {
    %c0_i32 = arith.constant 0 : i32
    %c0_i32_0 = arith.constant 0 : i32
    %c0_i32_1 = arith.constant 0 : i32
    return %c0_i32, %c0_i32_0 : i32, i32
  }
  func.func @transform_2(%arg0: i32) -> (i32, i32) {
    %c0_i32 = arith.constant 0 : i32
    %c0_i32_0 = arith.constant 0 : i32
    %c0_i32_1 = arith.constant 0 : i32
    return %c0_i32, %c0_i32_0 : i32, i32
  }
  func.func @transform_3(%arg0: i32) -> (i32, i32) {
    %c0_i32 = arith.constant 0 : i32
    %c0_i32_0 = arith.constant 0 : i32
    return %arg0, %c0_i32 : i32, i32
  }
}

</mosaic_0001>

<bundles_post_ra>
// kernel: tpu_custom_call.1
= control target key start
LH: loop header
LB: loop body
LE: loop exit
PB: predicated region body
PF: predicated region fallthrough
CT: control target
= control target key end

     0   :  { %8 = vsyncpa [#allocation3], 0  ;;  %s5162_s0 = inlined_call_operand.vmem [shape: f32[32,8], index: 0, kind: input, shape index: {}]   ;;  %s5163_s1 = inlined_call_operand.hbm [shape: bf16[992,128], index: 1, kind: input, shape index: {}]   ;;  %s5164_s2 = inlined_call_operand.hbm [shape: f32[120,128], index: 2, kind: input, shape index: {}]   ;;  %s5165_s3 = inlined_call_operand.hbm [shape: f32[32,128], index: 3, kind: output, shape index: {}]  }
   0x1   :  { %9 = vsyncpa [#allocation6], 0 }
   0x2   :  { %10 = vsyncpa [#allocation4], 0 }
   0x3   :  { %12 = vsyncpa [#allocation4 + $0x1], 0  ;;  %s4305_s12 = smov 0   ;;  %s4307_s13 = smov 0  }
   0x4   :  { %s4309_s14 = smov 0   ;;  %s4311_s15 = smov 0  }
   0x5 LB: > { %s4326_s16 = sadd.s32 4294967295, %s4262_s15   ;;  %s3442_s17 = sadd.s32 4294967294, %s4262_s15   ;;  %s4262_s15 = sphi %s4311_s15, %s5191_s15   ;;  %s4258_s14 = sphi %s4309_s14, %s5190_s14   ;;  %s4254_s13 = sphi %s4307_s13, %s5189_s13   ;;  %s4250_s12 = sphi %s4305_s12, %s5188_s12  }
   0x6   : > { %s4330_s18 = sadd.s32 1, %s4262_s15   ;;  %s93_s19 = sadd.s32 1, %s4258_s14 }
   0x7   : > { %s90_s20 = ssub.s32 %s4262_s15, %s4330_s18  ;;  %p103_p0 = scmp.ne.s32.totalorder %s4258_s14, %s4254_s13 }
   0x8   : > { %p91_p1 = scmp.eq.s32.totalorder %s90_s20, 0  ;;  %p104_p2 = scmp.eq.s32.totalorder %s4326_s16, 1 }
   0x9   : > { %p109_p3 = scmp.ne.s32.totalorder %s4254_s13, %s4250_s12  ;;  %p110_p4 = scmp.eq.s32.totalorder %s3442_s17, 1 }
   0xa   : > { %s4341_s21 = scalar_select %p91_p1, %s4258_s14, %s93_s19  }
   0xb   : > { %p4343_p5 = por %p104_p2, %p103_p0  ;;  %p4347_p6 = por %p110_p4, %p109_p3 }
   0xc   : > { %p3443_p7 = scmp.ge.s32.totalorder %s4262_s15, 1  ;;  %p117_p8 = scmp.lt.s32.totalorder %s4262_s15, 3 }
   0xd   : > { %s5169_s22 = scalar_select %p4343_p5, 1, 0 }
   0xe   : > { %s5170_s23 = scalar_select %p4347_p6, 1, 0 }
   0xf   : > { %p5166_p9 = scmp.eq.s32.totalorder %s4326_s16, 0  ;;  %p4354_p10 = pnand %p3443_p7, %p117_p8 }
  0x10   : > { %s4264_s25 = smov [#allocation2]   ;;  %s4265_s28 = smov [#allocation5]  }
  0x11   : > { %s5171_s24 = scalar_select %p4354_p10, 1, 0 }
  0x12   : > { %s129_s26 = sshll.u32 %s4264_s25, 4  ;;  %p3954_p11 = pneg %p4354_p10  ;;  %s130_s26 = int_to_ptr.vmem [resolvable:$true] %s129_s26 }
  0x13   : > { %s142_s29 = sshll.u32 %s4265_s28, 4  ;;  %s4136_s5 = scalar_lea.hbm %s5163_s1, 7936  ;;  %s4366_s29 = int_to_ptr.vmem [resolvable:$true] %s142_s29 }
  0x14   : > { %p4362_p12 = pnand %p5166_p9, %p3954_p11  ;;  %p4137_p13 = scmp.ne.s32.totalorder %s5163_s1, %s4136_s5 }
  0x15   : > { %p4143_p3 = scmp.lt.u32.totalorder %s4136_s5, %s5163_s1 }
  0x16   : > { %p4138_p0 = pneg %p4362_p12 }
  0x18   : > { %p4139_p1 = pnand %p4138_p0, %p4137_p13 }
  0x1a   : > { %p4140_p2 = pneg %p4139_p1 }
  0x1c   : > { %p4145_p4 = pnand %p4143_p3, %p4140_p2 }
  0x1e   : > { %4148 = shalt.err (!%p4145_p4)
}
  0x1f   : > { %s4149_s10 = scalar_lea.vmem %s130_s26, 7936  ;;  %p4157_p9 = scmp.lt.s32.totalorder %s130_s26, %s130_s26 }
  0x20   : > { %p4150_p7 = scmp.ne.s32.totalorder %s130_s26, %s4149_s10  ;;  %p4158_p6 = scmp.lt.s32.totalorder %s4149_s10, %s4149_s10 }
  0x22   : > { %p4152_p8 = pnand %p4150_p7, %p4138_p0  ;;  %p4159_p5 = por %p4158_p6, %p4157_p9 }
  0x24   : > { %p4153_p11 = pneg %p4152_p8 }
  0x26   : > { %p4160_p10 = pnand %p4159_p5, %p4153_p11 }
  0x28   : > { %4163 = shalt.err (!%p4160_p10)
}
  0x29   : > { %s4266_s11 = smov 64   ;;  %s4267_s17 = smov 4  }
  0x2a   : > { %3957 = dma.hbm_to_vmem [thread:$0]  (!%p4362_p12), %s5163_s1, 7936, %s130_s26, [#allocation3], %s4266_s11, %s4266_s11, %s4267_s17  }
  0x2b   : > { %s4164_s30 = scalar_lea.hbm %s5164_s2, 1920 }
  0x2c   : > { %p4165_p13 = scmp.ne.s32.totalorder %s5164_s2, %s4164_s30  ;;  %p4171_p9 = scmp.lt.u32.totalorder %s4164_s30, %s5164_s2 }
  0x2e   : > { %p4167_p5 = pnand %p4165_p13, %p4138_p0 }
  0x30   : > { %p4168_p6 = pneg %p4167_p5 }
  0x32   : > { %p4173_p10 = pnand %p4171_p9, %p4168_p6 }
  0x34   : > { %4176 = shalt.err (!%p4173_p10)
}
  0x35   : > { %s4177_s26 = scalar_lea.vmem %s4366_s29, 1920  ;;  %p4185_p4 = scmp.lt.s32.totalorder %s4366_s29, %s4366_s29 }
  0x36   : > { %p4178_p1 = scmp.ne.s32.totalorder %s4366_s29, %s4177_s26  ;;  %p4186_p7 = scmp.lt.s32.totalorder %s4177_s26, %s4177_s26 }
  0x38   : > { %p4180_p2 = pnand %p4178_p1, %p4138_p0  ;;  %p4187_p8 = por %p4186_p7, %p4185_p4 }
  0x3a   : > { %p4181_p3 = pneg %p4180_p2 }
  0x3c   : > { %p4188_p11 = pnand %p4187_p8, %p4181_p3 }
  0x3e   : > { %4191 = shalt.err (!%p4188_p11)
}
  0x3f   : > { %s4268_s8 = smov 128   ;;  %s4269_s9 = smov 8  }
  0x40   : > { %3960 = dma.hbm_to_vmem [thread:$0]  (!%p4362_p12), %s5164_s2, 1920, %s4366_s29, [#allocation6], %s4268_s8, %s4268_s8, %s4269_s9  }
  0x41   : > { %p5173_p13 = scmp.ne.s32.totalorder %s5171_s24, 0 }
  0x42   : > { %p5174_p0 = scmp.eq.s32.totalorder (!%p5173_p13), %s4326_s16, 0 }
  0x43   : > { %167 = sbr.rel (%p5173_p13) target bundleno = 5192 (0x1448), region = 32 }
  0x4a   : > { %4237 = dma.done.wait (%p5174_p0), [#allocation3], 7936   ;;  %p5175_p5 = pmov %p5174_p0 }
  0x4b   : > { %p5176_p6 = pmov %p5174_p0 }
  0x4c   : > { %4239 = vsyncadd (%p5175_p5), [#allocation3], 4294959360 }
  0x4d   : > { %4241 = dma.done.wait (%p5176_p6), [#allocation6], 1920   ;;  %p5177_p9 = pmov %p5174_p0 }
  0x4e   : > { %s3451_s27 = sshll.u32 %s4326_s16, 1  ;;  %v4270_v0 = vmov 1   ;;  %v4271_v1 = vmov 0   ;;  %v4025_v4 = vld [vmem:[#allocation2] sm:$0xff]   ;;  %v4272_v5 = vmov 0.0   ;;  %v4026_v6 = vld [vmem:[#allocation2 + $0x8] sm:$0xff]   ;;  %v216_v9 = vlaneseq }
  0x4f   : > { %4243 = vsyncadd (%p5177_p9), [#allocation6], 4294965376  ;;  %4023 = vset.pattern.permute.xlu1 %v4270_v0  ;;  %4022 = vset.pattern.permute.xlu0 %v4271_v1  ;;  %p196_p12 = scmp.lt.s32.totalorder %s3451_s27, 3  ;;  %v4027_v7 = vld [vmem:[#allocation2 + $0x10] sm:$0x1f]   ;;  %vm499_vm0 = vcmask 1044480  }
  0x50   : > { %3684 = vmatprep.subr.bf16.mxu0 %v4272_v5  ;;  %3694 = vmatprep.subr.bf16.mxu1 %v4272_v5  ;;  %vm4273_vm1 = vmmov 0   ;;  %v501_v8 = vsel %vm499_vm0, %v4027_v7, 0  ;;  %v4443_v10 = vshrl.u32 %v216_v9, 7  ;;  %v4451_v13 = vld [vmem:[#allocation5] sm:$0x1f]  ;;  %s192_s20 = sand.u32 1, %s4254_s13  }
  0x51   : > { %s5193_s27 = smov (!%p196_p12, %s3451_s27), 3  ;;  %3685 = vmatpush3.bf16.msra.mxu0 %v4025_v4  ;;  %3690 = vmatprep.mubr.msk.bf16.mxu0 %vm4273_vm1, %v4272_v5  ;;  %v4274_v50 = vmov 683565275   ;;  %v4275_v54 = vmov 2475754826   ;;  %s3450_s25 = sshll.u32 %s192_s20, 4 }
  0x52   : > { %s3452_s24 = sshll.u32 %s5193_s27, 3  ;;  %3686 = vmatprep.subr.bf16.mxu0 %v4272_v5  ;;  %3698 = vmatprep.mubr.msk.bf16.mxu1 %vm4273_vm1, %v4272_v5  ;;  %v4446_v11 = vsub.s32 0, %v4443_v10  ;;  %v4449_v12 = vsub.s32 1, %v4443_v10  ;;  %v4458_v16 = vsub.s32 2, %v4443_v10  ;;  %v4461_v17 = vsub.s32 4, %v4443_v10  ;;  %s194_s28 = scalar_lea.vmem [#allocation7], %s3450_s25 }
  0x53   : > { %s4429_s19 = scalar_lea.vmem %s5162_s0, %s3452_s24  ;;  %v4276_v56 = vmov 2131351028   ;;  %v4277_v58 = vmov 2102212464   ;;  %v4278_v60 = vmov 920167782  }
  0x54   : > { %v203_v2 = vld [vmem:[%s4429_s19] sm:$0xff]  ;;  %v204_v3 = vld [vmem:[%s4429_s19 + $0x8] sm:$0xff]  ;;  %v233_v14 = vrot.slane %v4451_v13, %v4449_v12  ;;  %v219_v15 = vrot.slane %v4451_v13, %v4446_v11  ;;  %v241_v21 = vrot.slane %v4451_v13, %v4458_v16  ;;  %v247_v22 = vrot.slane %v4451_v13, %v4461_v17  ;;  %s3358_s30 = sshll.u32 %s194_s28, 4  ;;  %s3579_s4 = sshll.u32 %s4326_s16, 8  ;;  %s5114_s30 = int_to_ptr.vmem [resolvable:$true] %s3358_s30 }
  0x55   : > { %223 = vperm.xlu1 %4023, %v203_v2   ;;  %208 = vperm.xlu0 %4022, %v203_v2   ;;  %s5119_s7 = scalar_lea.hbm %s5165_s3, %s3579_s4  ;;  %s5121_s26 = scalar_lea.sflag [#allocation4], %s192_s20 }
  0x56   : > { %3687 = vmatpush3.bf16.msra.mxu0 %v4026_v6  ;;  %s4192_s8 = scalar_lea.vmem %s5114_s30, 256  ;;  %p5186_p1 = scmp.ne.s32.totalorder %s5169_s22, 0 }
  0x57   : > { %3688 = vmatprep.subr.bf16.mxu0 %v4272_v5  ;;  %p4193_p10 = scmp.ne.s32.totalorder %s5114_s30, %s4192_s8  ;;  %s4282_s16 = smov [#allocation7]  }
  0x58   : > { %s4196_s9 = sshll.u32 %s4282_s16, 4  ;;  %s4197_s9 = int_to_ptr.vmem [resolvable:$false] %s4196_s9 }
  0x59   : > { %227 = vperm.xlu1 %4023, %v204_v3   ;;  %213 = vperm.xlu0 %4022, %v204_v3   ;;  %v4279_v3 = vmov 1326507024   ;;  %p4194_p2 = pnand %p4193_p10, %p5186_p1  ;;  %s4198_s10 = scalar_lea.vmem %s4197_s9, 512 }
  0x5a   : > { %3689 = vmatpush3.bf16.msra.mxu0 %v501_v8  ;;  %p4199_p4 = scmp.lt.s32.totalorder %s5114_s30, %s4197_s9  ;;  %p4200_p7 = scmp.lt.s32.totalorder %s4198_s10, %s4192_s8 }
  0x5b   : > { %3712 = vmatprep.subr.bf16.mxu0 %v4272_v5  ;;  %p4195_p3 = pneg %p4194_p2 }
  0x5c   : > { %p4201_p8 = por %p4200_p7, %p4199_p4 }
  0x5d   : > { %4024 = vset.pattern.permute.xlu0 %v4270_v0 }
  0x5e   : > { %p4202_p11 = pnand %p4201_p8, %p4195_p3 }
  0xd4   : > { %v224_v18 = vpop.permute.xlu1 %223  ;;  %v209_v19 = vpop.permute.xlu0 %208 }
  0xd5   : > { %v234_v20 = vmul.f32 %v233_v14, %v224_v18  ;;  %v220_v23 = vmul.f32 %v219_v15, %v209_v19 }
  0xd7   : > { %v236_v24 = vadd.f32 %v234_v20, %v220_v23 }
  0xd8   : > { %v228_v25 = vpop.permute.xlu1 %227  ;;  %v214_v26 = vpop.permute.xlu0 %213 }
  0xd9   : > { %v4467_v27 = vmul.f32 %v241_v21, %v236_v24  ;;  %v4469_v28 = vadd.f32 %v247_v22, %v236_v24  ;;  %v235_v29 = vmul.f32 %v233_v14, %v228_v25  ;;  %v221_v30 = vmul.f32 %v219_v15, %v214_v26 }
  0xdb   : > { %v250_v31 = vand.u32 2147483647, %v4469_v28  ;;  %v253_v32 = vand.u32 2139095040, %v4469_v28  ;;  %v237_v33 = vadd.f32 %v235_v29, %v221_v30  ;;  %vm252_vm0 = vcmp.lt.s32.totalorder %v4469_v28, 0 }
  0xdd   : > { %v254_v34 = vshrl.u32 %v253_v32, 23  ;;  %v257_v35 = vand.u32 8388607, %v250_v31  ;;  %v4475_v36 = vmul.f32 %v241_v21, %v237_v33  ;;  %v4477_v37 = vadd.f32 %v247_v22, %v237_v33 }
  0xdf   : > { %v3453_v38 = vadd.s32 4294967169, %v254_v34  ;;  %v357_v39 = vand.u32 2139095040, %v4477_v37  ;;  %v258_v41 = vor.u32 8388608, %v257_v35  ;;  %v354_v43 = vand.u32 2147483647, %v4477_v37 }
  0xe1   : > { %v260_v40 = vadd.s32 1, %v3453_v38  ;;  %v358_v42 = vshrl.u32 %v357_v39, 23  ;;  %v4481_v48 = vshll.u32 %v258_v41, 8  ;;  %v361_v52 = vand.u32 8388607, %v354_v43 }
  0xe3   : > { %vm261_vm2 = vcmp.gt.s32.totalorder %v260_v40, 0  ;;  %v3457_v45 = vadd.s32 4294967169, %v358_v42  ;;  %v362_v26 = vor.u32 8388608, %v361_v52 }
  0xe4   : > { %v262_v44 = vsel %vm261_vm2, %v260_v40, 0  ;;  %vm251_vm2 = vcmp.le.f32.partialorder %v250_v31, 0.7853982  ;;  %v4527_v31 = vsub.s32 3, %v4443_v10 }
  0xe5   : > { %v263_v46 = vshrl.u32 %v262_v44, 5  ;;  %v264_v47 = vand.u32 31, %v262_v44  ;;  %v364_v53 = vadd.s32 1, %v3457_v45  ;;  %v402_v45 = vshll.u32 %v362_v26, 8 }
  0xe7   : > { %v265_v49 = vsub.s32 32, %v264_v47  ;;  %v267_v51 = vshll.u32 %v4274_v50, %v264_v47  ;;  %v270_v55 = vshll.u32 %v4275_v54, %v264_v47  ;;  %v273_v57 = vshll.u32 %v4276_v56, %v264_v47 }
  0xe8   : > { %v276_v59 = vshll.u32 %v4277_v58, %v264_v47  ;;  %v279_v61 = vshll.u32 %v4278_v60, %v264_v47  ;;  %vm282_vm3 = vcmp.lt.s32.totalorder %v263_v46, 1  ;;  %vm284_vm4 = vcmp.lt.s32.totalorder %v263_v46, 3 }
  0xe9   : > { %v268_v62 = vshrl.u32 %v4275_v54, %v265_v49  ;;  %v271_v63 = vshrl.u32 %v4276_v56, %v265_v49  ;;  %v274_v0 = vshrl.u32 %v4277_v58, %v265_v49  ;;  %v266_v1 = vshrl.u32 %v4274_v50, %v265_v49 }
  0xea   : > { %v277_v2 = vshrl.u32 %v4278_v60, %v265_v49  ;;  %v280_v4 = vshrl.u32 %v4279_v3, %v265_v49  ;;  %vm365_vm5 = vcmp.gt.s32.totalorder %v364_v53, 0  ;;  %vm285_vm6 = vcmp.lt.s32.totalorder %v263_v46, 4 }
  0xeb   : > { %v269_v6 = vor.u32 %v268_v62, %v267_v51  ;;  %v272_v7 = vor.u32 %v271_v63, %v270_v55  ;;  %v275_v8 = vor.u32 %v274_v0, %v273_v57  ;;  %v366_v18 = vsel %vm365_vm5, %v364_v53, 0 }
  0xec   : > { %v278_v14 = vor.u32 %v277_v2, %v276_v59  ;;  %v281_v15 = vor.u32 %v280_v4, %v279_v61  ;;  %vm283_vm7 = vcmp.lt.s32.totalorder %v263_v46, 2  ;;  %v368_v32 = vand.u32 31, %v366_v18 }
  0xed   : > { %v286_v19 = vsel %vm282_vm3, %v266_v1, %v269_v6  ;;  %v287_v20 = vsel %vm285_vm6, %v275_v8, 2102212464  ;;  %v290_v21 = vsel %vm282_vm3, %v269_v6, %v272_v7  ;;  %v294_v22 = vsel %vm282_vm3, %v272_v7, %v275_v8 }
  0xee   : > { %v288_v23 = vsel %vm284_vm4, %v272_v7, %v287_v20  ;;  %v291_v24 = vsel %vm285_vm6, %v278_v14, 920167782  ;;  %v295_v25 = vsel %vm285_vm6, %v281_v15, 1326507024  ;;  %v367_v42 = vshrl.u32 %v366_v18, 5 }
  0xef   : > { %v292_v29 = vsel %vm284_vm4, %v275_v8, %v291_v24  ;;  %v296_v30 = vsel %vm284_vm4, %v278_v14, %v295_v25  ;;  %v289_v33 = vsel %vm283_vm7, %v286_v19, %v288_v23  ;;  %v369_v44 = vsub.s32 32, %v368_v32 }
  0xf0   : > { %v293_v34 = vsel %vm283_vm7, %v290_v21, %v292_v29  ;;  %v297_v35 = vsel %vm283_vm7, %v294_v22, %v296_v30  ;;  %v305_v47 = vmul.u32 %v4481_v48, %v289_v33  ;;  %v371_v46 = vshll.u32 %v4274_v50, %v368_v32 }
  0xf1   : > { %v4494_v38 = vmul.u32.u64.low %v4481_v48, %v297_v35  ;;  %v4495_v39 = vmul.u32.u64.high %v4481_v48, %v297_v35, %v4494_v38  ;;  %v4498_v40 = vmul.u32.u64.low %v4481_v48, %v293_v34  ;;  %v4499_v41 = vmul.u32.u64.high %v4481_v48, %v293_v34, %v4498_v40 }
  0xf2   : > { %v374_v49 = vshll.u32 %v4275_v54, %v368_v32  ;;  %v377_v51 = vshll.u32 %v4276_v56, %v368_v32  ;;  %v372_v52 = vshrl.u32 %v4275_v54, %v369_v44  ;;  %v375_v53 = vshrl.u32 %v4276_v56, %v369_v44 }
  0xf3   : > { %v378_v55 = vshrl.u32 %v4277_v58, %v369_v44  ;;  %v380_v57 = vshll.u32 %v4277_v58, %v368_v32  ;;  %vm307_vm8 = vc.u32 %v4495_v39, %v4498_v40  ;;  %v308_v59 = vadd.s32 1, %v4499_v41 }
  0xf4   : > { %v381_v61 = vshrl.u32 %v4278_v60, %v369_v44  ;;  %v383_v62 = vshll.u32 %v4278_v60, %v368_v32  ;;  %v373_v63 = vor.u32 %v372_v52, %v371_v46  ;;  %v376_v0 = vor.u32 %v375_v53, %v374_v49 }
  0xf5   : > { %v379_v1 = vor.u32 %v378_v55, %v377_v51  ;;  %v384_v2 = vshrl.u32 %v4279_v3, %v369_v44  ;;  %v309_v48 = vsel %vm307_vm8, %v308_v59, %v4499_v41  ;;  %vm386_vm9 = vcmp.lt.s32.totalorder %v367_v42, 1 }
  0xf6   : > { %v382_v4 = vor.u32 %v381_v61, %v380_v57  ;;  %vm389_vm10 = vcmp.lt.s32.totalorder %v367_v42, 4  ;;  %v310_v54 = vadd.s32 %v309_v48, %v305_v47  ;;  %vm388_vm11 = vcmp.lt.s32.totalorder %v367_v42, 3 }
  0xf7   : > { %v385_v56 = vor.u32 %v384_v2, %v383_v62  ;;  %v391_v58 = vsel %vm389_vm10, %v379_v1, 2102212464  ;;  %v370_v6 = vshrl.u32 %v4274_v50, %v369_v44  ;;  %v394_v7 = vsel %vm386_vm9, %v373_v63, %v376_v0 }
  0xf8   : > { %v395_v8 = vsel %vm389_vm10, %v382_v4, 920167782  ;;  %v398_v14 = vsel %vm386_vm9, %v376_v0, %v379_v1  ;;  %v311_v15 = vadd.s32 536870912, %v310_v54  ;;  %vm387_vm12 = vcmp.lt.s32.totalorder %v367_v42, 2 }
  0xf9   : > { %v396_v60 = vsel %vm388_vm11, %v379_v1, %v395_v8  ;;  %v399_v18 = vsel %vm389_vm10, %v385_v56, 1326507024  ;;  %v390_v19 = vsel %vm386_vm9, %v370_v6, %v373_v63  ;;  %v392_v3 = vsel %vm388_vm11, %v376_v0, %v391_v58 }
  0xfa   : > { %v397_v20 = vsel %vm387_vm12, %v394_v7, %v396_v60  ;;  %v400_v21 = vsel %vm388_vm11, %v382_v4, %v399_v18  ;;  %v312_v22 = vshrl.u32 %v311_v15, 30  ;;  %v393_v30 = vsel %vm387_vm12, %v390_v19, %v392_v3 }
  0xfb   : > { %v401_v23 = vsel %vm387_vm12, %v398_v14, %v400_v21  ;;  %v4509_v24 = vmul.u32.u64.low %v402_v45, %v397_v20  ;;  %v4510_v25 = vmul.u32.u64.high %v402_v45, %v397_v20, %v4509_v24  ;;  %v409_v34 = vmul.u32 %v402_v45, %v393_v30 }
  0xfc   : > { %v4512_v26 = vmul.u32.u64.low %v402_v45, %v401_v23  ;;  %v4513_v29 = vmul.u32.u64.high %v402_v45, %v401_v23, %v4512_v26  ;;  %v313_v50 = vshll.u32 %v312_v22, 30  ;;  %v306_v55 = vadd.s32 %v4498_v40, %v4495_v39 }
  0xfd   : > { %v412_v33 = vadd.s32 1, %v4510_v25  ;;  %v336_v7 = vsub.s32 4, %v312_v22  ;;  %vm356_vm3 = vcmp.lt.s32.totalorder %v4477_v37, 0  ;;  %vm4531_vm4 = vcmp.le.f32.partialorder %v354_v43, 0.7853982 }
  0xfe   : > { %v314_v32 = vsub.s32 %v310_v54, %v313_v50  ;;  %vm411_vm13 = vc.u32 %v4513_v29, %v4509_v24  ;;  %v410_v39 = vadd.s32 %v4509_v24, %v4513_v29  ;;  %v461_v43 = vrot.slane %v4451_v13, %v4527_v31 }
  0xff   : > { %v413_v38 = vsel %vm411_vm13, %v412_v33, %v4510_v25  ;;  %v337_v20 = vsel %vm252_vm0, %v336_v7, %v312_v22  ;;  %vm342_vm8 = vweird.f32 %v4469_v28  ;;  %vm446_vm12 = vweird.f32 %v4477_v37 }
 0x100   : > { %v316_v35 = vsub.s32 0, %v314_v32  ;;  %v414_v41 = vadd.s32 %v413_v38, %v409_v34  ;;  %v339_v26 = vsel %vm251_vm2, 0, %v337_v20  ;;  %vm495_vm13 = vcmask 343040   ;;  %v4028_v20 = vld [vmem:[#allocation2 + $0x18] sm:$0xff]  }
 0x101   : > { %v343_v30 = vadd.s32 3, %v339_v26  ;;  %3695 = vmatpush3.bf16.msra.mxu1 %v4028_v20 }
 0x102   : > { %v3454_v42 = vmin.u32 %v316_v35, %v314_v32  ;;  %v415_v44 = vadd.s32 536870912, %v414_v41  ;;  %3696 = vmatprep.subr.bf16.mxu1 %v4272_v5 }
 0x103   : > { %v344_v35 = vand.u32 3, %v343_v30 }
 0x104   : > { %v318_v47 = vclz %v3454_v42  ;;  %v416_v46 = vshrl.u32 %v415_v44, 30 }
 0x105   : > { %vm349_vm5 = vcmp.eq.s32.totalorder %v344_v35, 2  ;;  %vm346_vm6 = vcmp.eq.s32.totalorder %v344_v35, 0  ;;  %vm345_vm7 = vcmp.lt.s32.totalorder %v344_v35, 2 }
 0x106   : > { %v3455_v49 = vadd.s32 4294967294, %v318_v47  ;;  %v417_v51 = vshll.u32 %v416_v46, 30  ;;  %v440_v33 = vsub.s32 4, %v416_v46 }
 0x108   : > { %vm3456_vm14 = vcmp.lt.s32.totalorder %v3455_v49, 0  ;;  %v418_v53 = vsub.s32 %v414_v41, %v417_v51  ;;  %v441_v41 = vsel %vm356_vm3, %v440_v33, %v416_v46 }
 0x109   : > { %v321_v52 = vsel %vm3456_vm14, 0, %v3455_v49  ;;  %vm544_vm14 = vcmask 162816  }
 0x10a   : > { %v322_v57 = vsub.s32 32, %v321_v52  ;;  %v326_v45 = vsub.s32 4294967266, %v321_v52  ;;  %v420_v59 = vsub.s32 0, %v418_v53  ;;  %v323_v61 = vshll.u32 %v314_v32, %v321_v52 }
 0x10b   : > { %v443_v52 = vsel %vm4531_vm4, 0, %v441_v41 }
 0x10c   : > { %v324_v62 = vshrl.u32 %v306_v55, %v322_v57  ;;  %v327_v63 = vadd.s32 127, %v326_v45  ;;  %v3458_v0 = vmin.u32 %v420_v59, %v418_v53  ;;  %v447_v57 = vadd.s32 3, %v443_v52 }
 0x10e   : > { %v325_v1 = vor.u32 %v324_v62, %v323_v61  ;;  %v328_v2 = vshll.u32 %v327_v63, 23  ;;  %v422_v48 = vclz %v3458_v0  ;;  %v448_v62 = vand.u32 3, %v447_v57 }
 0x110   : > { %v329_v4 = vor.u32 4788187, %v328_v2  ;;  %v3459_v54 = vadd.s32 4294967294, %v422_v48  ;;  %v332_v58 = vcvt.s32.f32 %v325_v1  ;;  %vm453_vm9 = vcmp.eq.s32.totalorder %v448_v62, 2 }
 0x111   : > { %vm450_vm10 = vcmp.eq.s32.totalorder %v448_v62, 0  ;;  %vm449_vm11 = vcmp.lt.s32.totalorder %v448_v62, 2 }
 0x112   : > { %v330_v56 = vand.u32 2147483647, %v329_v4  ;;  %vm3460_vm15 = vcmp.lt.s32.totalorder %v3459_v54, 0 }
 0x113   : > { %v425_v8 = vsel %vm3460_vm15, 0, %v3459_v54  ;;  %vm611_vm15 = vcmask 1041408  }
 0x114   : > { %v333_v6 = vmul.f32 %v332_v58, %v330_v56  ;;  %v426_v40 = vsub.s32 32, %v425_v8  ;;  %v430_v14 = vsub.s32 4294967266, %v425_v8  ;;  %v427_v60 = vshll.u32 %v418_v53, %v425_v8 }
 0x116   : > { %v334_v15 = vxor.u32 2147483648, %v333_v6  ;;  %v428_v18 = vshrl.u32 %v410_v39, %v426_v40  ;;  %v431_v19 = vadd.s32 127, %v430_v14 }
 0x118   : > { %v335_v3 = vsel %vm252_vm0, %v334_v15, %v333_v6  ;;  %v429_v23 = vor.u32 %v428_v18, %v427_v60  ;;  %v432_v25 = vshll.u32 %v431_v19, 23  ;;  %vm656_vm0 = vcmask 326656  }
 0x119   : > { %v338_v21 = vsel %vm251_vm2, %v4469_v28, %v335_v3  ;;  %vm731_vm2 = vcmask 1043456  }
 0x11a   : > { %4086 = vcosq.f32 %v338_v21  ;;  %v433_v24 = vor.u32 4788187, %v432_v25  ;;  %v436_v50 = vcvt.s32.f32 %v429_v23 }
 0x11b   : > { %4088 = vsinq.f32 %v338_v21  ;;  %v4029_v21 = vld [vmem:[#allocation2 + $0x20] ss:$0 sps:$4 sm:$0x33]  }
 0x11c   : > { %v434_v29 = vand.u32 2147483647, %v433_v24  ;;  %v613_v23 = vsel %vm611_vm15, %v4029_v21, 0 }
 0x11d   : > { %3697 = vmatpush3.bf16.msra.mxu1 %v613_v23 }
 0x11e   : > { %v437_v32 = vmul.f32 %v436_v50, %v434_v29  ;;  %3702 = vmatprep.subr.bf16.mxu1 %v4272_v5 }
 0x120   : > { %v438_v34 = vxor.u32 2147483648, %v437_v32 }
 0x122   : > { %v439_v38 = vsel %vm356_vm3, %v438_v34, %v437_v32  ;;  %vm776_vm3 = vcmask 654336  }
 0x123   : > { %v442_v44 = vsel %vm4531_vm4, %v4477_v37, %v439_v38  ;;  %vm967_vm4 = vcmask 64512  }
 0x124   : > { %v4087_v42 = vpop.eup %4086  ;;  %4090 = vcosq.f32 %v442_v44 }
 0x125   : > { %v4089_v47 = vpop.eup %4088  ;;  %v350_v49 = vxor.u32 2147483648, %v4087_v42  ;;  %4092 = vsinq.f32 %v442_v44 }
 0x126   : > { %v347_v51 = vxor.u32 2147483648, %v4089_v47 }
 0x127   : > { %v351_v53 = vsel %vm349_vm5, %v350_v49, %v4089_v47  ;;  %vm4590_vm5 = vmpackc.low %vm967_vm4, %vm967_vm4 }
 0x128   : > { %v348_v46 = vsel %vm346_vm6, %v4087_v42, %v347_v51  ;;  %vm912_vm6 = vcmask 490496  }
 0x129   : > { %v352_v55 = vsel %vm345_vm7, %v348_v46, %v351_v53 }
 0x12a   : > { %v353_v45 = vsel %vm342_vm8, nan, %v352_v55 }
 0x12b   : > { %v462_v59 = vmul.f32 %v461_v43, %v353_v45 }
 0x12d   : > { %v464_v61 = vadd.f32 %v462_v59, %v4467_v27  ;;  %v466_v27 = vld [vmem:[#allocation5 + $0x8] sm:$0x7] }
 0x12e   : > { %v4091_v63 = vpop.eup %4090  ;;  %v477_v6 = vrot.slane %v466_v27, %v4446_v11  ;;  %v579_v44 = vrot.slane %v466_v27, %v4449_v12  ;;  %v585_v52 = vrot.slane %v466_v27, %v4458_v16 }
 0x12f   : > { %v4093_v0 = vpop.eup %4092  ;;  %v454_v1 = vxor.u32 2147483648, %v4091_v63 }
 0x130   : > { %v451_v2 = vxor.u32 2147483648, %v4093_v0 }
 0x131   : > { %v455_v13 = vsel %vm453_vm9, %v454_v1, %v4093_v0  ;;  %v590_v0 = vld [vmem:[#allocation5 + $0x10] sm:$0x7]  ;;  %vm1060_vm9 = vcmask 130048  }
 0x132   : > { %v452_v48 = vsel %vm450_vm10, %v4091_v63, %v451_v2  ;;  %v598_v1 = vrot.slane %v590_v0, %v4446_v11 }
 0x133   : > { %v456_v4 = vsel %vm449_vm11, %v452_v48, %v455_v13 }
 0x134   : > { %v457_v28 = vsel %vm446_vm12, nan, %v456_v4 }
 0x135   : > { %v463_v54 = vmul.f32 %v461_v43, %v457_v28 }
 0x137   : > { %v465_v56 = vadd.f32 %v463_v54, %v4475_v36 }
 0x139   : > { %v467_v58 = vpack.c.bf16 %v465_v56, %v464_v61 }
 0x13b   : > { %3691 = vmatmul.mubr.msk.bf16.vlgmr.msra.gmra.mrb[0].mxu0 %vm495_vm13, %v467_v58  ;;  %vm1230_vm13 = vcmask 1045504  }
 0x13c   : > { %3722 = vmatprep.mubr.msk.bf16.mxu0 %vm4273_vm1, %v4272_v5 }
 0x20e   : > { %v537_v7 = vpop.f32.mrb[0].mxu0 }
 0x20f   : > { %v538_v8 = vadd.f32 %v537_v7, %v477_v6  ;;  %v3692_v39 = vpop.f32.mrb[1].mxu0 }
 0x210   : > { %v540_v40 = vpop.f32.mrb[2].mxu0  ;;  %v4030_v39 = vld [vmem:[#allocation2 + $0x28] sm:$0xff]  }
 0x211   : > { %v541_v37 = vadd.f32 %v540_v40, %v477_v6  ;;  %v3693_v14 = vpop.f32.mrb[3].mxu0  ;;  %v545_v15 = vsel %vm544_vm14, %v538_v8, 0.0  ;;  %v554_v60 = vmul.f32 %v538_v8, %v538_v8  ;;  %v4031_v40 = vld [vmem:[#allocation2 + $0x30] sm:$0xff]  }
 0x212   : > { %546 = vadd.xlane.f32.xlu0 %v545_v15 }
 0x213   : > { %v548_v36 = vsel %vm544_vm14, %v541_v37, 0.0  ;;  %v556_v18 = vsel %vm544_vm14, %v554_v60, 0.0  ;;  %v555_v19 = vmul.f32 %v541_v37, %v541_v37 }
 0x214   : > { %549 = vadd.xlane.f32.xlu1 %v548_v36 }
 0x215   : > { %v559_v3 = vsel %vm544_vm14, %v555_v19, 0.0 }
 0x216   : > { %557 = vadd.xlane.f32.xlu0 %v556_v18 }
 0x21a   : > { %560 = vadd.xlane.f32.xlu0 %v559_v3 }
 0x29f   : > { %v547_v25 = vpop.xlane.xlu0 %546 }
 0x2a0   : > { %v552_v26 = vmul.f32 0.05, %v547_v25 }
 0x2a1   : > { %v550_v24 = vpop.xlane.xlu1 %549 }
 0x2a2   : > { %v564_v50 = vmul.f32 %v552_v26, %v552_v26  ;;  %v553_v30 = vmul.f32 0.05, %v550_v24  ;;  %v568_v47 = vsub.f32 %v538_v8, %v552_v26 }
 0x2a3   : > { %v558_v29 = vpop.xlane.xlu0 %557 }
 0x2a4   : > { %v562_v32 = vmul.f32 0.05, %v558_v29  ;;  %v565_v35 = vmul.f32 %v553_v30, %v553_v30  ;;  %v569_v43 = vsub.f32 %v541_v37, %v553_v30  ;;  %v4032_v37 = vld [vmem:[#allocation2 + $0x38] ss:$0 sps:$4 sm:$0xff]   ;;  %v691_v30 = vrot.slane %v590_v0, %v4449_v12 }
 0x2a5   : > { %v733_v14 = vsel %vm731_vm2, %v4032_v37, 0 }
 0x2a6   : > { %v566_v33 = vsub.f32 %v562_v32, %v564_v50 }
 0x2a7   : > { %v561_v34 = vpop.xlane.xlu0 %560 }
 0x2a8   : > { %v570_v22 = vadd.f32 1e-05, %v566_v33  ;;  %v563_v38 = vmul.f32 0.05, %v561_v34  ;;  %v697_v34 = vrot.slane %v590_v0, %v4458_v16 }
 0x2aa   : > { %4094 = vrsqrt.f32 %v570_v22  ;;  %v567_v41 = vsub.f32 %v563_v38, %v565_v35 }
 0x2ac   : > { %v571_v42 = vadd.f32 1e-05, %v567_v41 }
 0x2ae   : > { %4096 = vrsqrt.f32 %v571_v42 }
 0x2b4   : > { %v4095_v49 = vpop.eup %4094 }
 0x2b5   : > { %v574_v51 = vmul.f32 %v4095_v49, %v568_v47 }
 0x2b7   : > { %v580_v53 = vmul.f32 %v579_v44, %v574_v51 }
 0x2b8   : > { %v4097_v46 = vpop.eup %4096 }
 0x2b9   : > { %v575_v55 = vmul.f32 %v4097_v46, %v569_v43  ;;  %v586_v45 = vadd.f32 %v585_v52, %v580_v53  ;;  %v702_v53 = vld [vmem:[#allocation5 + $0x18] sm:$0x7] }
 0x2ba   : > { %v712_v46 = vrot.slane %v702_v53, %v4446_v11 }
 0x2bb   : > { %v581_v57 = vmul.f32 %v579_v44, %v575_v55  ;;  %v588_v61 = vmax.f32 %v586_v45, 0.0 }
 0x2bd   : > { %v587_v59 = vadd.f32 %v585_v52, %v581_v57 }
 0x2bf   : > { %v589_v62 = vmax.f32 %v587_v59, 0.0 }
 0x2c1   : > { %v591_v63 = vpack.c.bf16 %v589_v62, %v588_v61 }
 0x2c3   : > { %3699 = vmatmul.mubr.msk.bf16.vlgmr.msra.gmra.mrb[0].mxu1 %vm544_vm14, %v591_v63 }
 0x2c4   : > { %3708 = vmatprep.mubr.msk.bf16.mxu1 %vm4273_vm1, %v4272_v5  ;;  %3703 = vmatpush3.bf16.msra.mxu1 %v4030_v39 }
 0x2c5   : > { %3704 = vmatprep.subr.bf16.mxu1 %v4272_v5 }
 0x2c8   : > { %3705 = vmatpush3.bf16.msra.mxu1 %v4031_v40 }
 0x2c9   : > { %3706 = vmatprep.subr.bf16.mxu1 %v4272_v5 }
 0x2cc   : > { %3707 = vmatpush3.bf16.msra.mxu1 %v733_v14 }
 0x2cd   : > { %3733 = vmatprep.subr.bf16.mxu1 %v4272_v5 }
 0x396   : > { %v649_v2 = vpop.f32.mrb[0].mxu1 }
 0x397   : > { %v650_v13 = vadd.f32 %v649_v2, %v598_v1  ;;  %v3700_v48 = vpop.f32.mrb[1].mxu1 }
 0x398   : > { %v652_v4 = vpop.f32.mrb[2].mxu1 }
 0x399   : > { %v653_v28 = vadd.f32 %v652_v4, %v598_v1  ;;  %v3701_v54 = vpop.f32.mrb[3].mxu1  ;;  %v657_v56 = vsel %vm656_vm0, %v650_v13, 0.0  ;;  %v666_v58 = vmul.f32 %v650_v13, %v650_v13  ;;  %v4033_v4 = vld [vmem:[#allocation2 + $0x40] sm:$0xff]  }
 0x39a   : > { %658 = vadd.xlane.f32.xlu1 %v657_v56  ;;  %3713 = vmatpush3.bf16.msra.mxu0 %v4033_v4  ;;  %v4035_v54 = vld [vmem:[#allocation2 + $0x50] sm:$0xff]   ;;  %v4036_v56 = vld [vmem:[#allocation2 + $0x58] sm:$0xff]  }
 0x39b   : > { %v660_v27 = vsel %vm656_vm0, %v653_v28, 0.0  ;;  %v667_v6 = vmul.f32 %v653_v28, %v653_v28  ;;  %v668_v7 = vsel %vm656_vm0, %v666_v58, 0.0  ;;  %3714 = vmatprep.subr.bf16.mxu0 %v4272_v5  ;;  %v4037_v58 = vld [vmem:[#allocation2 + $0x60] sm:$0xff]  }
 0x39c   : > { %661 = vadd.xlane.f32.xlu0 %v660_v27  ;;  %v4134_v27 = vld [vmem:[%s4429_s19] sm:$0xff] }
 0x39d   : > { %v671_v8 = vsel %vm656_vm0, %v667_v6, 0.0  ;;  %v4135_v6 = vld [vmem:[%s4429_s19 + $0x8] sm:$0xff] }
 0x39e   : > { %669 = vadd.xlane.f32.xlu1 %v668_v7  ;;  %v4586_v7 = vpack.c.bf16 %v4135_v6, %v4134_v27 }
 0x3a0   : > { %672 = vadd.xlane.f32.xlu0 %v671_v8  ;;  %v1147_v8 = vld [vmem:[#allocation2 + $0x68] sm:$0xf] }
 0x427   : > { %v659_v15 = vpop.xlane.xlu1 %658 }
 0x428   : > { %v664_v60 = vmul.f32 0.025, %v659_v15 }
 0x429   : > { %v662_v36 = vpop.xlane.xlu0 %661 }
 0x42a   : > { %v665_v18 = vmul.f32 0.025, %v662_v36  ;;  %v676_v3 = vmul.f32 %v664_v60, %v664_v60  ;;  %v680_v32 = vsub.f32 %v650_v13, %v664_v60 }
 0x42b   : > { %v670_v19 = vpop.xlane.xlu1 %669 }
 0x42c   : > { %v674_v20 = vmul.f32 0.025, %v670_v19  ;;  %v677_v23 = vmul.f32 %v665_v18, %v665_v18  ;;  %v681_v35 = vsub.f32 %v653_v28, %v665_v18  ;;  %v4034_v28 = vld [vmem:[#allocation2 + $0x48] sm:$0xff]  }
 0x42d   : > { %v673_v21 = vpop.xlane.xlu0 %672  ;;  %3715 = vmatpush3.bf16.msra.mxu0 %v4034_v28 }
 0x42e   : > { %v678_v25 = vsub.f32 %v674_v20, %v676_v3  ;;  %v675_v26 = vmul.f32 0.025, %v673_v21  ;;  %3716 = vmatprep.subr.bf16.mxu0 %v4272_v5 }
 0x430   : > { %v682_v24 = vadd.f32 1e-05, %v678_v25  ;;  %v679_v29 = vsub.f32 %v675_v26, %v677_v23  ;;  %v811_v26 = vrot.slane %v702_v53, %v4449_v12 }
 0x431   : > { %3717 = vmatpush3.bf16.msra.mxu0 %v4035_v54 }
 0x432   : > { %4098 = vrsqrt.f32 %v682_v24  ;;  %v683_v50 = vadd.f32 1e-05, %v679_v29  ;;  %3718 = vmatprep.subr.bf16.mxu0 %v4272_v5 }
 0x434   : > { %4100 = vrsqrt.f32 %v683_v50  ;;  %v817_v50 = vrot.slane %v702_v53, %v4458_v16 }
 0x435   : > { %3719 = vmatpush3.bf16.msra.mxu0 %v4036_v56 }
 0x436   : > { %3720 = vmatprep.subr.bf16.mxu0 %v4272_v5 }
 0x439   : > { %3721 = vmatpush3.bf16.msra.mxu0 %v4037_v58 }
 0x43a   : > { %3931 = vmatprep.subr.msk.bf16.mxu0 %vm4590_vm5, %v4586_v7 }
 0x43c   : > { %v4099_v33 = vpop.eup %4098 }
 0x43d   : > { %v686_v22 = vmul.f32 %v4099_v33, %v680_v32 }
 0x43e   : > { %v4101_v38 = vpop.eup %4100 }
 0x43f   : > { %v687_v41 = vmul.f32 %v4101_v38, %v681_v35  ;;  %v692_v42 = vmul.f32 %v691_v30, %v686_v22 }
 0x441   : > { %v693_v44 = vmul.f32 %v691_v30, %v687_v41  ;;  %v698_v47 = vadd.f32 %v697_v34, %v692_v42 }
 0x443   : > { %v699_v49 = vadd.f32 %v697_v34, %v693_v44  ;;  %v700_v51 = vmax.f32 %v698_v47, 0.0 }
 0x445   : > { %v701_v52 = vmax.f32 %v699_v49, 0.0  ;;  %v4608_v49 = vld [vmem:[#allocation5 + $0x20] sm:$0x7] }
 0x447   : > { %v703_v43 = vpack.c.bf16 %v701_v52, %v700_v51  ;;  %v837_v51 = vrot.slane %v4608_v49, %v4446_v11  ;;  %v1049_v52 = vadd.s32 8, %v4443_v10 }
 0x449   : > { %3709 = vmatmul.mubr.msk.bf16.vlgmr.msra.gmra.mrb[4].mxu1 %vm656_vm0, %v703_v43  ;;  %v1051_v43 = vand.u32 127, %v216_v9 }
 0x44a   : > { %3735 = vmatprep.mubr.msk.bf16.mxu1 %vm4273_vm1, %v4272_v5 }
 0x44b   : > { %vm1053_vm7 = vcmp.eq.s32.totalorder %v1049_v52, %v1051_v43  ;;  %vm1052_vm8 = vcmp.eq.s32.totalorder %v4443_v10, %v1051_v43  ;;  %vm1082_vm10 = vcmp.lt.s32.totalorder %v4443_v10, %v1051_v43  ;;  %vm1083_vm11 = vcmp.lt.s32.totalorder %v1049_v52, %v1051_v43 }
 0x44c   : > { %vm3488_vm12 = vmpackc.low %vm1083_vm11, %vm1082_vm10 }
 0x51c   : > { %v769_v55 = vpop.f32.mrb[4].mxu1 }
 0x51d   : > { %v770_v57 = vadd.f32 %v769_v55, %v712_v46  ;;  %v3710_v45 = vpop.f32.mrb[5].mxu1 }
 0x51e   : > { %v772_v59 = vpop.f32.mrb[6].mxu1 }
 0x51f   : > { %v773_v61 = vadd.f32 %v772_v59, %v712_v46  ;;  %v3711_v62 = vpop.f32.mrb[7].mxu1  ;;  %v777_v63 = vsel %vm776_vm3, %v770_v57, 0.0  ;;  %v786_v0 = vmul.f32 %v770_v57, %v770_v57 }
 0x520   : > { %778 = vadd.xlane.f32.xlu1 %v777_v63 }
 0x521   : > { %v780_v1 = vsel %vm776_vm3, %v773_v61, 0.0  ;;  %v787_v2 = vmul.f32 %v773_v61, %v773_v61  ;;  %v788_v13 = vsel %vm776_vm3, %v786_v0, 0.0  ;;  %v3483_v0 = vsel %vm1053_vm7, 1.0, %v4272_v5 }
 0x522   : > { %781 = vadd.xlane.f32.xlu0 %v780_v1  ;;  %vm1691_vm7 = vcmask 1046528  }
 0x523   : > { %v791_v48 = vsel %vm776_vm3, %v787_v2, 0.0  ;;  %v3482_v2 = vsel %vm1052_vm8, 1.0, %v4272_v5 }
 0x524   : > { %789 = vadd.xlane.f32.xlu1 %v788_v13 }
 0x526   : > { %792 = vadd.xlane.f32.xlu0 %v791_v48 }
 0x5ad   : > { %v779_v39 = vpop.xlane.xlu1 %778 }
 0x5ae   : > { %v784_v40 = vmul.f32 0.0125, %v779_v39  ;;  %v1152_v39 = vsel %vm731_vm2, %v1147_v8, 0 }
 0x5af   : > { %v782_v37 = vpop.xlane.xlu0 %781 }
 0x5b0   : > { %v785_v14 = vmul.f32 0.0125, %v782_v37  ;;  %v796_v60 = vmul.f32 %v784_v40, %v784_v40  ;;  %v800_v24 = vsub.f32 %v770_v57, %v784_v40  ;;  %v4042_v40 = vld [vmem:[#allocation2 + $0x90] sm:$0xff]   ;;  %v4043_v37 = vld [vmem:[#allocation2 + $0x98] sm:$0xff]  }
 0x5b1   : > { %v790_v15 = vpop.xlane.xlu1 %789 }
 0x5b2   : > { %v794_v36 = vmul.f32 0.0125, %v790_v15  ;;  %v797_v19 = vmul.f32 %v785_v14, %v785_v14  ;;  %v801_v30 = vsub.f32 %v773_v61, %v785_v14  ;;  %v4044_v14 = vld [vmem:[#allocation2 + $0xa0] sm:$0xff]   ;;  %v4045_v15 = vld [vmem:[#allocation2 + $0xa8] sm:$0x3f]  }
 0x5b3   : > { %v793_v18 = vpop.xlane.xlu0 %792 }
 0x5b4   : > { %v798_v3 = vsub.f32 %v794_v36, %v796_v60  ;;  %v795_v20 = vmul.f32 0.0125, %v793_v18  ;;  %v1314_v60 = vsel %vm1230_vm13, %v4045_v15, 0 }
 0x5b6   : > { %v802_v21 = vadd.f32 1e-05, %v798_v3  ;;  %v799_v23 = vsub.f32 %v795_v20, %v797_v19 }
 0x5b8   : > { %4102 = vrsqrt.f32 %v802_v21  ;;  %v803_v25 = vadd.f32 1e-05, %v799_v23 }
 0x5ba   : > { %4104 = vrsqrt.f32 %v803_v25 }
 0x5c2   : > { %v4103_v29 = vpop.eup %4102 }
 0x5c3   : > { %v806_v32 = vmul.f32 %v4103_v29, %v800_v24 }
 0x5c4   : > { %v4105_v33 = vpop.eup %4104 }
 0x5c5   : > { %v807_v34 = vmul.f32 %v4105_v33, %v801_v30  ;;  %v812_v35 = vmul.f32 %v811_v26, %v806_v32 }
 0x5c7   : > { %v813_v22 = vmul.f32 %v811_v26, %v807_v34  ;;  %v818_v38 = vadd.f32 %v817_v50, %v812_v35 }
 0x5c9   : > { %v819_v41 = vadd.f32 %v817_v50, %v813_v22  ;;  %v820_v42 = vmax.f32 %v818_v38, 0.0 }
 0x5cb   : > { %v821_v44 = vmax.f32 %v819_v41, 0.0 }
 0x5cd   : > { %v823_v47 = vpack.c.bf16 %v821_v44, %v820_v42 }
 0x5cf   : > { %3723 = vmatmul.mubr.msk.bf16.vlgmr.msra.gmra.mrb[4].mxu0 %vm776_vm3, %v823_v47 }
 0x5d0   : > { %3934 = vmatpush3.bf16.xpose.msk.msra.mxu0 %vm4590_vm5, %v4586_v7  ;;  %3730 = vmatprep.mubr.msk.f32.mxu0 %vm967_vm4, %v4134_v27 }
 0x5d1   : > { %3739 = vmatprep.subr.bf16.mxu0 %v4272_v5 }
 0x5d7   : > { %3731 = vmatmul.mubr.msk.f32.vlgmr.msra.gmra.mrb[8].mxu0 %vm967_vm4, %v4135_v6  ;;  %v4280_v6 = vmov 1.0|1.0  }
 0x5d8   : > { %3741 = vmatprep.mubr.msk.bf16.mxu0 %vm4273_vm1, %v4272_v5  ;;  %3734 = vmatpush3.bf16.msk.msra.mxu1 %vm3488_vm12, %v4280_v6 }
 0x5d9   : > { %3745 = vmatprep.subr.bf16.mxu1 %v4272_v5  ;;  %3740 = vmatpush3.bf16.msra.mxu0 %v1152_v39 }
 0x5da   : > { %3757 = vmatprep.subr.bf16.mxu0 %v4272_v5 }
 0x5dc   : > { %3742 = vmatmul.mubr.msk.bf16.vlgmr.msra.gmra.mrb[12].mxu0 %vm967_vm4, %v4586_v7 }
 0x5dd   : > { %3765 = vmatprep.mubr.msk.bf16.mxu0 %vm4273_vm1, %v4272_v5  ;;  %3758 = vmatpush3.bf16.msra.mxu0 %v4042_v40 }
 0x5de   : > { %3759 = vmatprep.subr.bf16.mxu0 %v4272_v5 }
 0x5e1   : > { %3760 = vmatpush3.bf16.msra.mxu0 %v4043_v37 }
 0x5e2   : > { %3761 = vmatprep.subr.bf16.mxu0 %v4272_v5 }
 0x5e5   : > { %3762 = vmatpush3.bf16.msra.mxu0 %v4044_v14 }
 0x5e6   : > { %3763 = vmatprep.subr.bf16.mxu0 %v4272_v5 }
 0x5e9   : > { %3764 = vmatpush3.bf16.msra.mxu0 %v1314_v60 }
 0x5ea   : > { %3805 = vmatprep.subr.bf16.mxu0 %v4272_v5 }
 0x6a2   : > { %v905_v53 = vpop.f32.mrb[4].mxu0 }
 0x6a3   : > { %v4614_v46 = vadd.f32 %v905_v53, %v837_v51  ;;  %v3724_v55 = vpop.f32.mrb[5].mxu0 }
 0x6a4   : > { %v908_v57 = vpop.f32.mrb[6].mxu0 }
 0x6a5   : > { %v4616_v45 = vadd.f32 %v908_v57, %v837_v51  ;;  %v3725_v59 = vpop.f32.mrb[7].mxu0  ;;  %v913_v61 = vsel %vm912_vm6, %v4614_v46, 0.0  ;;  %v922_v62 = vmul.f32 %v4614_v46, %v4614_v46 }
 0x6a6   : > { %914 = vadd.xlane.f32.xlu1 %v913_v61 }
 0x6a7   : > { %v916_v9 = vsel %vm912_vm6, %v4616_v45, 0.0  ;;  %v923_v63 = vmul.f32 %v4616_v45, %v4616_v45  ;;  %v924_v1 = vsel %vm912_vm6, %v922_v62, 0.0  ;;  %v4038_v62 = vld [vmem:[#allocation2 + $0x70] sm:$0xff]  }
 0x6a8   : > { %917 = vadd.xlane.f32.xlu0 %v916_v9 }
 0x6a9   : > { %v927_v28 = vsel %vm912_vm6, %v923_v63, 0.0  ;;  %v947_v63 = vrot.slane %v4608_v49, %v4449_v12 }
 0x6aa   : > { %925 = vadd.xlane.f32.xlu1 %v924_v1  ;;  %v3732_v13 = vpop.f32.mrb[8].mxu0  ;;  %v4039_v1 = vld [vmem:[#allocation2 + $0x78] sm:$0xff]  }
 0x6ab   : > { %v1059_v48 = vmul.f32 %v3732_v13, %v3483_v0  ;;  %v1038_v4 = vpop.f32.mrb[9].mxu0  ;;  %v1077_v47 = vmul.f32 2.0, %v3732_v13  ;;  %v953_v13 = vrot.slane %v4608_v49, %v4458_v16 }
 0x6ac   : > { %v1058_v54 = vmul.f32 %v3482_v2, %v1038_v4  ;;  %928 = vadd.xlane.f32.xlu0 %v927_v28  ;;  %v1076_v41 = vmul.f32 2.0, %v1038_v4 }
 0x6ad   : > { %v1064_v56 = vsel %vm1060_vm9, %v1059_v48, 0.0 }
 0x6ae   : > { %v1061_v58 = vsel %vm1060_vm9, %v1058_v54, 0.0 }
 0x6af   : > { %1062 = vadd.xlane.f32.xlu1 %v1061_v58  ;;  %v1067_v27 = vadd.f32 %v1064_v56, %v1061_v58 }
 0x6b0   : > { %1065 = vadd.xlane.f32.xlu0 %v1064_v56  ;;  %v4040_v56 = vld [vmem:[#allocation2 + $0x80] sm:$0xff]  }
 0x6b1   : > { %v1068_v7 = vrot.slane %v1067_v27, 4 }
 0x6b3   : > { %v1069_v36 = vadd.f32 %v1068_v7, %v1067_v27 }
 0x6b5   : > { %v1070_v18 = vrot.slane %v1069_v36, 2 }
 0x6b7   : > { %v1071_v3 = vadd.f32 %v1070_v18, %v1069_v36 }
 0x6b9   : > { %v1072_v26 = vrot.slane %v1071_v3, 1 }
 0x6bb   : > { %v1073_v34 = vadd.f32 %v1072_v26, %v1071_v3 }
 0x733   : > { %v915_v19 = vpop.xlane.xlu1 %914 }
 0x734   : > { %v920_v20 = vmul.f32 0.016666668, %v915_v19 }
 0x735   : > { %v918_v21 = vpop.xlane.xlu0 %917 }
 0x736   : > { %v921_v23 = vmul.f32 0.016666668, %v918_v21  ;;  %v932_v24 = vmul.f32 %v920_v20, %v920_v20  ;;  %v936_v0 = vsub.f32 %v4614_v46, %v920_v20  ;;  %v4041_v46 = vld [vmem:[#allocation2 + $0x88] sm:$0x3f]   ;;  %v1188_v21 = vpop.f32.mrb[12].mxu0 }
 0x737   : > { %v926_v25 = vpop.xlane.xlu1 %925  ;;  %v1232_v49 = vsel %vm1230_vm13, %v4041_v46, 0 }
 0x738   : > { %v930_v29 = vmul.f32 0.016666668, %v926_v25  ;;  %v933_v30 = vmul.f32 %v921_v23, %v921_v23  ;;  %v937_v48 = vsub.f32 %v4616_v45, %v921_v23  ;;  %v3743_v23 = vpop.f32.mrb[13].mxu0 }
 0x739   : > { %v929_v50 = vpop.xlane.xlu0 %928  ;;  %v1191_v25 = vpop.f32.mrb[14].mxu0 }
 0x73a   : > { %v934_v32 = vsub.f32 %v930_v29, %v932_v24  ;;  %v931_v33 = vmul.f32 0.016666668, %v929_v50  ;;  %v3744_v26 = vpop.f32.mrb[15].mxu0  ;;  %v4046_v24 = vld [vmem:[#allocation2 + $0xb0] sm:$0xff]   ;;  %v4047_v29 = vld [vmem:[#allocation2 + $0xb8] sm:$0x7f]  }
 0x73b   : > { %v1693_v50 = vsel %vm1691_vm7, %v4047_v29, 0 }
 0x73c   : > { %v938_v35 = vadd.f32 1e-05, %v934_v32  ;;  %v935_v22 = vsub.f32 %v931_v33, %v933_v30  ;;  %v1063_v38 = vpop.xlane.xlu1 %1062 }
 0x73d   : > { %v1074_v42 = vadd.f32 %v1073_v34, %v1063_v38  ;;  %v1066_v44 = vpop.xlane.xlu0 %1065  ;;  %v4281_v38 = vmov 1966171168  }
 0x73e   : > { %4106 = vrsqrt.f32 %v938_v35  ;;  %v939_v51 = vadd.f32 1e-05, %v935_v22  ;;  %v1075_v52 = vadd.f32 %v1073_v34, %v1066_v44 }
 0x73f   : > { %v1078_v43 = vsub.f32 %v1074_v42, %v1076_v41  ;;  %v1366_v41 = vunpack.c.l.s4 %v4281_v38 }
 0x740   : > { %4108 = vrsqrt.f32 %v939_v51  ;;  %v1079_v53 = vsub.f32 %v1075_v52, %v1077_v47 }
 0x741   : > { %vm4646_vm4 = vcmp.le.f32.partialorder %v1078_v43, 1.0  ;;  %v1367_v47 = vunpack.c.0.s8 %v1366_v41  ;;  %v1364_v43 = vcombine.high %v1188_v21, %v1188_v21 }
 0x742   : > { %v3486_v57 = vsel %vm4646_vm4, 1.0, %v4272_v5  ;;  %vm4653_vm5 = vcmp.le.f32.partialorder %v1079_v53, 1.0  ;;  %v1413_v53 = vcombine.high %v1191_v25, %v1191_v25 }
 0x743   : > { %v3487_v61 = vsel %vm4653_vm5, 1.0, %v4272_v5  ;;  %v1370_v51 = vsub.s32 %v1367_v47, %v4443_v10 }
 0x744   : > { %v1093_v9 = vpack.c.bf16 %v3487_v61, %v3486_v57 }
 0x745   : > { %v1371_v55 = vrot.slane %v1188_v21, %v1370_v51 }
 0x746   : > { %3736 = vmatmul.mubr.msk.bf16.vlgmr.msra.gmra.mrb[8].mxu1 %vm1060_vm9, %v1093_v9  ;;  %v1378_v9 = vrot.slane %v1364_v43, %v1370_v51 }
 0x747   : > { %3746 = vmatpush3.bf16.msra.mxu1 %v4038_v62  ;;  %3753 = vmatprep.mubr.msk.bf16.mxu1 %vm4273_vm1, %v4272_v5  ;;  %v1945_v62 = vsub.s32 5, %v4443_v10  ;;  %v1387_v46 = vrot.slane %v1371_v55, %v1370_v51 }
 0x748   : > { %v4107_v2 = vpop.eup %4106  ;;  %3747 = vmatprep.subr.bf16.mxu1 %v4272_v5 }
 0x749   : > { %v942_v4 = vmul.f32 %v4107_v2, %v936_v0 }
 0x74a   : > { %v4109_v28 = vpop.eup %4108 }
 0x74b   : > { %v943_v54 = vmul.f32 %v4109_v28, %v937_v48  ;;  %3748 = vmatpush3.bf16.msra.mxu1 %v4039_v1  ;;  %v948_v58 = vmul.f32 %v947_v63, %v942_v4  ;;  %v1420_v1 = vrot.slane %v1191_v25, %v1370_v51  ;;  %v1379_v28 = vcombine.high %v1371_v55, %v1371_v55 }
 0x74c   : > { %3749 = vmatprep.subr.bf16.mxu1 %v4272_v5 }
 0x74d   : > { %v949_v27 = vmul.f32 %v947_v63, %v943_v54  ;;  %v954_v6 = vadd.f32 %v953_v13, %v948_v58  ;;  %v1380_v58 = vcombine.high %v1378_v9, %v1378_v9 }
 0x74f   : > { %3750 = vmatpush3.bf16.msra.mxu1 %v4040_v56  ;;  %v955_v8 = vadd.f32 %v953_v13, %v949_v27  ;;  %v956_v39 = vmax.f32 %v954_v6, 0.0  ;;  %v1427_v13 = vrot.slane %v1413_v53, %v1370_v51  ;;  %v1956_v56 = vsub.s32 6, %v4443_v10 }
 0x750   : > { %3751 = vmatprep.subr.bf16.mxu1 %v4272_v5  ;;  %v1428_v27 = vcombine.high %v1420_v1, %v1420_v1  ;;  %v1394_v6 = vrot.slane %v1378_v9, %v1370_v51 }
 0x751   : > { %v957_v40 = vmax.f32 %v955_v8, 0.0  ;;  %v958_v45 = vsel %vm912_vm6, %v956_v39, -inf  ;;  %v1429_v8 = vcombine.high %v1427_v13, %v1427_v13 }
 0x753   : > { %3752 = vmatpush3.bf16.msra.mxu1 %v1232_v49  ;;  %v959_v37 = vsel %vm912_vm6, %v957_v40, -inf  ;;  %v1195_v14 = vpack.c.bf16 %v957_v40, %v956_v39  ;;  %v1401_v39 = vrot.slane %v1379_v28, %v1370_v51  ;;  %v1967_v40 = vsub.s32 7, %v4443_v10  ;;  %v4048_v10 = vld [vmem:[#allocation2 + $0xc0] sm:$0xff]  }
 0x754   : > { %v960_v15 = vmax.f32 %v958_v45, %v959_v37  ;;  %3769 = vmatprep.subr.bf16.mxu1 %v4046_v24  ;;  %v1408_v45 = vrot.slane %v1380_v58, %v1370_v51  ;;  %v1436_v37 = vrot.slane %v1420_v1, %v1370_v51 }
 0x756   : > { %3754 = vmatmul.mubr.msk.bf16.vlgmr.msra.gmra.mrb[12].mxu1 %vm912_vm6, %v1195_v14  ;;  %v961_v60 = vrot.slane %v960_v15, 4  ;;  %v1409_v14 = vcombine.high %v1387_v46, %v1387_v46  ;;  %v1412_v23 = vcombine.high %v1408_v45, %v1408_v45  ;;  %v1458_v26 = vcombine.high %v1436_v37, %v1436_v37 }
 0x757   : > { %3770 = vmatpush3.bf16.msra.mxu1 %v4046_v24  ;;  %v4719_v41 = vrot.slane %v1436_v37, %v4446_v11 }
 0x758   : > { %v962_v7 = vmax.f32 %v960_v15, %v961_v60  ;;  %3935 = vmatprep.subr.msk.bf16.mxu1 %vm1691_vm7, %v4047_v29  ;;  %v1443_v15 = vrot.slane %v1427_v13, %v1370_v51  ;;  %v1450_v60 = vrot.slane %v1428_v27, %v1370_v51  ;;  %v1473_v24 = vrot.slane %v1409_v14, %v4446_v11 }
 0x759   : > { %v1493_v9 = vrot.slane %v1412_v23, %v4446_v11  ;;  %vm2303_vm7 = vcmask 1042434  }
 0x75a   : > { %v963_v36 = vrot.slane %v962_v7, 2  ;;  %v1459_v29 = vcombine.high %v1443_v15, %v1443_v15 }
 0x75b   : > { %3772 = vmatpush3.bf16.msra.mxu1 %v1693_v50  ;;  %v1460_v50 = vcombine.high %v1450_v60, %v1450_v60 }
 0x75c   : > { %v964_v18 = vmax.f32 %v962_v7, %v963_v36  ;;  %3849 = vmatprep.subr.bf16.mxu1 %v4272_v5  ;;  %v1410_v7 = vcombine.high %v1394_v6, %v1394_v6  ;;  %v1457_v36 = vrot.slane %v1429_v8, %v1370_v51  ;;  %v4727_v51 = vrot.slane %v1458_v26, %v4446_v11 }
 0x75e   : > { %v965_v19 = vrot.slane %v964_v18, 1  ;;  %v4733_v43 = vrot.slane %v1457_v36, %v4446_v11 }
 0x760   : > { %v966_v3 = vmax.f32 %v964_v18, %v965_v19  ;;  %v1411_v18 = vcombine.high %v1401_v39, %v1401_v39  ;;  %v1465_v19 = vrot.slane %v1387_v46, %v4446_v11 }
 0x762   : > { %v1277_v20 = vpack.c.bf16 %v966_v3, %v966_v3  ;;  %v4702_v3 = vrot.slane %v1394_v6, %v4446_v11  ;;  %v1477_v38 = vrot.slane %v1411_v18, %v4446_v11 }
 0x764   : > { %3766 = vmatmul.mubr.msk.bf16.vlgmr.msra.gmra.mrb[16].mxu0 %vm912_vm6, %v1277_v20  ;;  %v1286_v20 = vld [vmem:[#allocation5 + $0x28] sm:$0x1] }
 0x765   : > { %3813 = vmatprep.mubr.msk.bf16.mxu0 %vm4273_vm1, %v4272_v5  ;;  %3806 = vmatpush3.bf16.msra.mxu0 %v4048_v10 }
 0x766   : > { %3807 = vmatprep.subr.bf16.mxu0 %v4272_v5 }
 0x819   : > { %v1131_v30 = vpop.f32.mrb[8].mxu1 }
 0x81a   : > { %vm1138_vm8 = vcmp.lt.f32.partialorder %v1131_v30, 4.0  ;;  %v3737_v32 = vpop.f32.mrb[9].mxu1 }
 0x81b   : > { %vm1140_vm10 = vmand %vm4646_vm4, %vm1138_vm8  ;;  %v1134_v33 = vpop.f32.mrb[10].mxu1  ;;  %v4712_v32 = vrot.slane %v1408_v45, %v4446_v11  ;;  %vm1642_vm4 = vcmask 244736   ;;  %vm2305_vm8 = vcmask 1043459  }
 0x81c   : > { %v3491_v34 = vsel %vm1140_vm10, 1.0, %v4272_v5  ;;  %v3738_v35 = vpop.f32.mrb[11].mxu1  ;;  %vm1139_vm11 = vcmp.lt.f32.partialorder %v1134_v33, 4.0  ;;  %v4715_v33 = vrot.slane %v1410_v7, %v4446_v11  ;;  %vm2307_vm10 = vcmask 1044484  }
 0x81d   : > { %v1891_v22 = vrot.slane %v3491_v34, %v4446_v11  ;;  %v1913_v42 = vrot.slane %v3491_v34, %v4458_v16  ;;  %v1902_v44 = vrot.slane %v3491_v34, %v4449_v12  ;;  %v1924_v52 = vrot.slane %v3491_v34, %v4527_v31  ;;  %vm1141_vm12 = vmand %vm4653_vm5, %vm1139_vm11 }
 0x81e   : > { %v1935_v61 = vrot.slane %v3491_v34, %v4461_v17  ;;  %v1946_v54 = vrot.slane %v3491_v34, %v1945_v62  ;;  %v1957_v49 = vrot.slane %v3491_v34, %v1956_v56  ;;  %v4707_v59 = vsel %vm1141_vm12, 1.0, %v4272_v5 }
 0x81f   : > { %1897 = vbcast.lane.b32.xlu0 %v1891_v22, 264  ;;  %1893 = vbcast.lane.b32.xlu1 %v1891_v22, 256  ;;  %v1979_v47 = vrot.slane %v4707_v59, %v4446_v11  ;;  %v4759_v28 = vrot.slane %v4707_v59, %v4527_v31  ;;  %vm2301_vm5 = vcmask 1041409   ;;  %vm2309_vm11 = vcmask 1045509  }
 0x820   : > { %vm2311_vm12 = vcmask 1046534  }
 0x823   : > { %1915 = vbcast.lane.b32.xlu0 %v1913_v42, 256  ;;  %1904 = vbcast.lane.b32.xlu1 %v1902_v44, 256 }
 0x827   : > { %1926 = vbcast.lane.b32.xlu0 %v1924_v52, 256  ;;  %1908 = vbcast.lane.b32.xlu1 %v1902_v44, 264 }
 0x829   : > { %v1268_v57 = vpop.f32.mrb[12].mxu1 }
 0x82a   : > { %v4690_v63 = vadd.f32 %v1268_v57, %v1188_v21  ;;  %v3755_v0 = vpop.f32.mrb[13].mxu1  ;;  %v1968_v21 = vrot.slane %v3491_v34, %v1967_v40  ;;  %v1461_v34 = vcombine.high %v1457_v36, %v1457_v36  ;;  %v4737_v57 = vrot.slane %v1460_v50, %v4446_v11 }
 0x82b   : > { %v1271_v2 = vpop.f32.mrb[14].mxu1  ;;  %1937 = vbcast.lane.b32.xlu0 %v1935_v61, 256  ;;  %1919 = vbcast.lane.b32.xlu1 %v1913_v42, 264  ;;  %v4722_v42 = vrot.slane %v1450_v60, %v4446_v11 }
 0x82c   : > { %v1276_v48 = vadd.f32 %v1271_v2, %v1191_v25  ;;  %v3756_v4 = vpop.f32.mrb[15].mxu1  ;;  %v1469_v25 = vrot.slane %v1401_v39, %v4446_v11  ;;  %v1990_v2 = vrot.slane %v4707_v59, %v4449_v12  ;;  %v4751_v13 = vrot.slane %v1461_v34, %v4446_v11 }
 0x82d   : > { %v4755_v4 = vrot.slane %v4707_v59, %v4458_v16 }
 0x82f   : > { %1948 = vbcast.lane.b32.xlu0 %v1946_v54, 256  ;;  %1930 = vbcast.lane.b32.xlu1 %v1924_v52, 264  ;;  %v4730_v52 = vrot.slane %v1443_v15, %v4446_v11 }
 0x833   : > { %1959 = vbcast.lane.b32.xlu0 %v1957_v49, 256  ;;  %1941 = vbcast.lane.b32.xlu1 %v1935_v61, 264  ;;  %v4740_v61 = vrot.slane %v1459_v29, %v4446_v11 }
 0x837   : > { %v1350_v30 = vpop.f32.mrb[16].mxu0  ;;  %1970 = vbcast.lane.b32.xlu0 %v1968_v21, 256  ;;  %1952 = vbcast.lane.b32.xlu1 %v1946_v54, 264 }
 0x838   : > { %v1351_v35 = vadd.f32 %v1350_v30, %v1286_v20  ;;  %v3767_v22 = vpop.f32.mrb[17].mxu0 }
 0x839   : > { %v1353_v44 = vpop.f32.mrb[18].mxu0 }
 0x83a   : > { %v1359_v53 = vrot.slane %v1351_v35, %v4446_v11  ;;  %v3768_v55 = vpop.f32.mrb[19].mxu0 }
 0x83b   : > { %1963 = vbcast.lane.b32.xlu1 %v1957_v49, 264  ;;  %1981 = vbcast.lane.b32.xlu0 %v1979_v47, 256 }
 0x83c   : > { %v4744_v0 = vadd.f32 %v1359_v53, %v4690_v63  ;;  %v4746_v1 = vadd.f32 %v1359_v53, %v1276_v48  ;;  %v4763_v63 = vrot.slane %v4707_v59, %v4461_v17  ;;  %v4768_v48 = vrot.slane %v4707_v59, %v1945_v62 }
 0x83e   : > { %v1542_v54 = vsub.f32 %v4744_v0, %v1465_v19  ;;  %v1543_v58 = vsub.f32 %v4746_v1, %v1465_v19  ;;  %v1544_v46 = vsub.f32 %v4744_v0, %v1469_v25  ;;  %v1545_v27 = vsub.f32 %v4746_v1, %v1469_v25 }
 0x83f   : > { %1974 = vbcast.lane.b32.xlu1 %v1968_v21, 264  ;;  %1992 = vbcast.lane.b32.xlu0 %v1990_v2, 256  ;;  %v1546_v31 = vsub.f32 %v4744_v0, %v1473_v24  ;;  %v1547_v17 = vsub.f32 %v4746_v1, %v1473_v24  ;;  %v1548_v6 = vsub.f32 %v4744_v0, %v1477_v38 }
 0x840   : > { %v1574_v8 = vmax.f32 %v1542_v54, 0.0  ;;  %v1575_v62 = vmax.f32 %v1543_v58, 0.0  ;;  %v1576_v39 = vmax.f32 %v1544_v46, 0.0  ;;  %v1577_v49 = vmax.f32 %v1545_v27, 0.0 }
 0x841   : > { %v1578_v45 = vmax.f32 %v1546_v31, 0.0  ;;  %v1579_v37 = vmax.f32 %v1547_v17, 0.0  ;;  %v1549_v14 = vsub.f32 %v4746_v1, %v1477_v38  ;;  %v1580_v15 = vmax.f32 %v1548_v6, 0.0 }
 0x842   : > { %v1606_v60 = vpack.c.bf16 %v1575_v62, %v1574_v8  ;;  %v1607_v7 = vpack.c.bf16 %v1577_v49, %v1576_v39  ;;  %v1550_v36 = vsub.f32 %v4744_v0, %v4702_v3  ;;  %v1551_v18 = vsub.f32 %v4746_v1, %v4702_v3 }
 0x843   : > { %1985 = vbcast.lane.b32.xlu1 %v1979_v47, 264  ;;  %2003 = vbcast.lane.b32.xlu0 %v4755_v4, 256  ;;  %v1608_v19 = vpack.c.bf16 %v1579_v37, %v1578_v45  ;;  %v1581_v20 = vmax.f32 %v1549_v14, 0.0  ;;  %v1552_v21 = vsub.f32 %v4744_v0, %v4712_v32  ;;  %v1553_v23 = vsub.f32 %v4746_v1, %v4712_v32 }
 0x844   : > { %3773 = vmatprep.mubr.msk.bf16.mxu1 %vm1642_vm4, %v1606_v60  ;;  %v1582_v25 = vmax.f32 %v1550_v36, 0.0  ;;  %v1583_v26 = vmax.f32 %v1551_v18, 0.0  ;;  %v1554_v24 = vsub.f32 %v4744_v0, %v4715_v33  ;;  %v1555_v3 = vsub.f32 %v4746_v1, %v4715_v33 }
 0x845   : > { %3774 = vmatmul.mubr.msk.bf16.vlgmr.msra.gmra.mrb[16].mxu1 %vm1642_vm4, %v1607_v7  ;;  %v1609_v29 = vpack.c.bf16 %v1581_v20, %v1580_v15  ;;  %v4793_v50 = vmax.f32 %v1552_v21, 0.0  ;;  %v4795_v30 = vmax.f32 %v1553_v23, 0.0  ;;  %v1556_v34 = vsub.f32 %v4744_v0, %v1493_v9 }
 0x846   : > { %3777 = vmatprep.mubr.msk.bf16.mxu1 %vm1642_vm4, %v1608_v19  ;;  %v1610_v32 = vpack.c.bf16 %v1583_v26, %v1582_v25  ;;  %v1586_v35 = vmax.f32 %v1554_v24, 0.0  ;;  %v1587_v22 = vmax.f32 %v1555_v3, 0.0  ;;  %v1557_v38 = vsub.f32 %v4746_v1, %v1493_v9 }
 0x847   : > { %1996 = vbcast.lane.b32.xlu1 %v1990_v2, 264  ;;  %2014 = vbcast.lane.b32.xlu0 %v4759_v28, 256  ;;  %v1611_v33 = vpack.c.bf16 %v4795_v30, %v4793_v50  ;;  %v1588_v44 = vmax.f32 %v1556_v34, 0.0  ;;  %v1558_v47 = vsub.f32 %v4744_v0, %v4719_v41  ;;  %v1559_v53 = vsub.f32 %v4746_v1, %v4719_v41 }
 0x848   : > { %v1612_v55 = vpack.c.bf16 %v1587_v22, %v1586_v35  ;;  %v1589_v54 = vmax.f32 %v1557_v38, 0.0  ;;  %v1560_v58 = vsub.f32 %v4744_v0, %v4722_v42  ;;  %v1561_v9 = vsub.f32 %v4746_v1, %v4722_v42 }
 0x849   : > { %v1590_v2 = vmax.f32 %v1558_v47, 0.0  ;;  %v1591_v46 = vmax.f32 %v1559_v53, 0.0  ;;  %v1562_v27 = vsub.f32 %v4744_v0, %v4727_v51  ;;  %v1563_v31 = vsub.f32 %v4746_v1, %v4727_v51 }
 0x84a   : > { %v1613_v17 = vpack.c.bf16 %v1589_v54, %v1588_v44  ;;  %v1592_v6 = vmax.f32 %v1560_v58, 0.0  ;;  %v1593_v8 = vmax.f32 %v1561_v9, 0.0  ;;  %v1564_v41 = vsub.f32 %v4744_v0, %v4737_v57  ;;  %v4869_v44 = vld [vmem:[#allocation5 + $0x30] ss:$0 sm:$0xff] }
 0x84b   : > { %2007 = vbcast.lane.b32.xlu1 %v4755_v4, 264  ;;  %2025 = vbcast.lane.b32.xlu0 %v4763_v63, 256  ;;  %v1614_v62 = vpack.c.bf16 %v1591_v46, %v1590_v2  ;;  %v1594_v42 = vmax.f32 %v1562_v27, 0.0  ;;  %v1595_v39 = vmax.f32 %v1563_v31, 0.0  ;;  %v1565_v49 = vsub.f32 %v4746_v1, %v4737_v57 }
 0x84c   : > { %v1615_v45 = vpack.c.bf16 %v1593_v8, %v1592_v6  ;;  %v1596_v37 = vmax.f32 %v1564_v41, 0.0  ;;  %v1566_v51 = vsub.f32 %v4744_v0, %v4730_v52  ;;  %v1567_v14 = vsub.f32 %v4746_v1, %v4730_v52 }
 0x84d   : > { %3778 = vmatmul.mubr.msk.bf16.gmra.mrb[20].mxu1 %vm1642_vm4, %v1609_v29  ;;  %v1616_v15 = vpack.c.bf16 %v1595_v39, %v1594_v42  ;;  %v1597_v4 = vmax.f32 %v1565_v49, 0.0  ;;  %v1568_v60 = vsub.f32 %v4744_v0, %v4733_v43  ;;  %v1569_v7 = vsub.f32 %v4746_v1, %v4733_v43 }
 0x84e   : > { %3781 = vmatprep.mubr.msk.bf16.mxu1 %vm1642_vm4, %v1610_v32  ;;  %v1598_v57 = vmax.f32 %v1566_v51, 0.0  ;;  %v1599_v36 = vmax.f32 %v1567_v14, 0.0  ;;  %v1570_v18 = vsub.f32 %v4744_v0, %v4740_v61  ;;  %v1571_v52 = vsub.f32 %v4746_v1, %v4740_v61 }
 0x84f   : > { %2018 = vbcast.lane.b32.xlu1 %v4759_v28, 264  ;;  %2036 = vbcast.lane.b32.xlu0 %v4768_v48, 256  ;;  %v1617_v19 = vpack.c.bf16 %v1597_v4, %v1596_v37  ;;  %v1600_v20 = vmax.f32 %v1568_v60, 0.0  ;;  %v1601_v21 = vmax.f32 %v1569_v7, 0.0  ;;  %v1572_v43 = vsub.f32 %v4744_v0, %v4751_v13 }
 0x850   : > { %v1618_v23 = vpack.c.bf16 %v1599_v36, %v1598_v57  ;;  %v1602_v25 = vmax.f32 %v1570_v18, 0.0  ;;  %v1603_v26 = vmax.f32 %v1571_v52, 0.0  ;;  %v1573_v24 = vsub.f32 %v4746_v1, %v4751_v13  ;;  %v4051_v1 = vld [vmem:[#allocation2 + $0xd8] sm:$0x3f]  }
 0x851   : > { %v2045_v61 = vrot.slane %v4707_v59, %v1956_v56  ;;  %v1619_v3 = vpack.c.bf16 %v1601_v21, %v1600_v20  ;;  %v1604_v28 = vmax.f32 %v1572_v43, 0.0  ;;  %v2056_v0 = vrot.slane %v4707_v59, %v1967_v40  ;;  %v4049_v56 = vld [vmem:[#allocation2 + $0xc8] sm:$0xff]   ;;  %v4050_v40 = vld [vmem:[#allocation2 + $0xd0] sm:$0xff]  }
 0x852   : > { %v1620_v29 = vpack.c.bf16 %v1603_v26, %v1602_v25  ;;  %v1605_v50 = vmax.f32 %v1573_v24, 0.0  ;;  %3808 = vmatpush3.bf16.msra.mxu0 %v4049_v56  ;;  %v2350_v13 = vsel %vm1230_vm13, %v4051_v1, 0 }
 0x853   : > { %2029 = vbcast.lane.b32.xlu1 %v4763_v63, 264  ;;  %2047 = vbcast.lane.b32.xlu0 %v2045_v61, 256 }
 0x854   : > { %v1621_v30 = vpack.c.bf16 %v1605_v50, %v1604_v28  ;;  %3809 = vmatprep.subr.bf16.mxu0 %v4272_v5 }
 0x855   : > { %3782 = vmatmul.mubr.msk.bf16.gmra.mrb[24].mxu1 %vm1642_vm4, %v1611_v33 }
 0x856   : > { %3785 = vmatprep.mubr.msk.bf16.mxu1 %vm1642_vm4, %v1612_v55  ;;  %3810 = vmatpush3.bf16.msra.mxu0 %v4050_v40 }
 0x857   : > { %2040 = vbcast.lane.b32.xlu1 %v4768_v48, 264  ;;  %2058 = vbcast.lane.b32.xlu0 %v2056_v0, 256 }
 0x858   : > { %3811 = vmatprep.subr.bf16.mxu0 %v4272_v5 }
 0x85a   : > { %3812 = vmatpush3.bf16.msra.mxu0 %v2350_v13 }
 0x85b   : > { %2051 = vbcast.lane.b32.xlu1 %v2045_v61, 264  ;;  %3817 = vmatprep.subr.bf16.mxu0 %v4272_v5 }
 0x85d   : > { %3786 = vmatmul.mubr.msk.bf16.gmra.mrb[28].mxu1 %vm1642_vm4, %v1613_v17 }
 0x85e   : > { %3789 = vmatprep.mubr.msk.bf16.mxu1 %vm1642_vm4, %v1614_v62 }
 0x85f   : > { %2062 = vbcast.lane.b32.xlu1 %v2056_v0, 264 }
 0x865   : > { %3790 = vmatmul.mubr.msk.bf16.gmra.mrb[32].mxu1 %vm1642_vm4, %v1615_v45 }
 0x866   : > { %3793 = vmatprep.mubr.msk.bf16.mxu1 %vm1642_vm4, %v1616_v15 }
 0x86d   : > { %3794 = vmatmul.mubr.msk.bf16.gmra.mrb[36].mxu1 %vm1642_vm4, %v1617_v19 }
 0x86e   : > { %3797 = vmatprep.mubr.msk.bf16.mxu1 %vm1642_vm4, %v1618_v23 }
 0x875   : > { %3798 = vmatmul.mubr.msk.bf16.gmra.mrb[40].mxu1 %vm1642_vm4, %v1619_v3 }
 0x876   : > { %3801 = vmatprep.mubr.msk.bf16.mxu1 %vm1642_vm4, %v1620_v29 }
 0x87d   : > { %3802 = vmatmul.mubr.msk.bf16.gmra.mrb[44].mxu1 %vm1642_vm4, %v1621_v30  ;;  %vm2313_vm4 = vcmask 1047559  }
 0x87e   : > { %3857 = vmatprep.mubr.msk.bf16.mxu1 %vm4273_vm1, %v4272_v5 }
 0x891   : > { %v1894_v59 = vpop.permute.xlu1 %1893  ;;  %v1898_v48 = vpop.permute.xlu0 %1897 }
 0x895   : > { %v1905_v63 = vpop.permute.xlu1 %1904  ;;  %v1916_v32 = vpop.permute.xlu0 %1915 }
 0x899   : > { %v1909_v34 = vpop.permute.xlu1 %1908  ;;  %v1927_v22 = vpop.permute.xlu0 %1926 }
 0x89d   : > { %v1920_v35 = vpop.permute.xlu1 %1919  ;;  %v4867_v33 = vpop.permute.xlu0 %1937 }
 0x8a1   : > { %v1931_v38 = vpop.permute.xlu1 %1930  ;;  %v4875_v2 = vpop.permute.xlu0 %1948 }
 0x8a5   : > { %v4871_v47 = vpop.permute.xlu1 %1941  ;;  %v4881_v51 = vpop.permute.xlu0 %1959 }
 0x8a9   : > { %v4879_v8 = vpop.permute.xlu1 %1952  ;;  %v4893_v0 = vpop.permute.xlu0 %1970 }
 0x8ad   : > { %v4889_v19 = vpop.permute.xlu1 %1963 }
 0x918   : > { %v3775_v53 = vpop.f32.mrb[16].mxu1 }
 0x919   : > { %v1738_v55 = vadd.f32 %v3775_v53, %v4869_v44  ;;  %v1729_v54 = vpop.f32.mrb[17].mxu1 }
 0x91a   : > { %v1730_v58 = vadd.f32 %v4869_v44, %v1729_v54  ;;  %v3776_v9 = vpop.f32.mrb[18].mxu1 }
 0x91b   : > { %v1858_v46 = vmax.f32 %v1738_v55, 0.0  ;;  %v1741_v27 = vadd.f32 %v3776_v9, %v4869_v44  ;;  %v1732_v31 = vpop.f32.mrb[19].mxu1 }
 0x91c   : > { %v1856_v17 = vmax.f32 %v1730_v58, 0.0  ;;  %v1733_v6 = vadd.f32 %v4869_v44, %v1732_v31 }
 0x91d   : > { %v2066_v41 = vmul.f32 %v1905_v63, %v1858_v46  ;;  %v1859_v62 = vmax.f32 %v1741_v27, 0.0  ;;  %v4896_v63 = vpop.permute.xlu1 %1974 }
 0x91e   : > { %v2064_v42 = vmul.f32 %v1894_v59, %v1856_v17  ;;  %v1857_v39 = vmax.f32 %v1733_v6, 0.0 }
 0x91f   : > { %v2067_v49 = vmul.f32 %v1909_v34, %v1859_v62  ;;  %v2105_v14 = vsel %vm912_vm6, %v2066_v41, -inf }
 0x920   : > { %v2065_v45 = vmul.f32 %v1898_v48, %v1857_v39  ;;  %v3779_v37 = vpop.f32.mrb[20].mxu1  ;;  %v2096_v7 = vsel %vm912_vm6, %v2064_v42, -inf  ;;  %v4905_v39 = vpop.permute.xlu0 %1981 }
 0x921   : > { %v2106_v15 = vsel %vm912_vm6, %v2067_v49, -inf  ;;  %v1754_v4 = vadd.f32 %v3779_v37, %v4869_v44  ;;  %v1745_v60 = vpop.f32.mrb[21].mxu1 }
 0x922   : > { %v2107_v57 = vmax.f32 %v2105_v14, %v2106_v15  ;;  %v2097_v36 = vsel %vm912_vm6, %v2065_v45, -inf  ;;  %v1746_v18 = vadd.f32 %v4869_v44, %v1745_v60  ;;  %v3780_v52 = vpop.f32.mrb[22].mxu1 }
 0x923   : > { %v2098_v20 = vmax.f32 %v2096_v7, %v2097_v36  ;;  %v1862_v21 = vmax.f32 %v1754_v4, 0.0  ;;  %v1757_v43 = vadd.f32 %v3780_v52, %v4869_v44  ;;  %v1748_v23 = vpop.f32.mrb[23].mxu1 }
 0x924   : > { %v2108_v25 = vrot.slane %v2107_v57, 4  ;;  %v1860_v26 = vmax.f32 %v1746_v18, 0.0  ;;  %v1749_v24 = vadd.f32 %v4869_v44, %v1748_v23 }
 0x925   : > { %v2099_v61 = vrot.slane %v2098_v20, 4  ;;  %v2070_v3 = vmul.f32 %v1927_v22, %v1862_v21  ;;  %v1863_v28 = vmax.f32 %v1757_v43, 0.0 }
 0x926   : > { %v2109_v29 = vmax.f32 %v2107_v57, %v2108_v25  ;;  %v2068_v50 = vmul.f32 %v1916_v32, %v1860_v26  ;;  %v1861_v30 = vmax.f32 %v1749_v24, 0.0  ;;  %v4909_v57 = vpop.permute.xlu1 %1985 }
 0x927   : > { %v2100_v10 = vmax.f32 %v2098_v20, %v2099_v61  ;;  %v2071_v56 = vmul.f32 %v1931_v38, %v1863_v28  ;;  %v2123_v59 = vsel %vm912_vm6, %v2070_v3, -inf }
 0x928   : > { %v2110_v40 = vrot.slane %v2109_v29, 2  ;;  %v2069_v1 = vmul.f32 %v1920_v35, %v1861_v30  ;;  %v3783_v13 = vpop.f32.mrb[24].mxu1  ;;  %v2114_v34 = vsel %vm912_vm6, %v2068_v50, -inf }
 0x929   : > { %v2101_v48 = vrot.slane %v2100_v10, 2  ;;  %v2124_v22 = vsel %vm912_vm6, %v2071_v56, -inf  ;;  %v1770_v53 = vadd.f32 %v3783_v13, %v4869_v44  ;;  %v1761_v32 = vpop.f32.mrb[25].mxu1 }
 0x92a   : > { %v2111_v55 = vmax.f32 %v2109_v29, %v2110_v40  ;;  %v2125_v54 = vmax.f32 %v2123_v59, %v2124_v22  ;;  %v2115_v38 = vsel %vm912_vm6, %v2069_v1, -inf  ;;  %v1762_v58 = vadd.f32 %v4869_v44, %v1761_v32  ;;  %v3784_v9 = vpop.f32.mrb[26].mxu1 }
 0x92b   : > { %v2102_v35 = vmax.f32 %v2100_v10, %v2101_v48  ;;  %v2116_v46 = vmax.f32 %v2114_v34, %v2115_v38  ;;  %v1866_v27 = vmax.f32 %v1770_v53, 0.0  ;;  %v1773_v31 = vadd.f32 %v3784_v9, %v4869_v44  ;;  %v1764_v17 = vpop.f32.mrb[27].mxu1  ;;  %v1993_v10 = vpop.permute.xlu0 %1992 }
 0x92c   : > { %v2112_v6 = vrot.slane %v2111_v55, 1  ;;  %v2126_v41 = vrot.slane %v2125_v54, 4  ;;  %v1864_v62 = vmax.f32 %v1762_v58, 0.0  ;;  %v1765_v42 = vadd.f32 %v4869_v44, %v1764_v17  ;;  %v1997_v53 = vpop.permute.xlu1 %1996 }
 0x92d   : > { %v2103_v49 = vrot.slane %v2102_v35, 1  ;;  %v2117_v45 = vrot.slane %v2116_v46, 4  ;;  %v2074_v37 = vmul.f32 %v4875_v2, %v1866_v27  ;;  %v1867_v14 = vmax.f32 %v1773_v31, 0.0 }
 0x92e   : > { %v2113_v15 = vmax.f32 %v2111_v55, %v2112_v6  ;;  %v2127_v4 = vmax.f32 %v2125_v54, %v2126_v41  ;;  %v2072_v60 = vmul.f32 %v4867_v33, %v1864_v62  ;;  %v1865_v7 = vmax.f32 %v1765_v42, 0.0 }
 0x92f   : > { %v2104_v36 = vmax.f32 %v2102_v35, %v2103_v49  ;;  %v2118_v18 = vmax.f32 %v2116_v46, %v2117_v45  ;;  %v2141_v52 = vsel %vm912_vm6, %v2074_v37, -inf  ;;  %v2075_v20 = vmul.f32 %v4879_v8, %v1867_v14  ;;  %v4925_v45 = vpop.permute.xlu0 %2003 }
 0x930   : > { %v2242_v21 = vpack.c.bf16 %v2113_v15, %v2113_v15  ;;  %v2128_v43 = vrot.slane %v2127_v4, 2  ;;  %v2132_v23 = vsel %vm912_vm6, %v2072_v60, -inf  ;;  %v2073_v2 = vmul.f32 %v4871_v47, %v1865_v7  ;;  %v3787_v25 = vpop.f32.mrb[28].mxu1 }
 0x931   : > { %v2241_v26 = vpack.c.bf16 %v2104_v36, %v2104_v36  ;;  %v2119_v24 = vrot.slane %v2118_v18, 2  ;;  %v2142_v33 = vsel %vm912_vm6, %v2075_v20, -inf  ;;  %v1786_v61 = vadd.f32 %v3787_v25, %v4869_v44  ;;  %v1777_v3 = vpop.f32.mrb[29].mxu1  ;;  %v4930_v20 = vpop.permute.xlu1 %2007 }
 0x932   : > { %v2286_v28 = vunpack.c.l.b16 %v2242_v21  ;;  %v2129_v29 = vmax.f32 %v2127_v4, %v2128_v43  ;;  %v2143_v50 = vmax.f32 %v2141_v52, %v2142_v33  ;;  %v2133_v8 = vsel %vm912_vm6, %v2073_v2, -inf  ;;  %v3788_v30 = vpop.f32.mrb[30].mxu1 }
 0x933   : > { %v2285_v56 = vunpack.c.l.b16 %v2241_v26  ;;  %v2120_v40 = vmax.f32 %v2118_v18, %v2119_v24  ;;  %v2134_v59 = vmax.f32 %v2132_v23, %v2133_v8  ;;  %v1870_v47 = vmax.f32 %v1786_v61, 0.0  ;;  %v1780_v1 = vpop.f32.mrb[31].mxu1 }
 0x934   : > { %v2130_v13 = vrot.slane %v2129_v29, 1  ;;  %v2144_v48 = vrot.slane %v2143_v50, 4  ;;  %v1778_v34 = vadd.f32 %v4869_v44, %v1777_v3  ;;  %v1789_v22 = vadd.f32 %v3788_v30, %v4869_v44 }
 0x935   : > { %v2302_v32 = vsel %vm2301_vm5, %v2286_v28, %v2285_v56  ;;  %v2121_v55 = vrot.slane %v2120_v40, 1  ;;  %v2135_v54 = vrot.slane %v2134_v59, 4  ;;  %v2078_v38 = vmul.f32 %v4893_v0, %v1870_v47 }
 0x936   : > { %v2131_v58 = vmax.f32 %v2129_v29, %v2130_v13  ;;  %v2145_v9 = vmax.f32 %v2143_v50, %v2144_v48  ;;  %v1868_v35 = vmax.f32 %v1778_v34, 0.0  ;;  %v1871_v46 = vmax.f32 %v1789_v22, 0.0  ;;  %v2019_v34 = vpop.permute.xlu1 %2018 }
 0x937   : > { %v2122_v27 = vmax.f32 %v2120_v40, %v2121_v55  ;;  %v2136_v31 = vmax.f32 %v2134_v59, %v2135_v54  ;;  %v1781_v17 = vadd.f32 %v4869_v44, %v1780_v1  ;;  %v2159_v36 = vsel %vm912_vm6, %v2078_v38, -inf }
 0x938   : > { %v2244_v6 = vpack.c.bf16 %v2131_v58, %v2131_v58  ;;  %v2146_v41 = vrot.slane %v2145_v9, 2  ;;  %v2076_v62 = vmul.f32 %v4881_v51, %v1868_v35  ;;  %v2079_v42 = vmul.f32 %v4896_v63, %v1871_v46  ;;  %v3791_v49 = vpop.f32.mrb[32].mxu1 }
 0x939   : > { %v2243_v37 = vpack.c.bf16 %v2122_v27, %v2122_v27  ;;  %v2137_v0 = vrot.slane %v2136_v31, 2  ;;  %v1869_v14 = vmax.f32 %v1781_v17, 0.0  ;;  %v1802_v15 = vadd.f32 %v3791_v49, %v4869_v44  ;;  %v1793_v4 = vpop.f32.mrb[33].mxu1 }
 0x93a   : > { %v2288_v60 = vunpack.c.l.b16 %v2244_v6  ;;  %v2147_v7 = vmax.f32 %v2145_v9, %v2146_v41  ;;  %v2160_v18 = vsel %vm912_vm6, %v2079_v42, -inf  ;;  %v3792_v52 = vpop.f32.mrb[34].mxu1  ;;  %v2150_v2 = vsel %vm912_vm6, %v2076_v62, -inf }
 0x93b   : > { %v2287_v51 = vunpack.c.l.b16 %v2243_v37  ;;  %v2138_v63 = vmax.f32 %v2136_v31, %v2137_v0  ;;  %v2161_v21 = vmax.f32 %v2159_v36, %v2160_v18  ;;  %v2077_v43 = vmul.f32 %v4889_v19, %v1869_v14  ;;  %v1796_v23 = vpop.f32.mrb[35].mxu1  ;;  %v2015_v19 = vpop.permute.xlu0 %2014 }
 0x93c   : > { %v1874_v25 = vmax.f32 %v1802_v15, 0.0  ;;  %v1794_v26 = vadd.f32 %v4869_v44, %v1793_v4  ;;  %v1805_v24 = vadd.f32 %v3792_v52, %v4869_v44  ;;  %v2148_v29 = vrot.slane %v2147_v7, 1  ;;  %v4954_v18 = vpop.permute.xlu1 %2029 }
 0x93d   : > { %v2304_v33 = vsel %vm2303_vm7, %v2287_v51, %v2302_v32  ;;  %v2139_v61 = vrot.slane %v2138_v63, 1  ;;  %v2162_v3 = vrot.slane %v2161_v21, 4  ;;  %v2151_v28 = vsel %vm912_vm6, %v2077_v43, -inf }
 0x93e   : > { %v2306_v50 = vsel %vm2305_vm8, %v2288_v60, %v2304_v33  ;;  %v2152_v8 = vmax.f32 %v2150_v2, %v2151_v28  ;;  %v2082_v30 = vmul.f32 %v1993_v10, %v1874_v25  ;;  %v1872_v59 = vmax.f32 %v1794_v26, 0.0 }
 0x93f   : > { %v2140_v56 = vmax.f32 %v2138_v63, %v2139_v61  ;;  %v2163_v40 = vmax.f32 %v2161_v21, %v2162_v3  ;;  %v1875_v47 = vmax.f32 %v1805_v24, 0.0  ;;  %v1797_v13 = vadd.f32 %v4869_v44, %v1796_v23  ;;  %v2026_v49 = vpop.permute.xlu0 %2025 }
 0x940   : > { %v2153_v1 = vrot.slane %v2152_v8, 4  ;;  %v3795_v48 = vpop.f32.mrb[36].mxu1  ;;  %v2080_v55 = vmul.f32 %v4905_v39, %v1872_v59  ;;  %v4941_v58 = vmax.f32 %v2147_v7, %v2148_v29  ;;  %v2177_v17 = vsel %vm912_vm6, %v2082_v30, -inf }
 0x941   : > { %v2245_v22 = vpack.c.bf16 %v2140_v56, %v2140_v56  ;;  %v2164_v32 = vrot.slane %v2163_v40, 2  ;;  %v2083_v54 = vmul.f32 %v1997_v53, %v1875_v47  ;;  %v1809_v38 = vpop.f32.mrb[37].mxu1  ;;  %v1873_v9 = vmax.f32 %v1797_v13, 0.0 }
 0x942   : > { %v2154_v10 = vmax.f32 %v2152_v8, %v2153_v1  ;;  %v1818_v35 = vadd.f32 %v3795_v48, %v4869_v44  ;;  %v3796_v46 = vpop.f32.mrb[38].mxu1  ;;  %v2168_v0 = vsel %vm912_vm6, %v2080_v55, -inf  ;;  %v1810_v14 = vadd.f32 %v4869_v44, %v1809_v38 }
 0x943   : > { %v2289_v27 = vunpack.c.l.b16 %v2245_v22  ;;  %v2165_v31 = vmax.f32 %v2163_v40, %v2164_v32  ;;  %v2178_v6 = vsel %vm912_vm6, %v2083_v54, -inf  ;;  %v1812_v41 = vpop.f32.mrb[39].mxu1  ;;  %v2081_v39 = vmul.f32 %v4909_v57, %v1873_v9  ;;  %v2037_v30 = vpop.permute.xlu0 %2036 }
 0x944   : > { %v2155_v62 = vrot.slane %v2154_v10, 2  ;;  %v2179_v42 = vmax.f32 %v2177_v17, %v2178_v6  ;;  %v1878_v53 = vmax.f32 %v1818_v35, 0.0  ;;  %v1821_v15 = vadd.f32 %v3796_v46, %v4869_v44 }
 0x945   : > { %v4948_v37 = vsel %vm2307_vm10, %v2289_v27, %v2306_v50  ;;  %v2166_v4 = vrot.slane %v2165_v31, 1  ;;  %v2169_v36 = vsel %vm912_vm6, %v2081_v39, -inf  ;;  %v1876_v51 = vmax.f32 %v1810_v14, 0.0 }
 0x946   : > { %v2156_v60 = vmax.f32 %v2154_v10, %v2155_v62  ;;  %v2180_v7 = vrot.slane %v2179_v42, 4  ;;  %v2170_v52 = vmax.f32 %v2168_v0, %v2169_v36  ;;  %v2086_v57 = vmul.f32 %v2015_v19, %v1878_v53 }
 0x947   : > { %v1879_v63 = vmax.f32 %v1821_v15, 0.0  ;;  %v1813_v23 = vadd.f32 %v4869_v44, %v1812_v41  ;;  %v2246_v25 = vpack.c.bf16 %v4941_v58, %v4941_v58  ;;  %v2084_v24 = vmul.f32 %v4925_v45, %v1876_v51  ;;  %v4975_v39 = vpop.permute.xlu0 %2047 }
 0x948   : > { %v2157_v21 = vrot.slane %v2156_v60, 1  ;;  %v2181_v43 = vmax.f32 %v2179_v42, %v2180_v7  ;;  %v3799_v2 = vpop.f32.mrb[40].mxu1  ;;  %v2171_v26 = vrot.slane %v2170_v52, 4  ;;  %v4963_v19 = vmax.f32 %v2165_v31, %v2166_v4 }
 0x949   : > { %v2087_v33 = vmul.f32 %v2019_v34, %v1879_v63  ;;  %v1825_v61 = vpop.f32.mrb[41].mxu1  ;;  %v1877_v29 = vmax.f32 %v1813_v23, 0.0  ;;  %v1834_v50 = vadd.f32 %v3799_v2, %v4869_v44  ;;  %v2195_v40 = vsel %vm912_vm6, %v2086_v57, -inf  ;;  %v2041_v34 = vpop.permute.xlu1 %2040 }
 0x94a   : > { %v4960_v3 = vmax.f32 %v2156_v60, %v2157_v21  ;;  %v2182_v28 = vrot.slane %v2181_v43, 2  ;;  %v3800_v8 = vpop.f32.mrb[42].mxu1  ;;  %v2172_v56 = vmax.f32 %v2170_v52, %v2171_v26  ;;  %v2186_v45 = vsel %vm912_vm6, %v2084_v24, -inf }
 0x94b   : > { %v2196_v59 = vsel %vm912_vm6, %v2087_v33, -inf  ;;  %v1828_v47 = vpop.f32.mrb[43].mxu1  ;;  %v2085_v48 = vmul.f32 %v4930_v20, %v1877_v29  ;;  %v1882_v32 = vmax.f32 %v1834_v50, 0.0  ;;  %v1826_v55 = vadd.f32 %v4869_v44, %v1825_v61 }
 0x94c   : > { %v2183_v1 = vmax.f32 %v2181_v43, %v2182_v28  ;;  %v2197_v13 = vmax.f32 %v2195_v40, %v2196_v59  ;;  %v2173_v22 = vrot.slane %v2172_v56, 2  ;;  %v1837_v54 = vadd.f32 %v3800_v8, %v4869_v44  ;;  %v2059_v40 = vpop.permute.xlu0 %2058 }
 0x94d   : > { %v2247_v38 = vpack.c.bf16 %v4960_v3, %v4960_v3  ;;  %v2187_v35 = vsel %vm912_vm6, %v2085_v48, -inf  ;;  %v2090_v31 = vmul.f32 %v2037_v30, %v1882_v32  ;;  %v1880_v17 = vmax.f32 %v1826_v55, 0.0  ;;  %v2052_v51 = vpop.permute.xlu1 %2051 }
 0x94e   : > { %v2184_v10 = vrot.slane %v2183_v1, 1  ;;  %v2198_v9 = vrot.slane %v2197_v13, 4  ;;  %v2174_v46 = vmax.f32 %v2172_v56, %v2173_v22  ;;  %v2188_v27 = vmax.f32 %v2186_v45, %v2187_v35 }
 0x94f   : > { %v1883_v41 = vmax.f32 %v1837_v54, 0.0  ;;  %v1829_v62 = vadd.f32 %v4869_v44, %v1828_v47  ;;  %v2213_v14 = vsel %vm912_vm6, %v2090_v31, -inf  ;;  %v2088_v15 = vmul.f32 %v2026_v49, %v1880_v17 }
 0x950   : > { %v2185_v6 = vmax.f32 %v2183_v1, %v2184_v10  ;;  %v2199_v20 = vmax.f32 %v2197_v13, %v2198_v9  ;;  %v3803_v42 = vpop.f32.mrb[44].mxu1  ;;  %v2175_v53 = vrot.slane %v2174_v46, 1  ;;  %v2189_v0 = vrot.slane %v2188_v27, 4 }
 0x951   : > { %v1841_v4 = vpop.f32.mrb[45].mxu1  ;;  %v2091_v36 = vmul.f32 %v2041_v34, %v1883_v41  ;;  %v1881_v52 = vmax.f32 %v1829_v62, 0.0  ;;  %v2204_v43 = vsel %vm912_vm6, %v2088_v15, -inf  ;;  %v1850_v23 = vadd.f32 %v3803_v42, %v4869_v44  ;;  %v2063_v22 = vpop.permute.xlu1 %2062 }
 0x952   : > { %v2250_v60 = vpack.c.bf16 %v2185_v6, %v2185_v6  ;;  %v2200_v7 = vrot.slane %v2199_v20, 2  ;;  %v3804_v57 = vpop.f32.mrb[46].mxu1  ;;  %v2176_v63 = vmax.f32 %v2174_v46, %v2175_v53  ;;  %v2190_v21 = vmax.f32 %v2188_v27, %v2189_v0 }
 0x953   : > { %v1844_v2 = vpop.f32.mrb[47].mxu1  ;;  %v2214_v49 = vsel %vm912_vm6, %v2091_v36, -inf  ;;  %v2089_v33 = vmul.f32 %v4954_v18, %v1881_v52  ;;  %v1886_v29 = vmax.f32 %v1850_v23, 0.0  ;;  %v1842_v30 = vadd.f32 %v4869_v44, %v1841_v4 }
 0x954   : > { %v2294_v26 = vunpack.c.l.b16 %v2250_v60  ;;  %v2201_v24 = vmax.f32 %v2199_v20, %v2200_v7  ;;  %v2249_v61 = vpack.c.bf16 %v2176_v63, %v2176_v63  ;;  %v2191_v3 = vrot.slane %v2190_v21, 2 }
 0x955   : > { %v2215_v28 = vmax.f32 %v2213_v14, %v2214_v49  ;;  %v2205_v8 = vsel %vm912_vm6, %v2089_v33, -inf  ;;  %v1853_v56 = vadd.f32 %v3804_v57, %v4869_v44  ;;  %v2290_v18 = vunpack.c.l.b16 %v2246_v25 }
 0x956   : > { %v2202_v50 = vrot.slane %v2201_v24, 1  ;;  %v2293_v59 = vunpack.c.l.b16 %v2249_v61  ;;  %v2192_v47 = vmax.f32 %v2190_v21, %v2191_v3  ;;  %v2206_v45 = vmax.f32 %v2204_v43, %v2205_v8 }
 0x957   : > { %v2216_v1 = vrot.slane %v2215_v28, 4  ;;  %v2094_v48 = vmul.f32 %v2059_v40, %v1886_v29  ;;  %v1887_v34 = vmax.f32 %v1853_v56, 0.0  ;;  %v2248_v9 = vpack.c.bf16 %v4963_v19, %v4963_v19 }
 0x958   : > { %v2203_v13 = vmax.f32 %v2201_v24, %v2202_v50  ;;  %v2315_v32 = vsel %vm2301_vm5, %v2294_v26, %v2293_v59  ;;  %v2193_v55 = vrot.slane %v2192_v47, 1  ;;  %v2207_v10 = vrot.slane %v2206_v45, 4 }
 0x959   : > { %v2217_v54 = vmax.f32 %v2215_v28, %v2216_v1  ;;  %v2291_v35 = vunpack.c.l.b16 %v2247_v38  ;;  %v1884_v46 = vmax.f32 %v1842_v30, 0.0  ;;  %v2095_v27 = vmul.f32 %v2063_v22, %v1887_v34 }
 0x95a   : > { %v2194_v31 = vmax.f32 %v2192_v47, %v2193_v55  ;;  %v2208_v6 = vmax.f32 %v2206_v45, %v2207_v10  ;;  %v1845_v58 = vadd.f32 %v4869_v44, %v1844_v2  ;;  %v2252_v25 = vpack.c.bf16 %v2203_v13, %v2203_v13  ;;  %v2240_v10 = vld [vmem:[#allocation5 + $0x38] sm:$0x7] }
 0x95b   : > { %v2218_v17 = vrot.slane %v2217_v54, 2  ;;  %v2231_v20 = vsel %vm912_vm6, %v2094_v48, -inf  ;;  %v2232_v41 = vsel %vm912_vm6, %v2095_v27, -inf  ;;  %v2310_v62 = vsel %vm2309_vm11, %v2290_v18, %v4948_v37 }
 0x95c   : > { %v2251_v42 = vpack.c.bf16 %v2194_v31, %v2194_v31  ;;  %v2209_v0 = vrot.slane %v2208_v6, 2  ;;  %v2233_v19 = vmax.f32 %v2231_v20, %v2232_v41  ;;  %v2292_v38 = vunpack.c.l.b16 %v2248_v9 }
 0x95d   : > { %v2219_v53 = vmax.f32 %v2217_v54, %v2218_v17  ;;  %v2092_v14 = vmul.f32 %v4975_v39, %v1884_v46  ;;  %v1885_v15 = vmax.f32 %v1845_v58, 0.0  ;;  %v2312_v4 = vsel %vm2311_vm12, %v2291_v35, %v2310_v62 }
 0x95e   : > { %v2295_v60 = vunpack.c.l.b16 %v2251_v42  ;;  %v2210_v7 = vmax.f32 %v2208_v6, %v2209_v0  ;;  %v2234_v36 = vrot.slane %v2233_v19, 4  ;;  %v2296_v52 = vunpack.c.l.b16 %v2252_v25  ;;  %v4053_v0 = vld [vmem:[#allocation2 + $0xe8] ss:$0 sps:$4 sm:$0x33]  }
 0x95f   : > { %v2220_v44 = vrot.slane %v2219_v53, 1  ;;  %v2093_v57 = vmul.f32 %v2052_v51, %v1885_v15  ;;  %v2314_v63 = vsel %vm2313_vm4, %v2292_v38, %v2312_v4  ;;  %v2222_v39 = vsel %vm912_vm6, %v2092_v14, -inf }
 0x960   : > { %v2316_v37 = vsel %vm2303_vm7, %v2295_v60, %v2315_v32  ;;  %v2211_v43 = vrot.slane %v2210_v7, 1  ;;  %v2235_v23 = vmax.f32 %v2233_v19, %v2234_v36  ;;  %v2268_v9 = vrot.slane %v2240_v10, %v4446_v11 }
 0x961   : > { %v2221_v21 = vmax.f32 %v2219_v53, %v2220_v44  ;;  %v2317_v2 = vsel %vm2305_vm8, %v2296_v52, %v2316_v37  ;;  %v2223_v26 = vsel %vm912_vm6, %v2093_v57, -inf  ;;  %v4052_v53 = vld [vmem:[#allocation2 + $0xe0] sm:$0xff]   ;;  %v2459_v19 = vsel %vm611_vm15, %v4053_v0, 0 }
 0x962   : > { %v2212_v24 = vmax.f32 %v2210_v7, %v2211_v43  ;;  %v2236_v49 = vrot.slane %v2235_v23, 2  ;;  %v2224_v33 = vmax.f32 %v2222_v39, %v2223_v26 }
 0x963   : > { %v2254_v61 = vpack.c.bf16 %v2221_v21, %v2221_v21 }
 0x964   : > { %v2253_v3 = vpack.c.bf16 %v2212_v24, %v2212_v24  ;;  %v2237_v28 = vmax.f32 %v2235_v23, %v2236_v49  ;;  %v2225_v51 = vrot.slane %v2224_v33, 4  ;;  %v2426_v23 = vrot.slane %v2240_v10, %v4449_v12 }
 0x965   : > { %v2298_v8 = vunpack.c.l.b16 %v2254_v61  ;;  %v2432_v24 = vrot.slane %v2240_v10, %v4458_v16  ;;  %v4054_v10 = vld [vmem:[#allocation2 + $0xf0] sm:$0xff]  }
 0x966   : > { %v2297_v29 = vunpack.c.l.b16 %v2253_v3  ;;  %v2226_v50 = vmax.f32 %v2224_v33, %v2225_v51  ;;  %v2238_v30 = vrot.slane %v2237_v28, 1 }
 0x968   : > { %v2318_v56 = vsel %vm2307_vm10, %v2297_v29, %v2317_v2  ;;  %v2227_v40 = vrot.slane %v2226_v50, 2  ;;  %v2239_v1 = vmax.f32 %v2237_v28, %v2238_v30 }
 0x969   : > { %v2319_v59 = vsel %vm2309_vm11, %v2298_v8, %v2318_v56  ;;  %v2437_v56 = vld [vmem:[#allocation5 + $0x40] sm:$0x7] }
 0x96a   : > { %v2228_v47 = vmax.f32 %v2226_v50, %v2227_v40  ;;  %v2256_v13 = vpack.c.bf16 %v2239_v1, %v2239_v1  ;;  %v2445_v40 = vrot.slane %v2437_v56, %v4446_v11 }
 0x96c   : > { %v2229_v45 = vrot.slane %v2228_v47, 1  ;;  %v2300_v22 = vunpack.c.l.b16 %v2256_v13 }
 0x96e   : > { %v2230_v18 = vmax.f32 %v2228_v47, %v2229_v45 }
 0x970   : > { %v2255_v48 = vpack.c.bf16 %v2230_v18, %v2230_v18 }
 0x972   : > { %v2299_v34 = vunpack.c.l.b16 %v2255_v48 }
 0x974   : > { %v2320_v32 = vsel %vm2311_vm12, %v2299_v34, %v2319_v59 }
 0x975   : > { %v2321_v55 = vsel %vm2313_vm4, %v2300_v22, %v2320_v32 }
 0x976   : > { %v2322_v54 = vpack.c.b16 %v2321_v55, %v2314_v63 }
 0x978   : > { %3814 = vmatmul.mubr.msk.bf16.vlgmr.msra.gmra.mrb[20].mxu0 %vm912_vm6, %v2322_v54 }
 0x979   : > { %3821 = vmatprep.mubr.msk.bf16.mxu0 %vm4273_vm1, %v4272_v5  ;;  %3818 = vmatpush3.bf16.msra.mxu0 %v4052_v53 }
 0x97a   : > { %3819 = vmatprep.subr.bf16.mxu0 %v4272_v5 }
 0x97d   : > { %3820 = vmatpush3.bf16.msra.mxu0 %v2459_v19 }
 0x97e   : > { %3825 = vmatprep.subr.bf16.mxu0 %v4272_v5 }
 0xa4b   : > { %v2386_v35 = vpop.f32.mrb[20].mxu0 }
 0xa4c   : > { %v2387_v46 = vadd.f32 %v2386_v35, %v2268_v9  ;;  %v3815_v27 = vpop.f32.mrb[21].mxu0  ;;  %v4056_v35 = vld [vmem:[#allocation2 + $0x100] ss:$0 sps:$4 sm:$0xff]  }
 0xa4d   : > { %v2389_v31 = vpop.f32.mrb[22].mxu0 }
 0xa4e   : > { %v2390_v17 = vadd.f32 %v2389_v31, %v2268_v9  ;;  %v3816_v6 = vpop.f32.mrb[23].mxu0  ;;  %v2393_v58 = vsel %vm544_vm14, %v2387_v46, 0.0  ;;  %v2401_v25 = vmul.f32 %v2387_v46, %v2387_v46  ;;  %v4055_v9 = vld [vmem:[#allocation2 + $0xf8] sm:$0xff]  }
 0xa4f   : > { %2394 = vadd.xlane.f32.xlu0 %v2393_v58 }
 0xa50   : > { %v2396_v20 = vsel %vm544_vm14, %v2390_v17, 0.0  ;;  %v2403_v41 = vsel %vm544_vm14, %v2401_v25, 0.0  ;;  %v2402_v62 = vmul.f32 %v2390_v17, %v2390_v17 }
 0xa51   : > { %2397 = vadd.xlane.f32.xlu1 %v2396_v20 }
 0xa52   : > { %v2406_v42 = vsel %vm544_vm14, %v2402_v62, 0.0 }
 0xa53   : > { %2404 = vadd.xlane.f32.xlu0 %v2403_v41 }
 0xa57   : > { %2407 = vadd.xlane.f32.xlu0 %v2406_v42 }
 0xadc   : > { %v2395_v38 = vpop.xlane.xlu0 %2394 }
 0xadd   : > { %v2399_v14 = vmul.f32 0.05, %v2395_v38 }
 0xade   : > { %v2398_v15 = vpop.xlane.xlu1 %2397 }
 0xadf   : > { %v2411_v60 = vmul.f32 %v2399_v14, %v2399_v14  ;;  %v2400_v44 = vmul.f32 0.05, %v2398_v15  ;;  %v2415_v2 = vsub.f32 %v2387_v46, %v2399_v14  ;;  %v2576_v46 = vsel %vm731_vm2, %v4056_v35, 0 }
 0xae0   : > { %v2405_v4 = vpop.xlane.xlu0 %2404  ;;  %v2535_v14 = vrot.slane %v2437_v56, %v4449_v12 }
 0xae1   : > { %v2409_v7 = vmul.f32 0.05, %v2405_v4  ;;  %v2412_v57 = vmul.f32 %v2400_v44, %v2400_v44  ;;  %v2416_v49 = vsub.f32 %v2390_v17, %v2400_v44 }
 0xae3   : > { %v2413_v36 = vsub.f32 %v2409_v7, %v2411_v60  ;;  %v2541_v60 = vrot.slane %v2437_v56, %v4458_v16 }
 0xae4   : > { %v2408_v52 = vpop.xlane.xlu0 %2407 }
 0xae5   : > { %v2417_v63 = vadd.f32 1e-05, %v2413_v36  ;;  %v2410_v37 = vmul.f32 0.05, %v2408_v52 }
 0xae7   : > { %4110 = vrsqrt.f32 %v2417_v63  ;;  %v2414_v21 = vsub.f32 %v2410_v37, %v2412_v57 }
 0xae9   : > { %v2418_v43 = vadd.f32 1e-05, %v2414_v21 }
 0xaeb   : > { %4112 = vrsqrt.f32 %v2418_v43 }
 0xaf1   : > { %v4111_v39 = vpop.eup %4110 }
 0xaf2   : > { %v2421_v26 = vmul.f32 %v4111_v39, %v2415_v2  ;;  %v2546_v39 = vld [vmem:[#allocation5 + $0x48] sm:$0x7] }
 0xaf4   : > { %v2427_v33 = vmul.f32 %v2426_v23, %v2421_v26  ;;  %v2556_v26 = vrot.slane %v2546_v39, %v4446_v11 }
 0xaf5   : > { %v4113_v61 = vpop.eup %4112 }
 0xaf6   : > { %v2422_v3 = vmul.f32 %v4113_v61, %v2416_v49  ;;  %v2433_v51 = vadd.f32 %v2432_v24, %v2427_v33 }
 0xaf8   : > { %v2428_v28 = vmul.f32 %v2426_v23, %v2422_v3  ;;  %v2435_v50 = vmax.f32 %v2433_v51, 0.0 }
 0xafa   : > { %v2434_v29 = vadd.f32 %v2432_v24, %v2428_v28 }
 0xafc   : > { %v2436_v8 = vmax.f32 %v2434_v29, 0.0 }
 0xafe   : > { %v2438_v30 = vpack.c.bf16 %v2436_v8, %v2435_v50 }
 0xb00   : > { %3822 = vmatmul.mubr.msk.bf16.vlgmr.msra.gmra.mrb[24].mxu0 %vm544_vm14, %v2438_v30 }
 0xb01   : > { %3831 = vmatprep.mubr.msk.bf16.mxu0 %vm4273_vm1, %v4272_v5  ;;  %3826 = vmatpush3.bf16.msra.mxu0 %v4054_v10 }
 0xb02   : > { %3827 = vmatprep.subr.bf16.mxu0 %v4272_v5 }
 0xb05   : > { %3828 = vmatpush3.bf16.msra.mxu0 %v4055_v9 }
 0xb06   : > { %3829 = vmatprep.subr.bf16.mxu0 %v4272_v5 }
 0xb09   : > { %3830 = vmatpush3.bf16.msra.mxu0 %v2576_v46 }
 0xb0a   : > { %3835 = vmatprep.subr.bf16.mxu0 %v4272_v5 }
 0xbd3   : > { %v2495_v59 = vpop.f32.mrb[24].mxu0 }
 0xbd4   : > { %v2496_v47 = vadd.f32 %v2495_v59, %v2445_v40  ;;  %v3823_v1 = vpop.f32.mrb[25].mxu0  ;;  %v4058_v59 = vld [vmem:[#allocation2 + $0x110] sm:$0xff]  }
 0xbd5   : > { %v2498_v45 = vpop.f32.mrb[26].mxu0  ;;  %v4060_v1 = vld [vmem:[#allocation2 + $0x120] sm:$0xff]  }
 0xbd6   : > { %v2499_v18 = vadd.f32 %v2498_v45, %v2445_v40  ;;  %v3824_v13 = vpop.f32.mrb[27].mxu0  ;;  %v2502_v48 = vsel %vm656_vm0, %v2496_v47, 0.0  ;;  %v2510_v34 = vmul.f32 %v2496_v47, %v2496_v47  ;;  %v4057_v40 = vld [vmem:[#allocation2 + $0x108] sm:$0xff]  }
 0xbd7   : > { %2503 = vadd.xlane.f32.xlu1 %v2502_v48  ;;  %v4061_v45 = vld [vmem:[#allocation2 + $0x128] sm:$0xff]  }
 0xbd8   : > { %v2505_v22 = vsel %vm656_vm0, %v2499_v18, 0.0  ;;  %v2511_v32 = vmul.f32 %v2499_v18, %v2499_v18  ;;  %v2512_v55 = vsel %vm656_vm0, %v2510_v34, 0.0 }
 0xbd9   : > { %2506 = vadd.xlane.f32.xlu0 %v2505_v22 }
 0xbda   : > { %v2515_v54 = vsel %vm656_vm0, %v2511_v32, 0.0 }
 0xbdb   : > { %2513 = vadd.xlane.f32.xlu1 %v2512_v55 }
 0xbdd   : > { %2516 = vadd.xlane.f32.xlu0 %v2515_v54 }
 0xc64   : > { %v2504_v27 = vpop.xlane.xlu1 %2503 }
 0xc65   : > { %v2508_v31 = vmul.f32 0.025, %v2504_v27 }
 0xc66   : > { %v2507_v17 = vpop.xlane.xlu0 %2506 }
 0xc67   : > { %v2509_v6 = vmul.f32 0.025, %v2507_v17  ;;  %v2520_v25 = vmul.f32 %v2508_v31, %v2508_v31  ;;  %v2524_v15 = vsub.f32 %v2496_v47, %v2508_v31  ;;  %v4059_v47 = vld [vmem:[#allocation2 + $0x118] sm:$0xff]   ;;  %v2652_v17 = vrot.slane %v2546_v39, %v4449_v12 }
 0xc68   : > { %v2514_v58 = vpop.xlane.xlu1 %2513 }
 0xc69   : > { %v2518_v20 = vmul.f32 0.025, %v2514_v58  ;;  %v2521_v62 = vmul.f32 %v2509_v6, %v2509_v6  ;;  %v2525_v44 = vsub.f32 %v2499_v18, %v2509_v6 }
 0xc6a   : > { %v2517_v41 = vpop.xlane.xlu0 %2516 }
 0xc6b   : > { %v2522_v42 = vsub.f32 %v2518_v20, %v2520_v25  ;;  %v2519_v53 = vmul.f32 0.025, %v2517_v41  ;;  %v2658_v25 = vrot.slane %v2546_v39, %v4458_v16 }
 0xc6d   : > { %v2526_v0 = vadd.f32 1e-05, %v2522_v42  ;;  %v2523_v19 = vsub.f32 %v2519_v53, %v2521_v62 }
 0xc6f   : > { %4114 = vrsqrt.f32 %v2526_v0  ;;  %v2527_v38 = vadd.f32 1e-05, %v2523_v19 }
 0xc71   : > { %4116 = vrsqrt.f32 %v2527_v38 }
 0xc79   : > { %v4115_v4 = vpop.eup %4114 }
 0xc7a   : > { %v2530_v7 = vmul.f32 %v4115_v4, %v2524_v15 }
 0xc7b   : > { %v4117_v36 = vpop.eup %4116 }
 0xc7c   : > { %v2531_v52 = vmul.f32 %v4117_v36, %v2525_v44  ;;  %v2536_v57 = vmul.f32 %v2535_v14, %v2530_v7  ;;  %v4063_v44 = vld [vmem:[#allocation2 + $0x138] sm:$0xff]   ;;  %v2663_v7 = vld [vmem:[#allocation5 + $0x50] sm:$0x7] }
 0xc7d   : > { %v2678_v36 = vrot.slane %v2663_v7, %v4446_v11  ;;  %v4064_v11 = vld [vmem:[#allocation2 + $0x140] sm:$0xff]  }
 0xc7e   : > { %v2537_v63 = vmul.f32 %v2535_v14, %v2531_v52  ;;  %v2542_v37 = vadd.f32 %v2541_v60, %v2536_v57 }
 0xc80   : > { %v2543_v21 = vadd.f32 %v2541_v60, %v2537_v63  ;;  %v2544_v43 = vmax.f32 %v2542_v37, 0.0  ;;  %v4062_v60 = vld [vmem:[#allocation2 + $0x130] sm:$0xff]  }
 0xc81   : > { %3850 = vmatpush3.bf16.msra.mxu1 %v4062_v60 }
 0xc82   : > { %v2545_v23 = vmax.f32 %v2543_v21, 0.0  ;;  %3851 = vmatprep.subr.bf16.mxu1 %v4272_v5 }
 0xc84   : > { %v2547_v2 = vpack.c.bf16 %v2545_v23, %v2544_v43 }
 0xc85   : > { %3852 = vmatpush3.bf16.msra.mxu1 %v4063_v44 }
 0xc86   : > { %3832 = vmatmul.mubr.msk.bf16.vlgmr.msra.gmra.mrb[28].mxu0 %vm656_vm0, %v2547_v2  ;;  %3853 = vmatprep.subr.bf16.mxu1 %v4272_v5 }
 0xc87   : > { %3845 = vmatprep.mubr.msk.bf16.mxu0 %vm4273_vm1, %v4272_v5  ;;  %3836 = vmatpush3.bf16.msra.mxu0 %v4057_v40 }
 0xc88   : > { %3837 = vmatprep.subr.bf16.mxu0 %v4272_v5 }
 0xc89   : > { %3854 = vmatpush3.bf16.msra.mxu1 %v4064_v11 }
 0xc8a   : > { %3855 = vmatprep.subr.bf16.mxu1 %v4272_v5 }
 0xc8b   : > { %3838 = vmatpush3.bf16.msra.mxu0 %v4058_v59 }
 0xc8c   : > { %3839 = vmatprep.subr.bf16.mxu0 %v4272_v5 }
 0xc8f   : > { %3840 = vmatpush3.bf16.msra.mxu0 %v4059_v47 }
 0xc90   : > { %3841 = vmatprep.subr.bf16.mxu0 %v4272_v5 }
 0xc93   : > { %3842 = vmatpush3.bf16.msra.mxu0 %v4060_v1 }
 0xc94   : > { %3843 = vmatprep.subr.bf16.mxu0 %v4272_v5 }
 0xc97   : > { %3844 = vmatpush3.bf16.msra.mxu0 %v4061_v45 }
 0xc98   : > { %3861 = vmatprep.subr.bf16.mxu0 %v4272_v5 }
 0xd59   : > { %v2612_v24 = vpop.f32.mrb[28].mxu0 }
 0xd5a   : > { %v2613_v49 = vadd.f32 %v2612_v24, %v2556_v26  ;;  %v3833_v33 = vpop.f32.mrb[29].mxu0 }
 0xd5b   : > { %v2615_v61 = vpop.f32.mrb[30].mxu0  ;;  %v4065_v33 = vld [vmem:[#allocation2 + $0x150] sm:$0xff]  }
 0xd5c   : > { %v2616_v3 = vadd.f32 %v2615_v61, %v2556_v26  ;;  %v3834_v28 = vpop.f32.mrb[31].mxu0  ;;  %v2619_v51 = vsel %vm776_vm3, %v2613_v49, 0.0  ;;  %v2627_v29 = vmul.f32 %v2613_v49, %v2613_v49  ;;  %v4067_v61 = vld [vmem:[#allocation2 + $0x148] sm:$0x3f]  }
 0xd5d   : > { %2620 = vadd.xlane.f32.xlu1 %v2619_v51  ;;  %v2838_v28 = vsel %vm1230_vm13, %v4067_v61, 0  ;;  %v4068_v51 = vld [vmem:[#allocation2 + $0x160] sm:$0xff]  }
 0xd5e   : > { %v2622_v50 = vsel %vm776_vm3, %v2616_v3, 0.0  ;;  %v2628_v8 = vmul.f32 %v2616_v3, %v2616_v3  ;;  %v2629_v30 = vsel %vm776_vm3, %v2627_v29, 0.0  ;;  %3856 = vmatpush3.bf16.msra.mxu1 %v2838_v28  ;;  %v4069_v29 = vld [vmem:[#allocation2 + $0x168] sm:$0x3f]  }
 0xd5f   : > { %2623 = vadd.xlane.f32.xlu0 %v2622_v50  ;;  %3873 = vmatprep.subr.bf16.mxu1 %v4272_v5  ;;  %v2918_v50 = vsel %vm1230_vm13, %v4069_v29, 0 }
 0xd60   : > { %v2632_v56 = vsel %vm776_vm3, %v2628_v8, 0.0 }
 0xd61   : > { %2630 = vadd.xlane.f32.xlu1 %v2629_v30 }
 0xd63   : > { %2633 = vadd.xlane.f32.xlu0 %v2632_v56 }
 0xdea   : > { %v2621_v18 = vpop.xlane.xlu1 %2620 }
 0xdeb   : > { %v2625_v13 = vmul.f32 0.0125, %v2621_v18 }
 0xdec   : > { %v2624_v48 = vpop.xlane.xlu0 %2623 }
 0xded   : > { %v2626_v34 = vmul.f32 0.0125, %v2624_v48  ;;  %v2637_v32 = vmul.f32 %v2625_v13, %v2625_v13  ;;  %v2641_v6 = vsub.f32 %v2613_v49, %v2625_v13 }
 0xdee   : > { %v2631_v22 = vpop.xlane.xlu1 %2630 }
 0xdef   : > { %v2635_v55 = vmul.f32 0.0125, %v2631_v22  ;;  %v2638_v10 = vmul.f32 %v2626_v34, %v2626_v34  ;;  %v2642_v20 = vsub.f32 %v2616_v3, %v2626_v34  ;;  %v4066_v3 = vld [vmem:[#allocation2 + $0x158] sm:$0xff]  }
 0xdf0   : > { %v2634_v54 = vpop.xlane.xlu0 %2633 }
 0xdf1   : > { %v2639_v9 = vsub.f32 %v2635_v55, %v2637_v32  ;;  %v2636_v35 = vmul.f32 0.0125, %v2634_v54  ;;  %v2786_v55 = vrot.slane %v2663_v7, %v4449_v12  ;;  %v4071_v12 = vld [vmem:[#allocation2 + $0x178] sm:$0xff]  }
 0xdf3   : > { %v2643_v46 = vadd.f32 1e-05, %v2639_v9  ;;  %v2640_v27 = vsub.f32 %v2636_v35, %v2638_v10  ;;  %v2792_v9 = vrot.slane %v2663_v7, %v4458_v16  ;;  %v4072_v16 = vld [vmem:[#allocation2 + $0x180] sm:$0xff]  }
 0xdf5   : > { %4118 = vrsqrt.f32 %v2643_v46  ;;  %v2644_v31 = vadd.f32 1e-05, %v2640_v27 }
 0xdf7   : > { %4120 = vrsqrt.f32 %v2644_v31 }
 0xdff   : > { %v4119_v58 = vpop.eup %4118 }
 0xe00   : > { %v2647_v41 = vmul.f32 %v4119_v58, %v2641_v6 }
 0xe01   : > { %v4121_v62 = vpop.eup %4120 }
 0xe02   : > { %v2648_v42 = vmul.f32 %v4121_v62, %v2642_v20  ;;  %v2653_v53 = vmul.f32 %v2652_v17, %v2647_v41  ;;  %v4070_v62 = vld [vmem:[#allocation2 + $0x170] sm:$0xff]  }
 0xe04   : > { %v2654_v0 = vmul.f32 %v2652_v17, %v2648_v42  ;;  %v2659_v19 = vadd.f32 %v2658_v25, %v2653_v53  ;;  %v4073_v53 = vld [vmem:[#allocation2 + $0x188] sm:$0x3f]  }
 0xe06   : > { %v2660_v38 = vadd.f32 %v2658_v25, %v2654_v0  ;;  %v2661_v14 = vmax.f32 %v2659_v19, 0.0  ;;  %v2998_v0 = vsel %vm1230_vm13, %v4073_v53, 0  ;;  %v3541_v19 = vld [vmem:[#allocation5 + $0x58] ss:$0 sm:$0xff] }
 0xe08   : > { %v2662_v15 = vmax.f32 %v2660_v38, 0.0 }
 0xe0a   : > { %v2664_v4 = vpack.c.bf16 %v2662_v15, %v2661_v14  ;;  %v3547_v14 = vld [vmem:[#allocation5 + $0x60] ss:$0 sm:$0xff] }
 0xe0c   : > { %3846 = vmatmul.mubr.msk.bf16.vlgmr.msra.gmra.mrb[32].mxu0 %vm776_vm3, %v2664_v4 }
 0xe0d   : > { %3869 = vmatprep.mubr.msk.bf16.mxu0 %vm4273_vm1, %v4272_v5  ;;  %3862 = vmatpush3.bf16.msra.mxu0 %v4065_v33 }
 0xe0e   : > { %3863 = vmatprep.subr.bf16.mxu0 %v4272_v5 }
 0xe11   : > { %3864 = vmatpush3.bf16.msra.mxu0 %v4066_v3 }
 0xe12   : > { %3865 = vmatprep.subr.bf16.mxu0 %v4272_v5 }
 0xe15   : > { %3866 = vmatpush3.bf16.msra.mxu0 %v4068_v51 }
 0xe16   : > { %3867 = vmatprep.subr.bf16.mxu0 %v4272_v5 }
 0xe19   : > { %3868 = vmatpush3.bf16.msra.mxu0 %v2918_v50 }
 0xe1a   : > { %3885 = vmatprep.subr.bf16.mxu0 %v4272_v5 }
 0xedf   : > { %v2746_v52 = vpop.f32.mrb[32].mxu0 }
 0xee0   : > { %v2747_v57 = vadd.f32 %v2746_v52, %v2678_v36  ;;  %v3847_v63 = vpop.f32.mrb[33].mxu0 }
 0xee1   : > { %v2749_v37 = vpop.f32.mrb[34].mxu0 }
 0xee2   : > { %v2750_v21 = vadd.f32 %v2749_v37, %v2678_v36  ;;  %v3848_v43 = vpop.f32.mrb[35].mxu0  ;;  %v2753_v23 = vsel %vm912_vm6, %v2747_v57, 0.0  ;;  %v2761_v2 = vmul.f32 %v2747_v57, %v2747_v57 }
 0xee3   : > { %2754 = vadd.xlane.f32.xlu1 %v2753_v23 }
 0xee4   : > { %v2756_v39 = vsel %vm912_vm6, %v2750_v21, 0.0  ;;  %v2762_v26 = vmul.f32 %v2750_v21, %v2750_v21  ;;  %v2763_v24 = vsel %vm912_vm6, %v2761_v2, 0.0  ;;  %v3553_v2 = vld [vmem:[#allocation5 + $0x68] ss:$0 sm:$0xff] }
 0xee5   : > { %2757 = vadd.xlane.f32.xlu0 %v2756_v39 }
 0xee6   : > { %v2766_v49 = vsel %vm912_vm6, %v2762_v26, 0.0 }
 0xee7   : > { %2764 = vadd.xlane.f32.xlu1 %v2763_v24 }
 0xee9   : > { %2767 = vadd.xlane.f32.xlu0 %v2766_v49 }
 0xf70   : > { %v2755_v8 = vpop.xlane.xlu1 %2754 }
 0xf71   : > { %v2759_v30 = vmul.f32 0.016666668, %v2755_v8 }
 0xf72   : > { %v2758_v56 = vpop.xlane.xlu0 %2757 }
 0xf73   : > { %v2760_v40 = vmul.f32 0.016666668, %v2758_v56  ;;  %v2771_v47 = vmul.f32 %v2759_v30, %v2759_v30  ;;  %v2775_v54 = vsub.f32 %v2747_v57, %v2759_v30 }
 0xf74   : > { %v2765_v59 = vpop.xlane.xlu1 %2764 }
 0xf75   : > { %v2769_v1 = vmul.f32 0.016666668, %v2765_v59  ;;  %v2772_v18 = vmul.f32 %v2760_v40, %v2760_v40  ;;  %v2776_v35 = vsub.f32 %v2750_v21, %v2760_v40 }
 0xf76   : > { %v2768_v45 = vpop.xlane.xlu0 %2767 }
 0xf77   : > { %v2773_v13 = vsub.f32 %v2769_v1, %v2771_v47  ;;  %v2770_v48 = vmul.f32 0.016666668, %v2768_v45 }
 0xf79   : > { %v2777_v34 = vadd.f32 1e-05, %v2773_v13  ;;  %v2774_v22 = vsub.f32 %v2770_v48, %v2772_v18 }
 0xf7b   : > { %4122 = vrsqrt.f32 %v2777_v34  ;;  %v2778_v32 = vadd.f32 1e-05, %v2774_v22 }
 0xf7d   : > { %4124 = vrsqrt.f32 %v2778_v32  ;;  %v4078_v32 = vld [vmem:[#allocation2 + $0x1b0] sm:$0xff]  }
 0xf85   : > { %v4123_v10 = vpop.eup %4122 }
 0xf86   : > { %v2781_v46 = vmul.f32 %v4123_v10, %v2775_v54  ;;  %v4080_v54 = vld [vmem:[#allocation2 + $0x1c0] sm:$0xff]   ;;  %v4081_v10 = vld [vmem:[#allocation2 + $0x1c8] sm:$0xff]  }
 0xf87   : > { %v4125_v27 = vpop.eup %4124 }
 0xf88   : > { %v2787_v31 = vmul.f32 %v2786_v55, %v2781_v46  ;;  %v2782_v17 = vmul.f32 %v4125_v27, %v2776_v35  ;;  %v4083_v35 = vld [vmem:[#allocation2 + $0x1d8] sm:$0xff]   ;;  %v4084_v46 = vld [vmem:[#allocation2 + $0x1e0] sm:$0xff]  }
 0xf8a   : > { %v2793_v6 = vadd.f32 %v2792_v9, %v2787_v31  ;;  %v2788_v58 = vmul.f32 %v2786_v55, %v2782_v17  ;;  %v4079_v55 = vld [vmem:[#allocation2 + $0x1b8] sm:$0xff]  }
 0xf8c   : > { %v2794_v25 = vadd.f32 %v2792_v9, %v2788_v58  ;;  %v2795_v20 = vmax.f32 %v2793_v6, 0.0  ;;  %v4082_v9 = vld [vmem:[#allocation2 + $0x1d0] sm:$0xff]  }
 0xf8e   : > { %v2796_v41 = vmax.f32 %v2794_v25, 0.0 }
 0xf90   : > { %v5069_v42 = vpack.c.bf16 %v2796_v41, %v2795_v20  ;;  %v4074_v20 = vld [vmem:[#allocation2 + $0x190] sm:$0xff]  }
 0xf92   : > { %3858 = vmatmul.mubr.msk.bf16.vlgmr.msra.gmra.mrb[48].mxu1 %vm912_vm6, %v5069_v42  ;;  %3870 = vmatmul.mubr.msk.bf16.vlgmr.msra.gmra.mrb[36].mxu0 %vm912_vm6, %v5069_v42 }
 0xf93   : > { %3874 = vmatpush3.bf16.msra.mxu1 %v4070_v62  ;;  %3881 = vmatprep.mubr.msk.bf16.mxu1 %vm4273_vm1, %v4272_v5  ;;  %v4075_v62 = vld [vmem:[#allocation2 + $0x198] sm:$0xff]  }
 0xf94   : > { %3875 = vmatprep.subr.bf16.mxu1 %v4272_v5  ;;  %3887 = vmatprep.mubr.msk.bf16.mxu0 %vm4273_vm1, %v4272_v5 }
 0xf97   : > { %3876 = vmatpush3.bf16.msra.mxu1 %v4071_v12  ;;  %v4076_v12 = vld [vmem:[#allocation2 + $0x1a0] sm:$0xff]  }
 0xf98   : > { %3877 = vmatprep.subr.bf16.mxu1 %v4272_v5 }
 0xf9b   : > { %3878 = vmatpush3.bf16.msra.mxu1 %v4072_v16  ;;  %v4077_v16 = vld [vmem:[#allocation2 + $0x1a8] sm:$0x3f]  }
 0xf9c   : > { %3879 = vmatprep.subr.bf16.mxu1 %v4272_v5  ;;  %v3292_v53 = vsel %vm1230_vm13, %v4077_v16, 0 }
 0xf9f   : > { %3880 = vmatpush3.bf16.msra.mxu1 %v2998_v0  ;;  %v4085_v0 = vld [vmem:[#allocation2 + $0x1e8] sm:$0xff]  }
 0xfa0   : > { %3897 = vmatprep.subr.bf16.mxu1 %v4272_v5 }
 0xfa2   : > { %3882 = vmatmul.mubr.msk.bf16.vlgmr.msra.gmra.mrb[52].mxu1 %vm912_vm6, %v5069_v42 }
 0xfa3   : > { %3913 = vmatprep.mubr.msk.bf16.mxu1 %vm4273_vm1, %v4272_v5  ;;  %3898 = vmatpush3.bf16.msra.mxu1 %v4078_v32 }
 0xfa4   : > { %3899 = vmatprep.subr.bf16.mxu1 %v4272_v5 }
 0xfa7   : > { %3900 = vmatpush3.bf16.msra.mxu1 %v4079_v55 }
 0xfa8   : > { %3901 = vmatprep.subr.bf16.mxu1 %v4272_v5 }
 0xfab   : > { %3902 = vmatpush3.bf16.msra.mxu1 %v4080_v54 }
 0xfac   : > { %3903 = vmatprep.subr.bf16.mxu1 %v4272_v5 }
 0xfaf   : > { %3904 = vmatpush3.bf16.msra.mxu1 %v4081_v10 }
 0xfb0   : > { %3905 = vmatprep.subr.bf16.mxu1 %v4272_v5 }
 0xfb3   : > { %3906 = vmatpush3.bf16.msra.mxu1 %v4082_v9 }
 0xfb4   : > { %3907 = vmatprep.subr.bf16.mxu1 %v4272_v5 }
 0xfb7   : > { %3908 = vmatpush3.bf16.msra.mxu1 %v4083_v35 }
 0xfb8   : > { %3909 = vmatprep.subr.bf16.mxu1 %v4272_v5 }
 0xfbb   : > { %3910 = vmatpush3.bf16.msra.mxu1 %v4084_v46 }
 0xfbc   : > { %3911 = vmatprep.subr.bf16.mxu1 %v4272_v5 }
 0xfbf   : > { %3912 = vmatpush3.bf16.msra.mxu1 %v4085_v0 }
0x1065   : > { %v2874_v38 = vpop.f32.mrb[48].mxu1  ;;  %v2954_v15 = vpop.f32.mrb[36].mxu0 }
0x1066   : > { %v3859_v4 = vpop.f32.mrb[49].mxu1  ;;  %v3871_v60 = vpop.f32.mrb[37].mxu0  ;;  %v2875_v36 = vadd.f32 %v3541_v19, %v2874_v38  ;;  %v2955_v52 = vadd.f32 %v3547_v14, %v2954_v15 }
0x1067   : > { %v2877_v44 = vpop.f32.mrb[50].mxu1  ;;  %v2957_v7 = vpop.f32.mrb[38].mxu0 }
0x1068   : > { %v2878_v57 = vadd.f32 %v3541_v19, %v2877_v44  ;;  %v2958_v63 = vadd.f32 %v3547_v14, %v2957_v7  ;;  %v3860_v37 = vpop.f32.mrb[51].mxu1  ;;  %v3872_v21 = vpop.f32.mrb[39].mxu0 }
0x106a   : > { %v3041_v43 = vpack.c.bf16 %v2878_v57, %v2875_v36  ;;  %v3042_v23 = vpack.c.bf16 %v2958_v63, %v2955_v52  ;;  %v3573_v52 = vld [vmem:[#allocation5 + $0x70] ss:$0 sm:$0xff] }
0x106c   : > { %3886 = vmatpush3.bf16.xpose.msra.mxu0 %v3042_v23 }
0x106d   : > { %3891 = vmatprep.subr.bf16.mxu0 %v4272_v5 }
0x1073   : > { %3888 = vmatmul.mubr.bf16.vlgmr.msra.gmra.mrb[40].mxu0 %v3041_v43 }
0x1074   : > { %3893 = vmatprep.mubr.msk.bf16.mxu0 %vm4273_vm1, %v4272_v5 }
0x1075   : > { %v3034_v39 = vpop.f32.mrb[52].mxu1 }
0x1076   : > { %v3883_v26 = vpop.f32.mrb[53].mxu1  ;;  %v3035_v49 = vadd.f32 %v3553_v2, %v3034_v39 }
0x1077   : > { %v3037_v24 = vpop.f32.mrb[54].mxu1 }
0x1078   : > { %v3038_v11 = vadd.f32 %v3553_v2, %v3037_v24  ;;  %v3884_v33 = vpop.f32.mrb[55].mxu1 }
0x107a   : > { %v3109_v61 = vpack.c.bf16 %v3038_v11, %v3035_v49 }
0x107c   : > { %3892 = vmatpush3.bf16.msra.mxu0 %v3109_v61 }
0x107d   : > { %3917 = vmatprep.subr.bf16.mxu0 %v4272_v5 }
0x1146   : > { %v3077_v3 = vpop.f32.mrb[40].mxu0 }
0x1147   : > { %v3084_v28 = vmul.f32 0.12909944, %v3077_v3  ;;  %v3889_v51 = vpop.f32.mrb[41].mxu0 }
0x1148   : > { %v3080_v29 = vpop.f32.mrb[42].mxu0 }
0x1149   : > { %v3085_v50 = vmul.f32 0.12909944, %v3080_v29  ;;  %v3890_v8 = vpop.f32.mrb[43].mxu0  ;;  %v3086_v30 = vsel %vm1060_vm9, %v3084_v28, -inf }
0x114a   : > { %3087 = vmax.xlane.f32.xlu1 %v3086_v30 }
0x114b   : > { %v3089_v56 = vsel %vm1060_vm9, %v3085_v50, -inf }
0x114c   : > { %3090 = vmax.xlane.f32.xlu0 %v3089_v56 }
0x11d7   : > { %v3088_v40 = vpop.xlane.xlu1 %3087 }
0x11d8   : > { %v3092_v59 = vsub.f32 %v3084_v28, %v3088_v40 }
0x11d9   : > { %v3091_v47 = vpop.xlane.xlu0 %3090 }
0x11da   : > { %v3094_v1 = vmul.f32 1.442695, %v3092_v59  ;;  %v3093_v45 = vsub.f32 %v3085_v50, %v3091_v47 }
0x11dc   : > { %4126 = vpow2.f32 %v3094_v1  ;;  %v3096_v18 = vmul.f32 1.442695, %v3093_v45 }
0x11de   : > { %4128 = vpow2.f32 %v3096_v18 }
0x11e6   : > { %v4127_v13 = vpop.eup %4126 }
0x11e7   : > { %v3098_v48 = vsel %vm1060_vm9, %v4127_v13, 0.0 }
0x11e8   : > { %v4129_v34 = vpop.eup %4128  ;;  %3099 = vadd.xlane.f32.xlu1 %v3098_v48 }
0x11e9   : > { %v3101_v22 = vsel %vm1060_vm9, %v4129_v34, 0.0 }
0x11ea   : > { %3102 = vadd.xlane.f32.xlu0 %v3101_v22 }
0x1275   : > { %v3100_v27 = vpop.xlane.xlu1 %3099 }
0x1276   : > { %4130 = vrcp.f32 %v3100_v27 }
0x1277   : > { %v3103_v31 = vpop.xlane.xlu0 %3102 }
0x1278   : > { %4132 = vrcp.f32 %v3103_v31 }
0x1280   : > { %v4131_v17 = vpop.eup %4130 }
0x1281   : > { %v3106_v58 = vmul.f32 %v4131_v17, %v4127_v13 }
0x1282   : > { %v4133_v6 = vpop.eup %4132 }
0x1283   : > { %v3107_v25 = vmul.f32 %v4133_v6, %v4129_v34 }
0x1285   : > { %v3108_v41 = vpack.c.bf16 %v3107_v25, %v3106_v58 }
0x1287   : > { %3894 = vmatmul.mubr.msk.bf16.vlgmr.msra.gmra.mrb[44].mxu0 %vm1060_vm9, %v3108_v41 }
0x1288   : > { %3918 = vmatpush3.bf16.msra.mxu0 %v4074_v20  ;;  %3925 = vmatprep.mubr.msk.bf16.mxu0 %vm4273_vm1, %v4272_v5 }
0x1289   : > { %3919 = vmatprep.subr.bf16.mxu0 %v4272_v5 }
0x128c   : > { %3920 = vmatpush3.bf16.msra.mxu0 %v4075_v62 }
0x128d   : > { %3921 = vmatprep.subr.bf16.mxu0 %v4272_v5 }
0x1290   : > { %3922 = vmatpush3.bf16.msra.mxu0 %v4076_v12 }
0x1291   : > { %3923 = vmatprep.subr.bf16.mxu0 %v4272_v5 }
0x1294   : > { %3924 = vmatpush3.bf16.msra.mxu0 %v3292_v53 }
0x1297   : > { %3926 = vmatmul.mubr.msk.bf16.vlgmr.msra.gmra.mrb[48].mxu0 %vm912_vm6, %v5069_v42 }
0x135a   : > { %v3147_v19 = vpop.f32.mrb[44].mxu0 }
0x135b   : > { %v3895_v38 = vpop.f32.mrb[45].mxu0 }
0x135c   : > { %v3150_v14 = vpop.f32.mrb[46].mxu0 }
0x135d   : > { %v3162_v15 = vpack.c.bf16 %v3150_v14, %v3147_v19  ;;  %v3896_v4 = vpop.f32.mrb[47].mxu0 }
0x135f   : > { %3914 = vmatmul.mubr.bf16.vlgmr.msra.gmra.mrb[56].mxu1 %v3162_v15 }
0x136a   : > { %v3328_v60 = vpop.f32.mrb[48].mxu0 }
0x136b   : > { %v3927_v44 = vpop.f32.mrb[49].mxu0 }
0x136c   : > { %v3331_v7 = vpop.f32.mrb[50].mxu0 }
0x136d   : > { %v3928_v5 = vpop.f32.mrb[51].mxu0 }
0x1432   : > { %v3261_v36 = vpop.f32.mrb[56].mxu1 }
0x1433   : > { %v3329_v57 = vadd.f32 %v3328_v60, %v3261_v36  ;;  %v3915_v42 = vpop.f32.mrb[57].mxu1 }
0x1434   : > { %v3264_v63 = vpop.f32.mrb[58].mxu1 }
0x1435   : > { %v3340_v37 = vadd.f32 %v3573_v52, %v3329_v57  ;;  %v3332_v21 = vadd.f32 %v3331_v7, %v3264_v63  ;;  %v3916_v43 = vpop.f32.mrb[59].mxu1 }
0x1437   : > { %3342 = vst [vmem:[%s194_s28] sm:$0xff] %v3340_v37  ;;  %v3341_v23 = vadd.f32 %v3573_v52, %v3332_v21 }
0x1439   : > { %3343 = vst [vmem:[%s194_s28 + $0x8] sm:$0xff] %v3341_v23 }
0x143a   : > { %4205 = shalt.err (!%p4202_p11)
}
0x143b   : > { %s4206_s11 = scalar_lea.hbm %s5119_s7, 256  ;;  %s4210_s29 = scalar_lea.hbm %s5165_s3, 512 }
0x143c   : > { %p4207_p13 = scmp.ne.s32.totalorder %s5119_s7, %s4206_s11  ;;  %p4211_p6 = scmp.lt.u32.totalorder %s5119_s7, %s5165_s3 }
0x143d   : > { %p4212_p9 = scmp.lt.u32.totalorder %s4210_s29, %s4206_s11  ;;  %p4214_p10 = scmp.lt.u32.totalorder %s4206_s11, %s5119_s7 }
0x143e   : > { %p4208_p0 = pnand %p4207_p13, %p5186_p1 }
0x143f   : > { %p4213_p12 = por %p4212_p9, %p4211_p6 }
0x1440   : > { %p4209_p5 = pneg %p4208_p0 }
0x1441   : > { %p4215_p2 = por %p4214_p10, %p4213_p12 }
0x1443   : > { %p4216_p3 = pnand %p4215_p2, %p4209_p5 }
0x1445   : > { %4219 = shalt.err (!%p4216_p3)
}
0x1446   : > { %s4283_s20 = smov 128   ;;  %s4284_s25 = smov 8  }
0x1447   : > { %3952 = dma.vmem_to_hbm [thread:$0]  (%p5186_p1), %s5114_s30, 256, %s5119_s7, %s5121_s26, %s4283_s20, %s4283_s20, %s4284_s25  }
0x1448 PF: > { %p3969_p4 = scmp.ge.s32.totalorder %s4262_s15, 2  ;;  %s3373_s28 = sand.u32 1, %s4250_s12  }
0x1449   : > { %p5187_p7 = scmp.ne.s32.totalorder %s5170_s23, 0  ;;  %s3374_s4 = scalar_lea.sflag [#allocation4], %s3373_s28 }
0x144b   : > { %p3962_p8 = pnand %p3969_p4, %p5187_p7 }
0x144d   : > { %4245 = dma.done.wait (!%p3962_p8), %s3374_s4, 256  }
0x144e   : > { %4247 = vsyncadd (!%p3962_p8), %s3374_s4, 4294967040  ;;  %p15_p11 = scmp.ge.s32.totalorder %s4330_s18, 4   ;;  %s5188_s12 = smov %s4254_s13 }
0x144f   : > { %s5189_s13 = smov %s4258_s14  ;;  %s5190_s14 = smov %s4341_s21 }
0x1450   : > { %s5191_s15 = smov %s4330_s18  ;;  %17 = sbr.rel (!%p15_p11) target bundleno = 5 (0x5), region = 76 }
0x1457   :  { %3379 = vsyncpa [#allocation3], 1 }
0x1458   :  { %3381 = vsyncpa [#allocation3 + $0x1], 1 }
0x1459   :  { %3382 = vsyncpa [#allocation6], 1 }
0x145a   :  { %3383 = vsyncpa [#allocation4], 1 }
0x145b   :  { %3385 = vsyncpa [#allocation4 + $0x1], 1 }

</bundles_post_ra>
